<compile_context>
chip_gen: v7x
topology: tpu7x:2x2x1
jax: 0.10.0
libtpu: 0.0.40
codegen_flags: <defaults>
</compile_context>

<pallas_src>
import math
import jax
import jax.numpy as jnp
from jax.experimental import pallas as pl
from jax.experimental.pallas import tpu as pltpu

# ---------------- small synthetic model config ----------------
B = 2           # batch
S = 8           # target sequence length
NV = 8          # number of visual tokens N_v
H = 32          # hidden_dim
NH = 4          # attention heads
HD = H // NH    # head dim
FF = 64         # FFN intermediate size
V = 128         # vocab size (lane-dense output)
NLAYERS = 2     # decoder layers
LN_EPS = 1e-5   # nn.TransformerDecoderLayer default
NEG_INF = -1e9


# ---------------- in-kernel math helpers ----------------
def _ln(x, g, b):
    mu = jnp.mean(x, axis=-1, keepdims=True)
    var = jnp.mean((x - mu) ** 2, axis=-1, keepdims=True)
    return (x - mu) * jax.lax.rsqrt(var + LN_EPS) * g + b


def _softmax_approx(x):
    m = jnp.max(x, axis=-1, keepdims=True)
    e = jnp.exp(x - m)
    return e * pl.reciprocal(jnp.sum(e, axis=-1, keepdims=True), approx=True)


def _softmax_exact(x):
    m = jnp.max(x, axis=-1, keepdims=True)
    e = jnp.exp(x - m)
    return e / jnp.sum(e, axis=-1, keepdims=True)


def _bf16(x):
    return x.astype(jnp.bfloat16)


# ---------------- fused decoder kernel (one batch block per grid step) ----------------
def decoder_kernel(tgt_ref, pos_ref, mem_ref,
                   sa_wqkv_ref, sa_bqkv_ref, sa_wo_ref, sa_bo_ref,
                   ca_wq_ref, ca_bq_ref, ca_wkv_ref, ca_bkv_ref,
                   ca_wo_ref, ca_bo_ref,
                   w1_ref, b1_ref, w2_ref, b2_ref,
                   lng_ref, lnb_ref, wd_ref,
                   logits_ref, ft_ref):
    BB = tgt_ref.shape[0]                       # batch elements handled this step
    scale = 1.0 / math.sqrt(HD)

    # residual stream kept 2-D (BB*S, H); attention views it as (BB, S, H).
    x = (tgt_ref[...] + pos_ref[...]).reshape(BB * S, H)      # f32
    mem2 = mem_ref[...].reshape(BB * NV, H)                   # f32

    # causal additive bias built once in-kernel
    row = jax.lax.broadcasted_iota(jnp.int32, (S, S), 0)
    col = jax.lax.broadcasted_iota(jnp.int32, (S, S), 1)
    causal_bias = jnp.where(col <= row, 0.0, NEG_INF).astype(jnp.float32)

    def attend(q3, k3, v3, bias):
        # q3: (BB, Lq, H), k3/v3: (BB, Lk, H); batched over B, static head loop.
        lq = q3.shape[1]
        parts = []
        for h in range(NH):
            sl = slice(h * HD, (h + 1) * HD)
            s = jnp.einsum('bqd,bkd->bqk', _bf16(q3[..., sl]), _bf16(k3[..., sl]),
                           preferred_element_type=jnp.float32) * scale
            if bias is not None:
                s = s + bias
            p = _softmax_approx(s)
            parts.append(jnp.einsum('bqk,bkd->bqd', _bf16(p), _bf16(v3[..., sl]),
                                    preferred_element_type=jnp.float32))
        # one lane-concat, then ONE output projection outside
        return jnp.concatenate(parts, axis=-1).reshape(BB * lq, H)

    # statically-unrolled layer loop; each weight matrix is read at point of use
    for li in range(NLAYERS):
        lng = lng_ref[li]                                    # (3, H) — one vreg
        lnb = lnb_ref[li]

        # ---- causal self-attention: fused QKV, one output projection ----
        qkv = jnp.dot(_bf16(x), sa_wqkv_ref[li],
                      preferred_element_type=jnp.float32) + sa_bqkv_ref[li]   # (BB*S, 3H)
        q3 = qkv[:, 0 * H:1 * H].reshape(BB, S, H)
        k3 = qkv[:, 1 * H:2 * H].reshape(BB, S, H)
        v3 = qkv[:, 2 * H:3 * H].reshape(BB, S, H)
        ctx = attend(q3, k3, v3, causal_bias)                                 # (BB*S, H)
        sa = jnp.dot(_bf16(ctx), sa_wo_ref[li],
                     preferred_element_type=jnp.float32) + sa_bo_ref[li]
        x = _ln(x + sa, lng[0:1, :], lnb[0:1, :])

        # ---- cross-attention over visual memory: fused KV, one output projection ----
        q = jnp.dot(_bf16(x), ca_wq_ref[li],
                    preferred_element_type=jnp.float32) + ca_bq_ref[li]       # (BB*S, H)
        kv = jnp.dot(_bf16(mem2), ca_wkv_ref[li],
                     preferred_element_type=jnp.float32) + ca_bkv_ref[li]     # (BB*NV, 2H)
        q3 = q.reshape(BB, S, H)
        k3 = kv[:, 0:H].reshape(BB, NV, H)
        v3 = kv[:, H:2 * H].reshape(BB, NV, H)
        ctx = attend(q3, k3, v3, None)
        ca = jnp.dot(_bf16(ctx), ca_wo_ref[li],
                     preferred_element_type=jnp.float32) + ca_bo_ref[li]
        x = _ln(x + ca, lng[1:2, :], lnb[1:2, :])

        # ---- FFN (ReLU — nn.TransformerDecoderLayer default) ----
        hmid = jnp.maximum(
            jnp.dot(_bf16(x), w1_ref[li], preferred_element_type=jnp.float32)
            + b1_ref[li], 0.0)
        ff = jnp.dot(_bf16(hmid), w2_ref[li],
                     preferred_element_type=jnp.float32) + b2_ref[li]
        x = _ln(x + ff, lng[2:3, :], lnb[2:3, :])

    # full-S, lane-dense outputs (aligned stores); wrapper slices [:, :S-1]
    logits = jnp.dot(_bf16(x), wd_ref[...], preferred_element_type=jnp.float32)
    logits_ref[...] = logits.reshape(BB, S, V)
    ft_ref[...] = _softmax_exact(x).reshape(BB, S, H)        # exact divide for F_t


# ---------------- BlockSpec helpers ----------------
def _full_spec(shape):
    nd = len(shape)
    return pl.BlockSpec(shape, lambda b, _nd=nd: (0,) * _nd)


def _batch_spec(shape_tail, bb):
    nd = len(shape_tail)
    return pl.BlockSpec((bb,) + shape_tail, lambda b, _nd=nd: (b,) + (0,) * _nd)


def _batch_block_size():
    # v7x has two TensorCores per chip: keep one batch element per grid step so
    # ("parallel",) splits them across cores.  Single-TC v5e/v6e: fold the whole
    # batch into one grid step (no serial grid loop, more MXU rows per pass).
    try:
        kind = jax.devices()[0].device_kind.lower()
    except Exception:
        kind = ""
    if "v7" in kind or "7x" in kind:
        return 1
    return B


# ---------------- wrapper ----------------
def sinusoidal_encoding(max_len, d_model):
    position = jnp.arange(max_len, dtype=jnp.float32)[:, None]
    div_term = jnp.exp(jnp.arange(0, d_model, 2, dtype=jnp.float32)
                       * (-math.log(10000.0) / d_model))
    pe = jnp.zeros((max_len, d_model), jnp.float32)
    pe = pe.at[:, 0::2].set(jnp.sin(position * div_term))
    pe = pe.at[:, 1::2].set(jnp.cos(position * div_term))
    return pe  # (max_len, d_model)


def text_decoder_forward(fv, target_embed, params, current_step=0, total_steps=1):
    # current_ratio = max(0.2, 1.0 - 0.8 * current_step / total_steps); at step 0 the
    # ratio is 1.0 -> always teacher forcing, so the reference's per-step loop equals
    # one full-sequence causal decode (implemented in the kernel).
    del current_step, total_steps

    pos = sinusoidal_encoding(S, H)             # (S, H)
    bb = _batch_block_size()
    grid = (B // bb,)

    in_specs = [
        _batch_spec((S, H), bb),                # target_embed
        _full_spec((S, H)),                     # positional encoding
        _batch_spec((NV, H), bb),               # fv / memory
        _full_spec((NLAYERS, H, 3 * H)),        # self-attn fused Wqkv
        _full_spec((NLAYERS, 1, 3 * H)),        # self-attn fused bqkv
        _full_spec((NLAYERS, H, H)),            # self-attn Wo
        _full_spec((NLAYERS, 1, H)),            # self-attn bo
        _full_spec((NLAYERS, H, H)),            # cross-attn Wq
        _full_spec((NLAYERS, 1, H)),            # cross-attn bq
        _full_spec((NLAYERS, H, 2 * H)),        # cross-attn fused Wkv
        _full_spec((NLAYERS, 1, 2 * H)),        # cross-attn fused bkv
        _full_spec((NLAYERS, H, H)),            # cross-attn Wo
        _full_spec((NLAYERS, 1, H)),            # cross-attn bo
        _full_spec((NLAYERS, H, FF)),           # FFN in W
        _full_spec((NLAYERS, 1, FF)),           # FFN in b
        _full_spec((NLAYERS, FF, H)),           # FFN out W
        _full_spec((NLAYERS, 1, H)),            # FFN out b
        _full_spec((NLAYERS, 3, H)),            # LayerNorm gammas
        _full_spec((NLAYERS, 3, H)),            # LayerNorm betas
        _full_spec((H, V)),                     # tied vocab projection
    ]

    logits_full, ft_full = pl.pallas_call(
        decoder_kernel,
        grid=grid,
        in_specs=in_specs,
        out_specs=(_batch_spec((S, V), bb), _batch_spec((S, H), bb)),
        out_shape=(jax.ShapeDtypeStruct((B, S, V), jnp.float32),
                   jax.ShapeDtypeStruct((B, S, H), jnp.float32)),
        compiler_params=pltpu.CompilerParams(dimension_semantics=("parallel",)),
    )(target_embed, pos, fv,
      params["sa_wqkv"], params["sa_bqkv"], params["sa_wo"], params["sa_bo"],
      params["ca_wq"], params["ca_bq"], params["ca_wkv"], params["ca_bkv"],
      params["ca_wo"], params["ca_bo"],
      params["w1"], params["b1"], params["w2"], params["b2"],
      params["lng"], params["lnb"], params["wd"])

    # teacher-forced steps t=1..S-1 read decoder positions 0..S-2
    logits = logits_full[:, :S - 1, :]
    f_t = ft_full[:, :S - 1, :]
    pred_tokens = jnp.argmax(logits, axis=-1)    # stand-in for decoded_texts
    return logits, f_t, pred_tokens


# ---------------- parameter initialization (deterministic, synthetic) ----------------
def init_params(key):
    def nrm(k, shape, scale=0.02):
        return (scale * jax.random.normal(k, shape)).astype(jnp.bfloat16)

    ks = jax.random.split(key, 8)
    word_emb = 0.02 * jax.random.normal(ks[0], (V, H))       # tied output_weight clone
    return {
        "wd": jnp.transpose(word_emb).astype(jnp.bfloat16),  # (H, V) fc_out (no bias)
        "sa_wqkv": nrm(ks[1], (NLAYERS, H, 3 * H)),
        "sa_bqkv": jnp.zeros((NLAYERS, 1, 3 * H), jnp.float32),
        "sa_wo": nrm(ks[2], (NLAYERS, H, H)),
        "sa_bo": jnp.zeros((NLAYERS, 1, H), jnp.float32),
        "ca_wq": nrm(ks[3], (NLAYERS, H, H)),
        "ca_bq": jnp.zeros((NLAYERS, 1, H), jnp.float32),
        "ca_wkv": nrm(ks[4], (NLAYERS, H, 2 * H)),
        "ca_bkv": jnp.zeros((NLAYERS, 1, 2 * H), jnp.float32),
        "ca_wo": nrm(ks[5], (NLAYERS, H, H)),
        "ca_bo": jnp.zeros((NLAYERS, 1, H), jnp.float32),
        "w1": nrm(ks[6], (NLAYERS, H, FF)),
        "b1": jnp.zeros((NLAYERS, 1, FF), jnp.float32),
        "w2": nrm(ks[7], (NLAYERS, FF, H)),
        "b2": jnp.zeros((NLAYERS, 1, H), jnp.float32),
        "lng": jnp.ones((NLAYERS, 3, H), jnp.float32),
        "lnb": jnp.zeros((NLAYERS, 3, H), jnp.float32),
    }


# ---------------- main ----------------
if __name__ == "__main__":
    key = jax.random.PRNGKey(0)
    k_param, k_fv, k_tgt = jax.random.split(key, 3)

    params = init_params(k_param)
    fv = jax.random.normal(k_fv, (B, NV, H), jnp.float32)            # visual features
    target_embed = jax.random.normal(k_tgt, (B, S, H), jnp.float32)  # already embeddings

    logits, F_t, pred_tokens = text_decoder_forward(
        fv, target_embed, params, current_step=0, total_steps=100)
    jax.block_until_ready((logits, F_t, pred_tokens))

    assert logits.shape == (B, S - 1, V)
    assert F_t.shape == (B, S - 1, H)
    assert pred_tokens.shape == (B, S - 1)
    print("KERNEL_OK")
</pallas_src>

<mosaic_0001>
module attributes {stable_mosaic.version = 11 : i64} {
  func.func @decoder_kernel(%arg0: i32, %arg1: memref<2x8x32xf32, #tpu.memory_space<vmem>>, %arg2: memref<8x32xf32, #tpu.memory_space<vmem>>, %arg3: memref<2x8x32xf32, #tpu.memory_space<vmem>>, %arg4: memref<2x32x96xbf16, #tpu.memory_space<vmem>>, %arg5: memref<2x1x96xf32, #tpu.memory_space<vmem>>, %arg6: memref<2x32x32xbf16, #tpu.memory_space<vmem>>, %arg7: memref<2x1x32xf32, #tpu.memory_space<vmem>>, %arg8: memref<2x32x32xbf16, #tpu.memory_space<vmem>>, %arg9: memref<2x1x32xf32, #tpu.memory_space<vmem>>, %arg10: memref<2x32x64xbf16, #tpu.memory_space<vmem>>, %arg11: memref<2x1x64xf32, #tpu.memory_space<vmem>>, %arg12: memref<2x32x32xbf16, #tpu.memory_space<vmem>>, %arg13: memref<2x1x32xf32, #tpu.memory_space<vmem>>, %arg14: memref<2x32x64xbf16, #tpu.memory_space<vmem>>, %arg15: memref<2x1x64xf32, #tpu.memory_space<vmem>>, %arg16: memref<2x64x32xbf16, #tpu.memory_space<vmem>>, %arg17: memref<2x1x32xf32, #tpu.memory_space<vmem>>, %arg18: memref<2x3x32xf32, #tpu.memory_space<vmem>>, %arg19: memref<2x3x32xf32, #tpu.memory_space<vmem>>, %arg20: memref<32x128xbf16, #tpu.memory_space<vmem>>, %arg21: memref<2x8x128xf32, #tpu.memory_space<vmem>>, %arg22: memref<2x8x32xf32, #tpu.memory_space<vmem>>) attributes {dimension_semantics = [#tpu.dimension_semantics<parallel>], iteration_bounds = array<i64: 1>, scalar_prefetch = 0 : i64, scratch_operands = 0 : i64, tpu.core_type = #tpu.core_type<tc>, window_params = [{transform_indices = @transform_0, window_bounds = array<i64: 2, 8, 32>}, {pipeline_mode = #tpu.pipeline_mode<synchronous>, transform_indices = @transform_1, window_bounds = array<i64: 8, 32>}, {transform_indices = @transform_2, window_bounds = array<i64: 2, 8, 32>}, {pipeline_mode = #tpu.pipeline_mode<synchronous>, transform_indices = @transform_3, window_bounds = array<i64: 2, 32, 96>}, {pipeline_mode = #tpu.pipeline_mode<synchronous>, transform_indices = @transform_4, window_bounds = array<i64: 2, 1, 96>}, {pipeline_mode = #tpu.pipeline_mode<synchronous>, transform_indices = @transform_5, window_bounds = array<i64: 2, 32, 32>}, {pipeline_mode = #tpu.pipeline_mode<synchronous>, transform_indices = @transform_6, window_bounds = array<i64: 2, 1, 32>}, {pipeline_mode = #tpu.pipeline_mode<synchronous>, transform_indices = @transform_7, window_bounds = array<i64: 2, 32, 32>}, {pipeline_mode = #tpu.pipeline_mode<synchronous>, transform_indices = @transform_8, window_bounds = array<i64: 2, 1, 32>}, {pipeline_mode = #tpu.pipeline_mode<synchronous>, transform_indices = @transform_9, window_bounds = array<i64: 2, 32, 64>}, {pipeline_mode = #tpu.pipeline_mode<synchronous>, transform_indices = @transform_10, window_bounds = array<i64: 2, 1, 64>}, {pipeline_mode = #tpu.pipeline_mode<synchronous>, transform_indices = @transform_11, window_bounds = array<i64: 2, 32, 32>}, {pipeline_mode = #tpu.pipeline_mode<synchronous>, transform_indices = @transform_12, window_bounds = array<i64: 2, 1, 32>}, {pipeline_mode = #tpu.pipeline_mode<synchronous>, transform_indices = @transform_13, window_bounds = array<i64: 2, 32, 64>}, {pipeline_mode = #tpu.pipeline_mode<synchronous>, transform_indices = @transform_14, window_bounds = array<i64: 2, 1, 64>}, {pipeline_mode = #tpu.pipeline_mode<synchronous>, transform_indices = @transform_15, window_bounds = array<i64: 2, 64, 32>}, {pipeline_mode = #tpu.pipeline_mode<synchronous>, transform_indices = @transform_16, window_bounds = array<i64: 2, 1, 32>}, {pipeline_mode = #tpu.pipeline_mode<synchronous>, transform_indices = @transform_17, window_bounds = array<i64: 2, 3, 32>}, {pipeline_mode = #tpu.pipeline_mode<synchronous>, transform_indices = @transform_18, window_bounds = array<i64: 2, 3, 32>}, {pipeline_mode = #tpu.pipeline_mode<synchronous>, transform_indices = @transform_19, window_bounds = array<i64: 32, 128>}, {transform_indices = @transform_20, window_bounds = array<i64: 2, 8, 128>}, {transform_indices = @transform_21, window_bounds = array<i64: 2, 8, 32>}]} {
    %c0 = arith.constant 0 : index
    %c0_0 = arith.constant 0 : index
    %c0_1 = arith.constant 0 : index
    %0 = vector.load %arg1[%c0, %c0_0, %c0_1] : memref<2x8x32xf32, #tpu.memory_space<vmem>>, vector<2x8x32xf32>
    %c0_2 = arith.constant 0 : index
    %c0_3 = arith.constant 0 : index
    %1 = vector.load %arg2[%c0_2, %c0_3] : memref<8x32xf32, #tpu.memory_space<vmem>>, vector<8x32xf32>
    %2 = vector.shape_cast %1 : vector<8x32xf32> to vector<1x8x32xf32>
    %3 = vector.broadcast %2 : vector<1x8x32xf32> to vector<2x8x32xf32>
    %4 = arith.addf %0, %3 : vector<2x8x32xf32>
    %5 = vector.shape_cast %4 : vector<2x8x32xf32> to vector<16x32xf32>
    %c0_4 = arith.constant 0 : index
    %c0_5 = arith.constant 0 : index
    %c0_6 = arith.constant 0 : index
    %6 = vector.load %arg3[%c0_4, %c0_5, %c0_6] : memref<2x8x32xf32, #tpu.memory_space<vmem>>, vector<2x8x32xf32>
    %7 = vector.shape_cast %6 : vector<2x8x32xf32> to vector<16x32xf32>
    %8 = tpu.iota {dimensions = array<i32: 0>} : vector<8x8xi32>
    %9 = tpu.iota {dimensions = array<i32: 1>} : vector<8x8xi32>
    %10 = arith.cmpi sle, %9, %8 : vector<8x8xi32>
    %cst = arith.constant 0.000000e+00 : f32
    %cst_7 = arith.constant -1.000000e+09 : f32
    %11 = vector.broadcast %cst : f32 to vector<8x8xf32>
    %12 = vector.broadcast %cst_7 : f32 to vector<8x8xf32>
    %13 = arith.select %10, %11, %12 : vector<8x8xi1>, vector<8x8xf32>
    %c0_8 = arith.constant 0 : index
    %c0_9 = arith.constant 0 : index
    %c0_10 = arith.constant 0 : index
    %14 = vector.load %arg18[%c0_8, %c0_9, %c0_10] : memref<2x3x32xf32, #tpu.memory_space<vmem>>, vector<1x3x32xf32>
    %15 = vector.shape_cast %14 : vector<1x3x32xf32> to vector<3x32xf32>
    %c0_11 = arith.constant 0 : index
    %c0_12 = arith.constant 0 : index
    %c0_13 = arith.constant 0 : index
    %16 = vector.load %arg19[%c0_11, %c0_12, %c0_13] : memref<2x3x32xf32, #tpu.memory_space<vmem>>, vector<1x3x32xf32>
    %17 = vector.shape_cast %16 : vector<1x3x32xf32> to vector<3x32xf32>
    %18 = arith.truncf %5 : vector<16x32xf32> to vector<16x32xbf16>
    %c0_14 = arith.constant 0 : index
    %c0_15 = arith.constant 0 : index
    %c0_16 = arith.constant 0 : index
    %19 = vector.load %arg4[%c0_14, %c0_15, %c0_16] : memref<2x32x96xbf16, #tpu.memory_space<vmem>>, vector<1x32x96xbf16>
    %20 = vector.shape_cast %19 : vector<1x32x96xbf16> to vector<32x96xbf16>
    %cst_17 = arith.constant dense<0.000000e+00> : vector<16x96xf32>
    %21 = tpu.matmul %18, %20, %cst_17 {dimension_numbers = #tpu.dot_dimension_numbers<[1], [0], [0], [1], [0, 0, 1, 1], [], []>} : vector<16x32xbf16>, vector<32x96xbf16>, vector<16x96xf32> -> vector<16x96xf32>
    %c0_18 = arith.constant 0 : index
    %c0_19 = arith.constant 0 : index
    %c0_20 = arith.constant 0 : index
    %22 = vector.load %arg5[%c0_18, %c0_19, %c0_20] : memref<2x1x96xf32, #tpu.memory_space<vmem>>, vector<1x1x96xf32>
    %23 = vector.shape_cast %22 : vector<1x1x96xf32> to vector<1x96xf32>
    %24 = vector.broadcast %23 : vector<1x96xf32> to vector<16x96xf32>
    %25 = arith.addf %21, %24 : vector<16x96xf32>
    %26 = vector.extract_strided_slice %25 {offsets = [0, 0], sizes = [16, 32], strides = [1, 1]} : vector<16x96xf32> to vector<16x32xf32>
    %27 = vector.shape_cast %26 : vector<16x32xf32> to vector<2x8x32xf32>
    %28 = vector.extract_strided_slice %25 {offsets = [0, 32], sizes = [16, 32], strides = [1, 1]} : vector<16x96xf32> to vector<16x32xf32>
    %29 = vector.shape_cast %28 : vector<16x32xf32> to vector<2x8x32xf32>
    %30 = vector.extract_strided_slice %25 {offsets = [0, 64], sizes = [16, 32], strides = [1, 1]} : vector<16x96xf32> to vector<16x32xf32>
    %31 = vector.shape_cast %30 : vector<16x32xf32> to vector<2x8x32xf32>
    %32 = vector.extract_strided_slice %27 {offsets = [0, 0, 0], sizes = [2, 8, 8], strides = [1, 1, 1]} : vector<2x8x32xf32> to vector<2x8x8xf32>
    %33 = arith.truncf %32 : vector<2x8x8xf32> to vector<2x8x8xbf16>
    %34 = vector.extract_strided_slice %29 {offsets = [0, 0, 0], sizes = [2, 8, 8], strides = [1, 1, 1]} : vector<2x8x32xf32> to vector<2x8x8xf32>
    %35 = arith.truncf %34 : vector<2x8x8xf32> to vector<2x8x8xbf16>
    "tpu.trace_start"() <{level = 10 : i32, message = "bqd,bkd->bqk"}> : () -> ()
    %cst_21 = arith.constant dense<0.000000e+00> : vector<2x8x8xf32>
    %36 = tpu.matmul %33, %35, %cst_21 {dimension_numbers = #tpu.dot_dimension_numbers<[2], [2], [1], [1], [0, 0, 0, 1, 1, 1], [0], [0]>} : vector<2x8x8xbf16>, vector<2x8x8xbf16>, vector<2x8x8xf32> -> vector<2x8x8xf32>
    "tpu.trace_stop"() : () -> ()
    %cst_22 = arith.constant 0.353553385 : f32
    %37 = vector.broadcast %cst_22 : f32 to vector<2x8x8xf32>
    %38 = arith.mulf %36, %37 : vector<2x8x8xf32>
    %39 = vector.shape_cast %13 : vector<8x8xf32> to vector<1x8x8xf32>
    %40 = vector.broadcast %39 : vector<1x8x8xf32> to vector<2x8x8xf32>
    %41 = arith.addf %38, %40 : vector<2x8x8xf32>
    %cst_23 = arith.constant dense<0xFF800000> : vector<2x8xf32>
    %42 = vector.multi_reduction <maximumf>, %41, %cst_23 [2] : vector<2x8x8xf32> to vector<2x8xf32>
    %43 = vector.shape_cast %42 : vector<2x8xf32> to vector<2x8x1xf32>
    %44 = vector.broadcast %43 : vector<2x8x1xf32> to vector<2x8x8xf32>
    %45 = arith.subf %41, %44 : vector<2x8x8xf32>
    %46 = math.exp %45 : vector<2x8x8xf32>
    %cst_24 = arith.constant dense<0.000000e+00> : vector<2x8xf32>
    %47 = vector.multi_reduction <add>, %46, %cst_24 [2] : vector<2x8x8xf32> to vector<2x8xf32>
    %48 = vector.shape_cast %47 : vector<2x8xf32> to vector<2x8x1xf32>
    %49 = tpu.reciprocal %48 {approx = true} : vector<2x8x1xf32> -> vector<2x8x1xf32>
    %50 = vector.broadcast %49 : vector<2x8x1xf32> to vector<2x8x8xf32>
    %51 = arith.mulf %46, %50 : vector<2x8x8xf32>
    %52 = arith.truncf %51 : vector<2x8x8xf32> to vector<2x8x8xbf16>
    %53 = vector.extract_strided_slice %31 {offsets = [0, 0, 0], sizes = [2, 8, 8], strides = [1, 1, 1]} : vector<2x8x32xf32> to vector<2x8x8xf32>
    %54 = arith.truncf %53 : vector<2x8x8xf32> to vector<2x8x8xbf16>
    "tpu.trace_start"() <{level = 10 : i32, message = "bqk,bkd->bqd"}> : () -> ()
    %cst_25 = arith.constant dense<0.000000e+00> : vector<2x8x8xf32>
    %55 = tpu.matmul %52, %54, %cst_25 {dimension_numbers = #tpu.dot_dimension_numbers<[2], [1], [1], [2], [0, 0, 0, 1, 1, 2], [0], [0]>} : vector<2x8x8xbf16>, vector<2x8x8xbf16>, vector<2x8x8xf32> -> vector<2x8x8xf32>
    "tpu.trace_stop"() : () -> ()
    %56 = vector.extract_strided_slice %27 {offsets = [0, 0, 8], sizes = [2, 8, 8], strides = [1, 1, 1]} : vector<2x8x32xf32> to vector<2x8x8xf32>
    %57 = arith.truncf %56 : vector<2x8x8xf32> to vector<2x8x8xbf16>
    %58 = vector.extract_strided_slice %29 {offsets = [0, 0, 8], sizes = [2, 8, 8], strides = [1, 1, 1]} : vector<2x8x32xf32> to vector<2x8x8xf32>
    %59 = arith.truncf %58 : vector<2x8x8xf32> to vector<2x8x8xbf16>
    "tpu.trace_start"() <{level = 10 : i32, message = "bqd,bkd->bqk"}> : () -> ()
    %cst_26 = arith.constant dense<0.000000e+00> : vector<2x8x8xf32>
    %60 = tpu.matmul %57, %59, %cst_26 {dimension_numbers = #tpu.dot_dimension_numbers<[2], [2], [1], [1], [0, 0, 0, 1, 1, 1], [0], [0]>} : vector<2x8x8xbf16>, vector<2x8x8xbf16>, vector<2x8x8xf32> -> vector<2x8x8xf32>
    "tpu.trace_stop"() : () -> ()
    %cst_27 = arith.constant 0.353553385 : f32
    %61 = vector.broadcast %cst_27 : f32 to vector<2x8x8xf32>
    %62 = arith.mulf %60, %61 : vector<2x8x8xf32>
    %63 = vector.shape_cast %13 : vector<8x8xf32> to vector<1x8x8xf32>
    %64 = vector.broadcast %63 : vector<1x8x8xf32> to vector<2x8x8xf32>
    %65 = arith.addf %62, %64 : vector<2x8x8xf32>
    %cst_28 = arith.constant dense<0xFF800000> : vector<2x8xf32>
    %66 = vector.multi_reduction <maximumf>, %65, %cst_28 [2] : vector<2x8x8xf32> to vector<2x8xf32>
    %67 = vector.shape_cast %66 : vector<2x8xf32> to vector<2x8x1xf32>
    %68 = vector.broadcast %67 : vector<2x8x1xf32> to vector<2x8x8xf32>
    %69 = arith.subf %65, %68 : vector<2x8x8xf32>
    %70 = math.exp %69 : vector<2x8x8xf32>
    %cst_29 = arith.constant dense<0.000000e+00> : vector<2x8xf32>
    %71 = vector.multi_reduction <add>, %70, %cst_29 [2] : vector<2x8x8xf32> to vector<2x8xf32>
    %72 = vector.shape_cast %71 : vector<2x8xf32> to vector<2x8x1xf32>
    %73 = tpu.reciprocal %72 {approx = true} : vector<2x8x1xf32> -> vector<2x8x1xf32>
    %74 = vector.broadcast %73 : vector<2x8x1xf32> to vector<2x8x8xf32>
    %75 = arith.mulf %70, %74 : vector<2x8x8xf32>
    %76 = arith.truncf %75 : vector<2x8x8xf32> to vector<2x8x8xbf16>
    %77 = vector.extract_strided_slice %31 {offsets = [0, 0, 8], sizes = [2, 8, 8], strides = [1, 1, 1]} : vector<2x8x32xf32> to vector<2x8x8xf32>
    %78 = arith.truncf %77 : vector<2x8x8xf32> to vector<2x8x8xbf16>
    "tpu.trace_start"() <{level = 10 : i32, message = "bqk,bkd->bqd"}> : () -> ()
    %cst_30 = arith.constant dense<0.000000e+00> : vector<2x8x8xf32>
    %79 = tpu.matmul %76, %78, %cst_30 {dimension_numbers = #tpu.dot_dimension_numbers<[2], [1], [1], [2], [0, 0, 0, 1, 1, 2], [0], [0]>} : vector<2x8x8xbf16>, vector<2x8x8xbf16>, vector<2x8x8xf32> -> vector<2x8x8xf32>
    "tpu.trace_stop"() : () -> ()
    %80 = vector.extract_strided_slice %27 {offsets = [0, 0, 16], sizes = [2, 8, 8], strides = [1, 1, 1]} : vector<2x8x32xf32> to vector<2x8x8xf32>
    %81 = arith.truncf %80 : vector<2x8x8xf32> to vector<2x8x8xbf16>
    %82 = vector.extract_strided_slice %29 {offsets = [0, 0, 16], sizes = [2, 8, 8], strides = [1, 1, 1]} : vector<2x8x32xf32> to vector<2x8x8xf32>
    %83 = arith.truncf %82 : vector<2x8x8xf32> to vector<2x8x8xbf16>
    "tpu.trace_start"() <{level = 10 : i32, message = "bqd,bkd->bqk"}> : () -> ()
    %cst_31 = arith.constant dense<0.000000e+00> : vector<2x8x8xf32>
    %84 = tpu.matmul %81, %83, %cst_31 {dimension_numbers = #tpu.dot_dimension_numbers<[2], [2], [1], [1], [0, 0, 0, 1, 1, 1], [0], [0]>} : vector<2x8x8xbf16>, vector<2x8x8xbf16>, vector<2x8x8xf32> -> vector<2x8x8xf32>
    "tpu.trace_stop"() : () -> ()
    %cst_32 = arith.constant 0.353553385 : f32
    %85 = vector.broadcast %cst_32 : f32 to vector<2x8x8xf32>
    %86 = arith.mulf %84, %85 : vector<2x8x8xf32>
    %87 = vector.shape_cast %13 : vector<8x8xf32> to vector<1x8x8xf32>
    %88 = vector.broadcast %87 : vector<1x8x8xf32> to vector<2x8x8xf32>
    %89 = arith.addf %86, %88 : vector<2x8x8xf32>
    %cst_33 = arith.constant dense<0xFF800000> : vector<2x8xf32>
    %90 = vector.multi_reduction <maximumf>, %89, %cst_33 [2] : vector<2x8x8xf32> to vector<2x8xf32>
    %91 = vector.shape_cast %90 : vector<2x8xf32> to vector<2x8x1xf32>
    %92 = vector.broadcast %91 : vector<2x8x1xf32> to vector<2x8x8xf32>
    %93 = arith.subf %89, %92 : vector<2x8x8xf32>
    %94 = math.exp %93 : vector<2x8x8xf32>
    %cst_34 = arith.constant dense<0.000000e+00> : vector<2x8xf32>
    %95 = vector.multi_reduction <add>, %94, %cst_34 [2] : vector<2x8x8xf32> to vector<2x8xf32>
    %96 = vector.shape_cast %95 : vector<2x8xf32> to vector<2x8x1xf32>
    %97 = tpu.reciprocal %96 {approx = true} : vector<2x8x1xf32> -> vector<2x8x1xf32>
    %98 = vector.broadcast %97 : vector<2x8x1xf32> to vector<2x8x8xf32>
    %99 = arith.mulf %94, %98 : vector<2x8x8xf32>
    %100 = arith.truncf %99 : vector<2x8x8xf32> to vector<2x8x8xbf16>
    %101 = vector.extract_strided_slice %31 {offsets = [0, 0, 16], sizes = [2, 8, 8], strides = [1, 1, 1]} : vector<2x8x32xf32> to vector<2x8x8xf32>
    %102 = arith.truncf %101 : vector<2x8x8xf32> to vector<2x8x8xbf16>
    "tpu.trace_start"() <{level = 10 : i32, message = "bqk,bkd->bqd"}> : () -> ()
    %cst_35 = arith.constant dense<0.000000e+00> : vector<2x8x8xf32>
    %103 = tpu.matmul %100, %102, %cst_35 {dimension_numbers = #tpu.dot_dimension_numbers<[2], [1], [1], [2], [0, 0, 0, 1, 1, 2], [0], [0]>} : vector<2x8x8xbf16>, vector<2x8x8xbf16>, vector<2x8x8xf32> -> vector<2x8x8xf32>
    "tpu.trace_stop"() : () -> ()
    %104 = vector.extract_strided_slice %27 {offsets = [0, 0, 24], sizes = [2, 8, 8], strides = [1, 1, 1]} : vector<2x8x32xf32> to vector<2x8x8xf32>
    %105 = arith.truncf %104 : vector<2x8x8xf32> to vector<2x8x8xbf16>
    %106 = vector.extract_strided_slice %29 {offsets = [0, 0, 24], sizes = [2, 8, 8], strides = [1, 1, 1]} : vector<2x8x32xf32> to vector<2x8x8xf32>
    %107 = arith.truncf %106 : vector<2x8x8xf32> to vector<2x8x8xbf16>
    "tpu.trace_start"() <{level = 10 : i32, message = "bqd,bkd->bqk"}> : () -> ()
    %cst_36 = arith.constant dense<0.000000e+00> : vector<2x8x8xf32>
    %108 = tpu.matmul %105, %107, %cst_36 {dimension_numbers = #tpu.dot_dimension_numbers<[2], [2], [1], [1], [0, 0, 0, 1, 1, 1], [0], [0]>} : vector<2x8x8xbf16>, vector<2x8x8xbf16>, vector<2x8x8xf32> -> vector<2x8x8xf32>
    "tpu.trace_stop"() : () -> ()
    %cst_37 = arith.constant 0.353553385 : f32
    %109 = vector.broadcast %cst_37 : f32 to vector<2x8x8xf32>
    %110 = arith.mulf %108, %109 : vector<2x8x8xf32>
    %111 = vector.shape_cast %13 : vector<8x8xf32> to vector<1x8x8xf32>
    %112 = vector.broadcast %111 : vector<1x8x8xf32> to vector<2x8x8xf32>
    %113 = arith.addf %110, %112 : vector<2x8x8xf32>
    %cst_38 = arith.constant dense<0xFF800000> : vector<2x8xf32>
    %114 = vector.multi_reduction <maximumf>, %113, %cst_38 [2] : vector<2x8x8xf32> to vector<2x8xf32>
    %115 = vector.shape_cast %114 : vector<2x8xf32> to vector<2x8x1xf32>
    %116 = vector.broadcast %115 : vector<2x8x1xf32> to vector<2x8x8xf32>
    %117 = arith.subf %113, %116 : vector<2x8x8xf32>
    %118 = math.exp %117 : vector<2x8x8xf32>
    %cst_39 = arith.constant dense<0.000000e+00> : vector<2x8xf32>
    %119 = vector.multi_reduction <add>, %118, %cst_39 [2] : vector<2x8x8xf32> to vector<2x8xf32>
    %120 = vector.shape_cast %119 : vector<2x8xf32> to vector<2x8x1xf32>
    %121 = tpu.reciprocal %120 {approx = true} : vector<2x8x1xf32> -> vector<2x8x1xf32>
    %122 = vector.broadcast %121 : vector<2x8x1xf32> to vector<2x8x8xf32>
    %123 = arith.mulf %118, %122 : vector<2x8x8xf32>
    %124 = arith.truncf %123 : vector<2x8x8xf32> to vector<2x8x8xbf16>
    %125 = vector.extract_strided_slice %31 {offsets = [0, 0, 24], sizes = [2, 8, 8], strides = [1, 1, 1]} : vector<2x8x32xf32> to vector<2x8x8xf32>
    %126 = arith.truncf %125 : vector<2x8x8xf32> to vector<2x8x8xbf16>
    "tpu.trace_start"() <{level = 10 : i32, message = "bqk,bkd->bqd"}> : () -> ()
    %cst_40 = arith.constant dense<0.000000e+00> : vector<2x8x8xf32>
    %127 = tpu.matmul %124, %126, %cst_40 {dimension_numbers = #tpu.dot_dimension_numbers<[2], [1], [1], [2], [0, 0, 0, 1, 1, 2], [0], [0]>} : vector<2x8x8xbf16>, vector<2x8x8xbf16>, vector<2x8x8xf32> -> vector<2x8x8xf32>
    "tpu.trace_stop"() : () -> ()
    %128 = tpu.concatenate %55, %79, %103, %127 in 2 : vector<2x8x8xf32>, vector<2x8x8xf32>, vector<2x8x8xf32>, vector<2x8x8xf32> -> vector<2x8x32xf32>
    %129 = vector.shape_cast %128 : vector<2x8x32xf32> to vector<16x32xf32>
    %130 = arith.truncf %129 : vector<16x32xf32> to vector<16x32xbf16>
    %c0_41 = arith.constant 0 : index
    %c0_42 = arith.constant 0 : index
    %c0_43 = arith.constant 0 : index
    %131 = vector.load %arg6[%c0_41, %c0_42, %c0_43] : memref<2x32x32xbf16, #tpu.memory_space<vmem>>, vector<1x32x32xbf16>
    %132 = vector.shape_cast %131 : vector<1x32x32xbf16> to vector<32x32xbf16>
    %cst_44 = arith.constant dense<0.000000e+00> : vector<16x32xf32>
    %133 = tpu.matmul %130, %132, %cst_44 {dimension_numbers = #tpu.dot_dimension_numbers<[1], [0], [0], [1], [0, 0, 1, 1], [], []>} : vector<16x32xbf16>, vector<32x32xbf16>, vector<16x32xf32> -> vector<16x32xf32>
    %c0_45 = arith.constant 0 : index
    %c0_46 = arith.constant 0 : index
    %c0_47 = arith.constant 0 : index
    %134 = vector.load %arg7[%c0_45, %c0_46, %c0_47] : memref<2x1x32xf32, #tpu.memory_space<vmem>>, vector<1x1x32xf32>
    %135 = vector.shape_cast %134 : vector<1x1x32xf32> to vector<1x32xf32>
    %136 = vector.broadcast %135 : vector<1x32xf32> to vector<16x32xf32>
    %137 = arith.addf %133, %136 : vector<16x32xf32>
    %138 = arith.addf %5, %137 : vector<16x32xf32>
    %139 = vector.extract_strided_slice %15 {offsets = [0, 0], sizes = [1, 32], strides = [1, 1]} : vector<3x32xf32> to vector<1x32xf32>
    %140 = vector.extract_strided_slice %17 {offsets = [0, 0], sizes = [1, 32], strides = [1, 1]} : vector<3x32xf32> to vector<1x32xf32>
    %cst_48 = arith.constant dense<0.000000e+00> : vector<16xf32>
    %141 = vector.multi_reduction <add>, %138, %cst_48 [1] : vector<16x32xf32> to vector<16xf32>
    %142 = vector.shape_cast %141 : vector<16xf32> to vector<16x1xf32>
    %cst_49 = arith.constant 3.200000e+01 : f32
    %143 = vector.broadcast %cst_49 : f32 to vector<16x1xf32>
    %144 = arith.divf %142, %143 : vector<16x1xf32>
    %145 = vector.broadcast %144 : vector<16x1xf32> to vector<16x32xf32>
    %146 = arith.subf %138, %145 : vector<16x32xf32>
    %147 = arith.mulf %146, %146 : vector<16x32xf32>
    %cst_50 = arith.constant dense<0.000000e+00> : vector<16xf32>
    %148 = vector.multi_reduction <add>, %147, %cst_50 [1] : vector<16x32xf32> to vector<16xf32>
    %149 = vector.shape_cast %148 : vector<16xf32> to vector<16x1xf32>
    %cst_51 = arith.constant 3.200000e+01 : f32
    %150 = vector.broadcast %cst_51 : f32 to vector<16x1xf32>
    %151 = arith.divf %149, %150 : vector<16x1xf32>
    %152 = vector.broadcast %144 : vector<16x1xf32> to vector<16x32xf32>
    %153 = arith.subf %138, %152 : vector<16x32xf32>
    %cst_52 = arith.constant 9.99999974E-6 : f32
    %154 = vector.broadcast %cst_52 : f32 to vector<16x1xf32>
    %155 = arith.addf %151, %154 : vector<16x1xf32>
    %156 = math.rsqrt %155 : vector<16x1xf32>
    %157 = vector.broadcast %156 : vector<16x1xf32> to vector<16x32xf32>
    %158 = arith.mulf %153, %157 : vector<16x32xf32>
    %159 = vector.broadcast %139 : vector<1x32xf32> to vector<16x32xf32>
    %160 = arith.mulf %158, %159 : vector<16x32xf32>
    %161 = vector.broadcast %140 : vector<1x32xf32> to vector<16x32xf32>
    %162 = arith.addf %160, %161 : vector<16x32xf32>
    %163 = arith.truncf %162 : vector<16x32xf32> to vector<16x32xbf16>
    %c0_53 = arith.constant 0 : index
    %c0_54 = arith.constant 0 : index
    %c0_55 = arith.constant 0 : index
    %164 = vector.load %arg8[%c0_53, %c0_54, %c0_55] : memref<2x32x32xbf16, #tpu.memory_space<vmem>>, vector<1x32x32xbf16>
    %165 = vector.shape_cast %164 : vector<1x32x32xbf16> to vector<32x32xbf16>
    %cst_56 = arith.constant dense<0.000000e+00> : vector<16x32xf32>
    %166 = tpu.matmul %163, %165, %cst_56 {dimension_numbers = #tpu.dot_dimension_numbers<[1], [0], [0], [1], [0, 0, 1, 1], [], []>} : vector<16x32xbf16>, vector<32x32xbf16>, vector<16x32xf32> -> vector<16x32xf32>
    %c0_57 = arith.constant 0 : index
    %c0_58 = arith.constant 0 : index
    %c0_59 = arith.constant 0 : index
    %167 = vector.load %arg9[%c0_57, %c0_58, %c0_59] : memref<2x1x32xf32, #tpu.memory_space<vmem>>, vector<1x1x32xf32>
    %168 = vector.shape_cast %167 : vector<1x1x32xf32> to vector<1x32xf32>
    %169 = vector.broadcast %168 : vector<1x32xf32> to vector<16x32xf32>
    %170 = arith.addf %166, %169 : vector<16x32xf32>
    %171 = arith.truncf %7 : vector<16x32xf32> to vector<16x32xbf16>
    %c0_60 = arith.constant 0 : index
    %c0_61 = arith.constant 0 : index
    %c0_62 = arith.constant 0 : index
    %172 = vector.load %arg10[%c0_60, %c0_61, %c0_62] : memref<2x32x64xbf16, #tpu.memory_space<vmem>>, vector<1x32x64xbf16>
    %173 = vector.shape_cast %172 : vector<1x32x64xbf16> to vector<32x64xbf16>
    %cst_63 = arith.constant dense<0.000000e+00> : vector<16x64xf32>
    %174 = tpu.matmul %171, %173, %cst_63 {dimension_numbers = #tpu.dot_dimension_numbers<[1], [0], [0], [1], [0, 0, 1, 1], [], []>} : vector<16x32xbf16>, vector<32x64xbf16>, vector<16x64xf32> -> vector<16x64xf32>
    %c0_64 = arith.constant 0 : index
    %c0_65 = arith.constant 0 : index
    %c0_66 = arith.constant 0 : index
    %175 = vector.load %arg11[%c0_64, %c0_65, %c0_66] : memref<2x1x64xf32, #tpu.memory_space<vmem>>, vector<1x1x64xf32>
    %176 = vector.shape_cast %175 : vector<1x1x64xf32> to vector<1x64xf32>
    %177 = vector.broadcast %176 : vector<1x64xf32> to vector<16x64xf32>
    %178 = arith.addf %174, %177 : vector<16x64xf32>
    %179 = vector.shape_cast %170 : vector<16x32xf32> to vector<2x8x32xf32>
    %180 = vector.extract_strided_slice %178 {offsets = [0, 0], sizes = [16, 32], strides = [1, 1]} : vector<16x64xf32> to vector<16x32xf32>
    %181 = vector.shape_cast %180 : vector<16x32xf32> to vector<2x8x32xf32>
    %182 = vector.extract_strided_slice %178 {offsets = [0, 32], sizes = [16, 32], strides = [1, 1]} : vector<16x64xf32> to vector<16x32xf32>
    %183 = vector.shape_cast %182 : vector<16x32xf32> to vector<2x8x32xf32>
    %184 = vector.extract_strided_slice %179 {offsets = [0, 0, 0], sizes = [2, 8, 8], strides = [1, 1, 1]} : vector<2x8x32xf32> to vector<2x8x8xf32>
    %185 = arith.truncf %184 : vector<2x8x8xf32> to vector<2x8x8xbf16>
    %186 = vector.extract_strided_slice %181 {offsets = [0, 0, 0], sizes = [2, 8, 8], strides = [1, 1, 1]} : vector<2x8x32xf32> to vector<2x8x8xf32>
    %187 = arith.truncf %186 : vector<2x8x8xf32> to vector<2x8x8xbf16>
    "tpu.trace_start"() <{level = 10 : i32, message = "bqd,bkd->bqk"}> : () -> ()
    %cst_67 = arith.constant dense<0.000000e+00> : vector<2x8x8xf32>
    %188 = tpu.matmul %185, %187, %cst_67 {dimension_numbers = #tpu.dot_dimension_numbers<[2], [2], [1], [1], [0, 0, 0, 1, 1, 1], [0], [0]>} : vector<2x8x8xbf16>, vector<2x8x8xbf16>, vector<2x8x8xf32> -> vector<2x8x8xf32>
    "tpu.trace_stop"() : () -> ()
    %cst_68 = arith.constant 0.353553385 : f32
    %189 = vector.broadcast %cst_68 : f32 to vector<2x8x8xf32>
    %190 = arith.mulf %188, %189 : vector<2x8x8xf32>
    %cst_69 = arith.constant dense<0xFF800000> : vector<2x8xf32>
    %191 = vector.multi_reduction <maximumf>, %190, %cst_69 [2] : vector<2x8x8xf32> to vector<2x8xf32>
    %192 = vector.shape_cast %191 : vector<2x8xf32> to vector<2x8x1xf32>
    %193 = vector.broadcast %192 : vector<2x8x1xf32> to vector<2x8x8xf32>
    %194 = arith.subf %190, %193 : vector<2x8x8xf32>
    %195 = math.exp %194 : vector<2x8x8xf32>
    %cst_70 = arith.constant dense<0.000000e+00> : vector<2x8xf32>
    %196 = vector.multi_reduction <add>, %195, %cst_70 [2] : vector<2x8x8xf32> to vector<2x8xf32>
    %197 = vector.shape_cast %196 : vector<2x8xf32> to vector<2x8x1xf32>
    %198 = tpu.reciprocal %197 {approx = true} : vector<2x8x1xf32> -> vector<2x8x1xf32>
    %199 = vector.broadcast %198 : vector<2x8x1xf32> to vector<2x8x8xf32>
    %200 = arith.mulf %195, %199 : vector<2x8x8xf32>
    %201 = arith.truncf %200 : vector<2x8x8xf32> to vector<2x8x8xbf16>
    %202 = vector.extract_strided_slice %183 {offsets = [0, 0, 0], sizes = [2, 8, 8], strides = [1, 1, 1]} : vector<2x8x32xf32> to vector<2x8x8xf32>
    %203 = arith.truncf %202 : vector<2x8x8xf32> to vector<2x8x8xbf16>
    "tpu.trace_start"() <{level = 10 : i32, message = "bqk,bkd->bqd"}> : () -> ()
    %cst_71 = arith.constant dense<0.000000e+00> : vector<2x8x8xf32>
    %204 = tpu.matmul %201, %203, %cst_71 {dimension_numbers = #tpu.dot_dimension_numbers<[2], [1], [1], [2], [0, 0, 0, 1, 1, 2], [0], [0]>} : vector<2x8x8xbf16>, vector<2x8x8xbf16>, vector<2x8x8xf32> -> vector<2x8x8xf32>
    "tpu.trace_stop"() : () -> ()
    %205 = vector.extract_strided_slice %179 {offsets = [0, 0, 8], sizes = [2, 8, 8], strides = [1, 1, 1]} : vector<2x8x32xf32> to vector<2x8x8xf32>
    %206 = arith.truncf %205 : vector<2x8x8xf32> to vector<2x8x8xbf16>
    %207 = vector.extract_strided_slice %181 {offsets = [0, 0, 8], sizes = [2, 8, 8], strides = [1, 1, 1]} : vector<2x8x32xf32> to vector<2x8x8xf32>
    %208 = arith.truncf %207 : vector<2x8x8xf32> to vector<2x8x8xbf16>
    "tpu.trace_start"() <{level = 10 : i32, message = "bqd,bkd->bqk"}> : () -> ()
    %cst_72 = arith.constant dense<0.000000e+00> : vector<2x8x8xf32>
    %209 = tpu.matmul %206, %208, %cst_72 {dimension_numbers = #tpu.dot_dimension_numbers<[2], [2], [1], [1], [0, 0, 0, 1, 1, 1], [0], [0]>} : vector<2x8x8xbf16>, vector<2x8x8xbf16>, vector<2x8x8xf32> -> vector<2x8x8xf32>
    "tpu.trace_stop"() : () -> ()
    %cst_73 = arith.constant 0.353553385 : f32
    %210 = vector.broadcast %cst_73 : f32 to vector<2x8x8xf32>
    %211 = arith.mulf %209, %210 : vector<2x8x8xf32>
    %cst_74 = arith.constant dense<0xFF800000> : vector<2x8xf32>
    %212 = vector.multi_reduction <maximumf>, %211, %cst_74 [2] : vector<2x8x8xf32> to vector<2x8xf32>
    %213 = vector.shape_cast %212 : vector<2x8xf32> to vector<2x8x1xf32>
    %214 = vector.broadcast %213 : vector<2x8x1xf32> to vector<2x8x8xf32>
    %215 = arith.subf %211, %214 : vector<2x8x8xf32>
    %216 = math.exp %215 : vector<2x8x8xf32>
    %cst_75 = arith.constant dense<0.000000e+00> : vector<2x8xf32>
    %217 = vector.multi_reduction <add>, %216, %cst_75 [2] : vector<2x8x8xf32> to vector<2x8xf32>
    %218 = vector.shape_cast %217 : vector<2x8xf32> to vector<2x8x1xf32>
    %219 = tpu.reciprocal %218 {approx = true} : vector<2x8x1xf32> -> vector<2x8x1xf32>
    %220 = vector.broadcast %219 : vector<2x8x1xf32> to vector<2x8x8xf32>
    %221 = arith.mulf %216, %220 : vector<2x8x8xf32>
    %222 = arith.truncf %221 : vector<2x8x8xf32> to vector<2x8x8xbf16>
    %223 = vector.extract_strided_slice %183 {offsets = [0, 0, 8], sizes = [2, 8, 8], strides = [1, 1, 1]} : vector<2x8x32xf32> to vector<2x8x8xf32>
    %224 = arith.truncf %223 : vector<2x8x8xf32> to vector<2x8x8xbf16>
    "tpu.trace_start"() <{level = 10 : i32, message = "bqk,bkd->bqd"}> : () -> ()
    %cst_76 = arith.constant dense<0.000000e+00> : vector<2x8x8xf32>
    %225 = tpu.matmul %222, %224, %cst_76 {dimension_numbers = #tpu.dot_dimension_numbers<[2], [1], [1], [2], [0, 0, 0, 1, 1, 2], [0], [0]>} : vector<2x8x8xbf16>, vector<2x8x8xbf16>, vector<2x8x8xf32> -> vector<2x8x8xf32>
    "tpu.trace_stop"() : () -> ()
    %226 = vector.extract_strided_slice %179 {offsets = [0, 0, 16], sizes = [2, 8, 8], strides = [1, 1, 1]} : vector<2x8x32xf32> to vector<2x8x8xf32>
    %227 = arith.truncf %226 : vector<2x8x8xf32> to vector<2x8x8xbf16>
    %228 = vector.extract_strided_slice %181 {offsets = [0, 0, 16], sizes = [2, 8, 8], strides = [1, 1, 1]} : vector<2x8x32xf32> to vector<2x8x8xf32>
    %229 = arith.truncf %228 : vector<2x8x8xf32> to vector<2x8x8xbf16>
    "tpu.trace_start"() <{level = 10 : i32, message = "bqd,bkd->bqk"}> : () -> ()
    %cst_77 = arith.constant dense<0.000000e+00> : vector<2x8x8xf32>
    %230 = tpu.matmul %227, %229, %cst_77 {dimension_numbers = #tpu.dot_dimension_numbers<[2], [2], [1], [1], [0, 0, 0, 1, 1, 1], [0], [0]>} : vector<2x8x8xbf16>, vector<2x8x8xbf16>, vector<2x8x8xf32> -> vector<2x8x8xf32>
    "tpu.trace_stop"() : () -> ()
    %cst_78 = arith.constant 0.353553385 : f32
    %231 = vector.broadcast %cst_78 : f32 to vector<2x8x8xf32>
    %232 = arith.mulf %230, %231 : vector<2x8x8xf32>
    %cst_79 = arith.constant dense<0xFF800000> : vector<2x8xf32>
    %233 = vector.multi_reduction <maximumf>, %232, %cst_79 [2] : vector<2x8x8xf32> to vector<2x8xf32>
    %234 = vector.shape_cast %233 : vector<2x8xf32> to vector<2x8x1xf32>
    %235 = vector.broadcast %234 : vector<2x8x1xf32> to vector<2x8x8xf32>
    %236 = arith.subf %232, %235 : vector<2x8x8xf32>
    %237 = math.exp %236 : vector<2x8x8xf32>
    %cst_80 = arith.constant dense<0.000000e+00> : vector<2x8xf32>
    %238 = vector.multi_reduction <add>, %237, %cst_80 [2] : vector<2x8x8xf32> to vector<2x8xf32>
    %239 = vector.shape_cast %238 : vector<2x8xf32> to vector<2x8x1xf32>
    %240 = tpu.reciprocal %239 {approx = true} : vector<2x8x1xf32> -> vector<2x8x1xf32>
    %241 = vector.broadcast %240 : vector<2x8x1xf32> to vector<2x8x8xf32>
    %242 = arith.mulf %237, %241 : vector<2x8x8xf32>
    %243 = arith.truncf %242 : vector<2x8x8xf32> to vector<2x8x8xbf16>
    %244 = vector.extract_strided_slice %183 {offsets = [0, 0, 16], sizes = [2, 8, 8], strides = [1, 1, 1]} : vector<2x8x32xf32> to vector<2x8x8xf32>
    %245 = arith.truncf %244 : vector<2x8x8xf32> to vector<2x8x8xbf16>
    "tpu.trace_start"() <{level = 10 : i32, message = "bqk,bkd->bqd"}> : () -> ()
    %cst_81 = arith.constant dense<0.000000e+00> : vector<2x8x8xf32>
    %246 = tpu.matmul %243, %245, %cst_81 {dimension_numbers = #tpu.dot_dimension_numbers<[2], [1], [1], [2], [0, 0, 0, 1, 1, 2], [0], [0]>} : vector<2x8x8xbf16>, vector<2x8x8xbf16>, vector<2x8x8xf32> -> vector<2x8x8xf32>
    "tpu.trace_stop"() : () -> ()
    %247 = vector.extract_strided_slice %179 {offsets = [0, 0, 24], sizes = [2, 8, 8], strides = [1, 1, 1]} : vector<2x8x32xf32> to vector<2x8x8xf32>
    %248 = arith.truncf %247 : vector<2x8x8xf32> to vector<2x8x8xbf16>
    %249 = vector.extract_strided_slice %181 {offsets = [0, 0, 24], sizes = [2, 8, 8], strides = [1, 1, 1]} : vector<2x8x32xf32> to vector<2x8x8xf32>
    %250 = arith.truncf %249 : vector<2x8x8xf32> to vector<2x8x8xbf16>
    "tpu.trace_start"() <{level = 10 : i32, message = "bqd,bkd->bqk"}> : () -> ()
    %cst_82 = arith.constant dense<0.000000e+00> : vector<2x8x8xf32>
    %251 = tpu.matmul %248, %250, %cst_82 {dimension_numbers = #tpu.dot_dimension_numbers<[2], [2], [1], [1], [0, 0, 0, 1, 1, 1], [0], [0]>} : vector<2x8x8xbf16>, vector<2x8x8xbf16>, vector<2x8x8xf32> -> vector<2x8x8xf32>
    "tpu.trace_stop"() : () -> ()
    %cst_83 = arith.constant 0.353553385 : f32
    %252 = vector.broadcast %cst_83 : f32 to vector<2x8x8xf32>
    %253 = arith.mulf %251, %252 : vector<2x8x8xf32>
    %cst_84 = arith.constant dense<0xFF800000> : vector<2x8xf32>
    %254 = vector.multi_reduction <maximumf>, %253, %cst_84 [2] : vector<2x8x8xf32> to vector<2x8xf32>
    %255 = vector.shape_cast %254 : vector<2x8xf32> to vector<2x8x1xf32>
    %256 = vector.broadcast %255 : vector<2x8x1xf32> to vector<2x8x8xf32>
    %257 = arith.subf %253, %256 : vector<2x8x8xf32>
    %258 = math.exp %257 : vector<2x8x8xf32>
    %cst_85 = arith.constant dense<0.000000e+00> : vector<2x8xf32>
    %259 = vector.multi_reduction <add>, %258, %cst_85 [2] : vector<2x8x8xf32> to vector<2x8xf32>
    %260 = vector.shape_cast %259 : vector<2x8xf32> to vector<2x8x1xf32>
    %261 = tpu.reciprocal %260 {approx = true} : vector<2x8x1xf32> -> vector<2x8x1xf32>
    %262 = vector.broadcast %261 : vector<2x8x1xf32> to vector<2x8x8xf32>
    %263 = arith.mulf %258, %262 : vector<2x8x8xf32>
    %264 = arith.truncf %263 : vector<2x8x8xf32> to vector<2x8x8xbf16>
    %265 = vector.extract_strided_slice %183 {offsets = [0, 0, 24], sizes = [2, 8, 8], strides = [1, 1, 1]} : vector<2x8x32xf32> to vector<2x8x8xf32>
    %266 = arith.truncf %265 : vector<2x8x8xf32> to vector<2x8x8xbf16>
    "tpu.trace_start"() <{level = 10 : i32, message = "bqk,bkd->bqd"}> : () -> ()
    %cst_86 = arith.constant dense<0.000000e+00> : vector<2x8x8xf32>
    %267 = tpu.matmul %264, %266, %cst_86 {dimension_numbers = #tpu.dot_dimension_numbers<[2], [1], [1], [2], [0, 0, 0, 1, 1, 2], [0], [0]>} : vector<2x8x8xbf16>, vector<2x8x8xbf16>, vector<2x8x8xf32> -> vector<2x8x8xf32>
    "tpu.trace_stop"() : () -> ()
    %268 = tpu.concatenate %204, %225, %246, %267 in 2 : vector<2x8x8xf32>, vector<2x8x8xf32>, vector<2x8x8xf32>, vector<2x8x8xf32> -> vector<2x8x32xf32>
    %269 = vector.shape_cast %268 : vector<2x8x32xf32> to vector<16x32xf32>
    %270 = arith.truncf %269 : vector<16x32xf32> to vector<16x32xbf16>
    %c0_87 = arith.constant 0 : index
    %c0_88 = arith.constant 0 : index
    %c0_89 = arith.constant 0 : index
    %271 = vector.load %arg12[%c0_87, %c0_88, %c0_89] : memref<2x32x32xbf16, #tpu.memory_space<vmem>>, vector<1x32x32xbf16>
    %272 = vector.shape_cast %271 : vector<1x32x32xbf16> to vector<32x32xbf16>
    %cst_90 = arith.constant dense<0.000000e+00> : vector<16x32xf32>
    %273 = tpu.matmul %270, %272, %cst_90 {dimension_numbers = #tpu.dot_dimension_numbers<[1], [0], [0], [1], [0, 0, 1, 1], [], []>} : vector<16x32xbf16>, vector<32x32xbf16>, vector<16x32xf32> -> vector<16x32xf32>
    %c0_91 = arith.constant 0 : index
    %c0_92 = arith.constant 0 : index
    %c0_93 = arith.constant 0 : index
    %274 = vector.load %arg13[%c0_91, %c0_92, %c0_93] : memref<2x1x32xf32, #tpu.memory_space<vmem>>, vector<1x1x32xf32>
    %275 = vector.shape_cast %274 : vector<1x1x32xf32> to vector<1x32xf32>
    %276 = vector.broadcast %275 : vector<1x32xf32> to vector<16x32xf32>
    %277 = arith.addf %273, %276 : vector<16x32xf32>
    %278 = arith.addf %162, %277 : vector<16x32xf32>
    %279 = vector.extract_strided_slice %15 {offsets = [1, 0], sizes = [1, 32], strides = [1, 1]} : vector<3x32xf32> to vector<1x32xf32>
    %280 = vector.extract_strided_slice %17 {offsets = [1, 0], sizes = [1, 32], strides = [1, 1]} : vector<3x32xf32> to vector<1x32xf32>
    %cst_94 = arith.constant dense<0.000000e+00> : vector<16xf32>
    %281 = vector.multi_reduction <add>, %278, %cst_94 [1] : vector<16x32xf32> to vector<16xf32>
    %282 = vector.shape_cast %281 : vector<16xf32> to vector<16x1xf32>
    %cst_95 = arith.constant 3.200000e+01 : f32
    %283 = vector.broadcast %cst_95 : f32 to vector<16x1xf32>
    %284 = arith.divf %282, %283 : vector<16x1xf32>
    %285 = vector.broadcast %284 : vector<16x1xf32> to vector<16x32xf32>
    %286 = arith.subf %278, %285 : vector<16x32xf32>
    %287 = arith.mulf %286, %286 : vector<16x32xf32>
    %cst_96 = arith.constant dense<0.000000e+00> : vector<16xf32>
    %288 = vector.multi_reduction <add>, %287, %cst_96 [1] : vector<16x32xf32> to vector<16xf32>
    %289 = vector.shape_cast %288 : vector<16xf32> to vector<16x1xf32>
    %cst_97 = arith.constant 3.200000e+01 : f32
    %290 = vector.broadcast %cst_97 : f32 to vector<16x1xf32>
    %291 = arith.divf %289, %290 : vector<16x1xf32>
    %292 = vector.broadcast %284 : vector<16x1xf32> to vector<16x32xf32>
    %293 = arith.subf %278, %292 : vector<16x32xf32>
    %cst_98 = arith.constant 9.99999974E-6 : f32
    %294 = vector.broadcast %cst_98 : f32 to vector<16x1xf32>
    %295 = arith.addf %291, %294 : vector<16x1xf32>
    %296 = math.rsqrt %295 : vector<16x1xf32>
    %297 = vector.broadcast %296 : vector<16x1xf32> to vector<16x32xf32>
    %298 = arith.mulf %293, %297 : vector<16x32xf32>
    %299 = vector.broadcast %279 : vector<1x32xf32> to vector<16x32xf32>
    %300 = arith.mulf %298, %299 : vector<16x32xf32>
    %301 = vector.broadcast %280 : vector<1x32xf32> to vector<16x32xf32>
    %302 = arith.addf %300, %301 : vector<16x32xf32>
    %303 = arith.truncf %302 : vector<16x32xf32> to vector<16x32xbf16>
    %c0_99 = arith.constant 0 : index
    %c0_100 = arith.constant 0 : index
    %c0_101 = arith.constant 0 : index
    %304 = vector.load %arg14[%c0_99, %c0_100, %c0_101] : memref<2x32x64xbf16, #tpu.memory_space<vmem>>, vector<1x32x64xbf16>
    %305 = vector.shape_cast %304 : vector<1x32x64xbf16> to vector<32x64xbf16>
    %cst_102 = arith.constant dense<0.000000e+00> : vector<16x64xf32>
    %306 = tpu.matmul %303, %305, %cst_102 {dimension_numbers = #tpu.dot_dimension_numbers<[1], [0], [0], [1], [0, 0, 1, 1], [], []>} : vector<16x32xbf16>, vector<32x64xbf16>, vector<16x64xf32> -> vector<16x64xf32>
    %c0_103 = arith.constant 0 : index
    %c0_104 = arith.constant 0 : index
    %c0_105 = arith.constant 0 : index
    %307 = vector.load %arg15[%c0_103, %c0_104, %c0_105] : memref<2x1x64xf32, #tpu.memory_space<vmem>>, vector<1x1x64xf32>
    %308 = vector.shape_cast %307 : vector<1x1x64xf32> to vector<1x64xf32>
    %309 = vector.broadcast %308 : vector<1x64xf32> to vector<16x64xf32>
    %310 = arith.addf %306, %309 : vector<16x64xf32>
    %cst_106 = arith.constant 0.000000e+00 : f32
    %311 = vector.broadcast %cst_106 : f32 to vector<16x64xf32>
    %312 = arith.maximumf %310, %311 : vector<16x64xf32>
    %313 = arith.truncf %312 : vector<16x64xf32> to vector<16x64xbf16>
    %c0_107 = arith.constant 0 : index
    %c0_108 = arith.constant 0 : index
    %c0_109 = arith.constant 0 : index
    %314 = vector.load %arg16[%c0_107, %c0_108, %c0_109] : memref<2x64x32xbf16, #tpu.memory_space<vmem>>, vector<1x64x32xbf16>
    %315 = vector.shape_cast %314 : vector<1x64x32xbf16> to vector<64x32xbf16>
    %cst_110 = arith.constant dense<0.000000e+00> : vector<16x32xf32>
    %316 = tpu.matmul %313, %315, %cst_110 {dimension_numbers = #tpu.dot_dimension_numbers<[1], [0], [0], [1], [0, 0, 1, 1], [], []>} : vector<16x64xbf16>, vector<64x32xbf16>, vector<16x32xf32> -> vector<16x32xf32>
    %c0_111 = arith.constant 0 : index
    %c0_112 = arith.constant 0 : index
    %c0_113 = arith.constant 0 : index
    %317 = vector.load %arg17[%c0_111, %c0_112, %c0_113] : memref<2x1x32xf32, #tpu.memory_space<vmem>>, vector<1x1x32xf32>
    %318 = vector.shape_cast %317 : vector<1x1x32xf32> to vector<1x32xf32>
    %319 = vector.broadcast %318 : vector<1x32xf32> to vector<16x32xf32>
    %320 = arith.addf %316, %319 : vector<16x32xf32>
    %321 = arith.addf %302, %320 : vector<16x32xf32>
    %322 = vector.extract_strided_slice %15 {offsets = [2, 0], sizes = [1, 32], strides = [1, 1]} : vector<3x32xf32> to vector<1x32xf32>
    %323 = vector.extract_strided_slice %17 {offsets = [2, 0], sizes = [1, 32], strides = [1, 1]} : vector<3x32xf32> to vector<1x32xf32>
    %cst_114 = arith.constant dense<0.000000e+00> : vector<16xf32>
    %324 = vector.multi_reduction <add>, %321, %cst_114 [1] : vector<16x32xf32> to vector<16xf32>
    %325 = vector.shape_cast %324 : vector<16xf32> to vector<16x1xf32>
    %cst_115 = arith.constant 3.200000e+01 : f32
    %326 = vector.broadcast %cst_115 : f32 to vector<16x1xf32>
    %327 = arith.divf %325, %326 : vector<16x1xf32>
    %328 = vector.broadcast %327 : vector<16x1xf32> to vector<16x32xf32>
    %329 = arith.subf %321, %328 : vector<16x32xf32>
    %330 = arith.mulf %329, %329 : vector<16x32xf32>
    %cst_116 = arith.constant dense<0.000000e+00> : vector<16xf32>
    %331 = vector.multi_reduction <add>, %330, %cst_116 [1] : vector<16x32xf32> to vector<16xf32>
    %332 = vector.shape_cast %331 : vector<16xf32> to vector<16x1xf32>
    %cst_117 = arith.constant 3.200000e+01 : f32
    %333 = vector.broadcast %cst_117 : f32 to vector<16x1xf32>
    %334 = arith.divf %332, %333 : vector<16x1xf32>
    %335 = vector.broadcast %327 : vector<16x1xf32> to vector<16x32xf32>
    %336 = arith.subf %321, %335 : vector<16x32xf32>
    %cst_118 = arith.constant 9.99999974E-6 : f32
    %337 = vector.broadcast %cst_118 : f32 to vector<16x1xf32>
    %338 = arith.addf %334, %337 : vector<16x1xf32>
    %339 = math.rsqrt %338 : vector<16x1xf32>
    %340 = vector.broadcast %339 : vector<16x1xf32> to vector<16x32xf32>
    %341 = arith.mulf %336, %340 : vector<16x32xf32>
    %342 = vector.broadcast %322 : vector<1x32xf32> to vector<16x32xf32>
    %343 = arith.mulf %341, %342 : vector<16x32xf32>
    %344 = vector.broadcast %323 : vector<1x32xf32> to vector<16x32xf32>
    %345 = arith.addf %343, %344 : vector<16x32xf32>
    %c1 = arith.constant 1 : index
    %c0_119 = arith.constant 0 : index
    %c0_120 = arith.constant 0 : index
    %346 = vector.load %arg18[%c1, %c0_119, %c0_120] : memref<2x3x32xf32, #tpu.memory_space<vmem>>, vector<1x3x32xf32>
    %347 = vector.shape_cast %346 : vector<1x3x32xf32> to vector<3x32xf32>
    %c1_121 = arith.constant 1 : index
    %c0_122 = arith.constant 0 : index
    %c0_123 = arith.constant 0 : index
    %348 = vector.load %arg19[%c1_121, %c0_122, %c0_123] : memref<2x3x32xf32, #tpu.memory_space<vmem>>, vector<1x3x32xf32>
    %349 = vector.shape_cast %348 : vector<1x3x32xf32> to vector<3x32xf32>
    %350 = arith.truncf %345 : vector<16x32xf32> to vector<16x32xbf16>
    %c1_124 = arith.constant 1 : index
    %c0_125 = arith.constant 0 : index
    %c0_126 = arith.constant 0 : index
    %351 = vector.load %arg4[%c1_124, %c0_125, %c0_126] : memref<2x32x96xbf16, #tpu.memory_space<vmem>>, vector<1x32x96xbf16>
    %352 = vector.shape_cast %351 : vector<1x32x96xbf16> to vector<32x96xbf16>
    %cst_127 = arith.constant dense<0.000000e+00> : vector<16x96xf32>
    %353 = tpu.matmul %350, %352, %cst_127 {dimension_numbers = #tpu.dot_dimension_numbers<[1], [0], [0], [1], [0, 0, 1, 1], [], []>} : vector<16x32xbf16>, vector<32x96xbf16>, vector<16x96xf32> -> vector<16x96xf32>
    %c1_128 = arith.constant 1 : index
    %c0_129 = arith.constant 0 : index
    %c0_130 = arith.constant 0 : index
    %354 = vector.load %arg5[%c1_128, %c0_129, %c0_130] : memref<2x1x96xf32, #tpu.memory_space<vmem>>, vector<1x1x96xf32>
    %355 = vector.shape_cast %354 : vector<1x1x96xf32> to vector<1x96xf32>
    %356 = vector.broadcast %355 : vector<1x96xf32> to vector<16x96xf32>
    %357 = arith.addf %353, %356 : vector<16x96xf32>
    %358 = vector.extract_strided_slice %357 {offsets = [0, 0], sizes = [16, 32], strides = [1, 1]} : vector<16x96xf32> to vector<16x32xf32>
    %359 = vector.shape_cast %358 : vector<16x32xf32> to vector<2x8x32xf32>
    %360 = vector.extract_strided_slice %357 {offsets = [0, 32], sizes = [16, 32], strides = [1, 1]} : vector<16x96xf32> to vector<16x32xf32>
    %361 = vector.shape_cast %360 : vector<16x32xf32> to vector<2x8x32xf32>
    %362 = vector.extract_strided_slice %357 {offsets = [0, 64], sizes = [16, 32], strides = [1, 1]} : vector<16x96xf32> to vector<16x32xf32>
    %363 = vector.shape_cast %362 : vector<16x32xf32> to vector<2x8x32xf32>
    %364 = vector.extract_strided_slice %359 {offsets = [0, 0, 0], sizes = [2, 8, 8], strides = [1, 1, 1]} : vector<2x8x32xf32> to vector<2x8x8xf32>
    %365 = arith.truncf %364 : vector<2x8x8xf32> to vector<2x8x8xbf16>
    %366 = vector.extract_strided_slice %361 {offsets = [0, 0, 0], sizes = [2, 8, 8], strides = [1, 1, 1]} : vector<2x8x32xf32> to vector<2x8x8xf32>
    %367 = arith.truncf %366 : vector<2x8x8xf32> to vector<2x8x8xbf16>
    "tpu.trace_start"() <{level = 10 : i32, message = "bqd,bkd->bqk"}> : () -> ()
    %cst_131 = arith.constant dense<0.000000e+00> : vector<2x8x8xf32>
    %368 = tpu.matmul %365, %367, %cst_131 {dimension_numbers = #tpu.dot_dimension_numbers<[2], [2], [1], [1], [0, 0, 0, 1, 1, 1], [0], [0]>} : vector<2x8x8xbf16>, vector<2x8x8xbf16>, vector<2x8x8xf32> -> vector<2x8x8xf32>
    "tpu.trace_stop"() : () -> ()
    %cst_132 = arith.constant 0.353553385 : f32
    %369 = vector.broadcast %cst_132 : f32 to vector<2x8x8xf32>
    %370 = arith.mulf %368, %369 : vector<2x8x8xf32>
    %371 = vector.shape_cast %13 : vector<8x8xf32> to vector<1x8x8xf32>
    %372 = vector.broadcast %371 : vector<1x8x8xf32> to vector<2x8x8xf32>
    %373 = arith.addf %370, %372 : vector<2x8x8xf32>
    %cst_133 = arith.constant dense<0xFF800000> : vector<2x8xf32>
    %374 = vector.multi_reduction <maximumf>, %373, %cst_133 [2] : vector<2x8x8xf32> to vector<2x8xf32>
    %375 = vector.shape_cast %374 : vector<2x8xf32> to vector<2x8x1xf32>
    %376 = vector.broadcast %375 : vector<2x8x1xf32> to vector<2x8x8xf32>
    %377 = arith.subf %373, %376 : vector<2x8x8xf32>
    %378 = math.exp %377 : vector<2x8x8xf32>
    %cst_134 = arith.constant dense<0.000000e+00> : vector<2x8xf32>
    %379 = vector.multi_reduction <add>, %378, %cst_134 [2] : vector<2x8x8xf32> to vector<2x8xf32>
    %380 = vector.shape_cast %379 : vector<2x8xf32> to vector<2x8x1xf32>
    %381 = tpu.reciprocal %380 {approx = true} : vector<2x8x1xf32> -> vector<2x8x1xf32>
    %382 = vector.broadcast %381 : vector<2x8x1xf32> to vector<2x8x8xf32>
    %383 = arith.mulf %378, %382 : vector<2x8x8xf32>
    %384 = arith.truncf %383 : vector<2x8x8xf32> to vector<2x8x8xbf16>
    %385 = vector.extract_strided_slice %363 {offsets = [0, 0, 0], sizes = [2, 8, 8], strides = [1, 1, 1]} : vector<2x8x32xf32> to vector<2x8x8xf32>
    %386 = arith.truncf %385 : vector<2x8x8xf32> to vector<2x8x8xbf16>
    "tpu.trace_start"() <{level = 10 : i32, message = "bqk,bkd->bqd"}> : () -> ()
    %cst_135 = arith.constant dense<0.000000e+00> : vector<2x8x8xf32>
    %387 = tpu.matmul %384, %386, %cst_135 {dimension_numbers = #tpu.dot_dimension_numbers<[2], [1], [1], [2], [0, 0, 0, 1, 1, 2], [0], [0]>} : vector<2x8x8xbf16>, vector<2x8x8xbf16>, vector<2x8x8xf32> -> vector<2x8x8xf32>
    "tpu.trace_stop"() : () -> ()
    %388 = vector.extract_strided_slice %359 {offsets = [0, 0, 8], sizes = [2, 8, 8], strides = [1, 1, 1]} : vector<2x8x32xf32> to vector<2x8x8xf32>
    %389 = arith.truncf %388 : vector<2x8x8xf32> to vector<2x8x8xbf16>
    %390 = vector.extract_strided_slice %361 {offsets = [0, 0, 8], sizes = [2, 8, 8], strides = [1, 1, 1]} : vector<2x8x32xf32> to vector<2x8x8xf32>
    %391 = arith.truncf %390 : vector<2x8x8xf32> to vector<2x8x8xbf16>
    "tpu.trace_start"() <{level = 10 : i32, message = "bqd,bkd->bqk"}> : () -> ()
    %cst_136 = arith.constant dense<0.000000e+00> : vector<2x8x8xf32>
    %392 = tpu.matmul %389, %391, %cst_136 {dimension_numbers = #tpu.dot_dimension_numbers<[2], [2], [1], [1], [0, 0, 0, 1, 1, 1], [0], [0]>} : vector<2x8x8xbf16>, vector<2x8x8xbf16>, vector<2x8x8xf32> -> vector<2x8x8xf32>
    "tpu.trace_stop"() : () -> ()
    %cst_137 = arith.constant 0.353553385 : f32
    %393 = vector.broadcast %cst_137 : f32 to vector<2x8x8xf32>
    %394 = arith.mulf %392, %393 : vector<2x8x8xf32>
    %395 = vector.shape_cast %13 : vector<8x8xf32> to vector<1x8x8xf32>
    %396 = vector.broadcast %395 : vector<1x8x8xf32> to vector<2x8x8xf32>
    %397 = arith.addf %394, %396 : vector<2x8x8xf32>
    %cst_138 = arith.constant dense<0xFF800000> : vector<2x8xf32>
    %398 = vector.multi_reduction <maximumf>, %397, %cst_138 [2] : vector<2x8x8xf32> to vector<2x8xf32>
    %399 = vector.shape_cast %398 : vector<2x8xf32> to vector<2x8x1xf32>
    %400 = vector.broadcast %399 : vector<2x8x1xf32> to vector<2x8x8xf32>
    %401 = arith.subf %397, %400 : vector<2x8x8xf32>
    %402 = math.exp %401 : vector<2x8x8xf32>
    %cst_139 = arith.constant dense<0.000000e+00> : vector<2x8xf32>
    %403 = vector.multi_reduction <add>, %402, %cst_139 [2] : vector<2x8x8xf32> to vector<2x8xf32>
    %404 = vector.shape_cast %403 : vector<2x8xf32> to vector<2x8x1xf32>
    %405 = tpu.reciprocal %404 {approx = true} : vector<2x8x1xf32> -> vector<2x8x1xf32>
    %406 = vector.broadcast %405 : vector<2x8x1xf32> to vector<2x8x8xf32>
    %407 = arith.mulf %402, %406 : vector<2x8x8xf32>
    %408 = arith.truncf %407 : vector<2x8x8xf32> to vector<2x8x8xbf16>
    %409 = vector.extract_strided_slice %363 {offsets = [0, 0, 8], sizes = [2, 8, 8], strides = [1, 1, 1]} : vector<2x8x32xf32> to vector<2x8x8xf32>
    %410 = arith.truncf %409 : vector<2x8x8xf32> to vector<2x8x8xbf16>
    "tpu.trace_start"() <{level = 10 : i32, message = "bqk,bkd->bqd"}> : () -> ()
    %cst_140 = arith.constant dense<0.000000e+00> : vector<2x8x8xf32>
    %411 = tpu.matmul %408, %410, %cst_140 {dimension_numbers = #tpu.dot_dimension_numbers<[2], [1], [1], [2], [0, 0, 0, 1, 1, 2], [0], [0]>} : vector<2x8x8xbf16>, vector<2x8x8xbf16>, vector<2x8x8xf32> -> vector<2x8x8xf32>
    "tpu.trace_stop"() : () -> ()
    %412 = vector.extract_strided_slice %359 {offsets = [0, 0, 16], sizes = [2, 8, 8], strides = [1, 1, 1]} : vector<2x8x32xf32> to vector<2x8x8xf32>
    %413 = arith.truncf %412 : vector<2x8x8xf32> to vector<2x8x8xbf16>
    %414 = vector.extract_strided_slice %361 {offsets = [0, 0, 16], sizes = [2, 8, 8], strides = [1, 1, 1]} : vector<2x8x32xf32> to vector<2x8x8xf32>
    %415 = arith.truncf %414 : vector<2x8x8xf32> to vector<2x8x8xbf16>
    "tpu.trace_start"() <{level = 10 : i32, message = "bqd,bkd->bqk"}> : () -> ()
    %cst_141 = arith.constant dense<0.000000e+00> : vector<2x8x8xf32>
    %416 = tpu.matmul %413, %415, %cst_141 {dimension_numbers = #tpu.dot_dimension_numbers<[2], [2], [1], [1], [0, 0, 0, 1, 1, 1], [0], [0]>} : vector<2x8x8xbf16>, vector<2x8x8xbf16>, vector<2x8x8xf32> -> vector<2x8x8xf32>
    "tpu.trace_stop"() : () -> ()
    %cst_142 = arith.constant 0.353553385 : f32
    %417 = vector.broadcast %cst_142 : f32 to vector<2x8x8xf32>
    %418 = arith.mulf %416, %417 : vector<2x8x8xf32>
    %419 = vector.shape_cast %13 : vector<8x8xf32> to vector<1x8x8xf32>
    %420 = vector.broadcast %419 : vector<1x8x8xf32> to vector<2x8x8xf32>
    %421 = arith.addf %418, %420 : vector<2x8x8xf32>
    %cst_143 = arith.constant dense<0xFF800000> : vector<2x8xf32>
    %422 = vector.multi_reduction <maximumf>, %421, %cst_143 [2] : vector<2x8x8xf32> to vector<2x8xf32>
    %423 = vector.shape_cast %422 : vector<2x8xf32> to vector<2x8x1xf32>
    %424 = vector.broadcast %423 : vector<2x8x1xf32> to vector<2x8x8xf32>
    %425 = arith.subf %421, %424 : vector<2x8x8xf32>
    %426 = math.exp %425 : vector<2x8x8xf32>
    %cst_144 = arith.constant dense<0.000000e+00> : vector<2x8xf32>
    %427 = vector.multi_reduction <add>, %426, %cst_144 [2] : vector<2x8x8xf32> to vector<2x8xf32>
    %428 = vector.shape_cast %427 : vector<2x8xf32> to vector<2x8x1xf32>
    %429 = tpu.reciprocal %428 {approx = true} : vector<2x8x1xf32> -> vector<2x8x1xf32>
    %430 = vector.broadcast %429 : vector<2x8x1xf32> to vector<2x8x8xf32>
    %431 = arith.mulf %426, %430 : vector<2x8x8xf32>
    %432 = arith.truncf %431 : vector<2x8x8xf32> to vector<2x8x8xbf16>
    %433 = vector.extract_strided_slice %363 {offsets = [0, 0, 16], sizes = [2, 8, 8], strides = [1, 1, 1]} : vector<2x8x32xf32> to vector<2x8x8xf32>
    %434 = arith.truncf %433 : vector<2x8x8xf32> to vector<2x8x8xbf16>
    "tpu.trace_start"() <{level = 10 : i32, message = "bqk,bkd->bqd"}> : () -> ()
    %cst_145 = arith.constant dense<0.000000e+00> : vector<2x8x8xf32>
    %435 = tpu.matmul %432, %434, %cst_145 {dimension_numbers = #tpu.dot_dimension_numbers<[2], [1], [1], [2], [0, 0, 0, 1, 1, 2], [0], [0]>} : vector<2x8x8xbf16>, vector<2x8x8xbf16>, vector<2x8x8xf32> -> vector<2x8x8xf32>
    "tpu.trace_stop"() : () -> ()
    %436 = vector.extract_strided_slice %359 {offsets = [0, 0, 24], sizes = [2, 8, 8], strides = [1, 1, 1]} : vector<2x8x32xf32> to vector<2x8x8xf32>
    %437 = arith.truncf %436 : vector<2x8x8xf32> to vector<2x8x8xbf16>
    %438 = vector.extract_strided_slice %361 {offsets = [0, 0, 24], sizes = [2, 8, 8], strides = [1, 1, 1]} : vector<2x8x32xf32> to vector<2x8x8xf32>
    %439 = arith.truncf %438 : vector<2x8x8xf32> to vector<2x8x8xbf16>
    "tpu.trace_start"() <{level = 10 : i32, message = "bqd,bkd->bqk"}> : () -> ()
    %cst_146 = arith.constant dense<0.000000e+00> : vector<2x8x8xf32>
    %440 = tpu.matmul %437, %439, %cst_146 {dimension_numbers = #tpu.dot_dimension_numbers<[2], [2], [1], [1], [0, 0, 0, 1, 1, 1], [0], [0]>} : vector<2x8x8xbf16>, vector<2x8x8xbf16>, vector<2x8x8xf32> -> vector<2x8x8xf32>
    "tpu.trace_stop"() : () -> ()
    %cst_147 = arith.constant 0.353553385 : f32
    %441 = vector.broadcast %cst_147 : f32 to vector<2x8x8xf32>
    %442 = arith.mulf %440, %441 : vector<2x8x8xf32>
    %443 = vector.shape_cast %13 : vector<8x8xf32> to vector<1x8x8xf32>
    %444 = vector.broadcast %443 : vector<1x8x8xf32> to vector<2x8x8xf32>
    %445 = arith.addf %442, %444 : vector<2x8x8xf32>
    %cst_148 = arith.constant dense<0xFF800000> : vector<2x8xf32>
    %446 = vector.multi_reduction <maximumf>, %445, %cst_148 [2] : vector<2x8x8xf32> to vector<2x8xf32>
    %447 = vector.shape_cast %446 : vector<2x8xf32> to vector<2x8x1xf32>
    %448 = vector.broadcast %447 : vector<2x8x1xf32> to vector<2x8x8xf32>
    %449 = arith.subf %445, %448 : vector<2x8x8xf32>
    %450 = math.exp %449 : vector<2x8x8xf32>
    %cst_149 = arith.constant dense<0.000000e+00> : vector<2x8xf32>
    %451 = vector.multi_reduction <add>, %450, %cst_149 [2] : vector<2x8x8xf32> to vector<2x8xf32>
    %452 = vector.shape_cast %451 : vector<2x8xf32> to vector<2x8x1xf32>
    %453 = tpu.reciprocal %452 {approx = true} : vector<2x8x1xf32> -> vector<2x8x1xf32>
    %454 = vector.broadcast %453 : vector<2x8x1xf32> to vector<2x8x8xf32>
    %455 = arith.mulf %450, %454 : vector<2x8x8xf32>
    %456 = arith.truncf %455 : vector<2x8x8xf32> to vector<2x8x8xbf16>
    %457 = vector.extract_strided_slice %363 {offsets = [0, 0, 24], sizes = [2, 8, 8], strides = [1, 1, 1]} : vector<2x8x32xf32> to vector<2x8x8xf32>
    %458 = arith.truncf %457 : vector<2x8x8xf32> to vector<2x8x8xbf16>
    "tpu.trace_start"() <{level = 10 : i32, message = "bqk,bkd->bqd"}> : () -> ()
    %cst_150 = arith.constant dense<0.000000e+00> : vector<2x8x8xf32>
    %459 = tpu.matmul %456, %458, %cst_150 {dimension_numbers = #tpu.dot_dimension_numbers<[2], [1], [1], [2], [0, 0, 0, 1, 1, 2], [0], [0]>} : vector<2x8x8xbf16>, vector<2x8x8xbf16>, vector<2x8x8xf32> -> vector<2x8x8xf32>
    "tpu.trace_stop"() : () -> ()
    %460 = tpu.concatenate %387, %411, %435, %459 in 2 : vector<2x8x8xf32>, vector<2x8x8xf32>, vector<2x8x8xf32>, vector<2x8x8xf32> -> vector<2x8x32xf32>
    %461 = vector.shape_cast %460 : vector<2x8x32xf32> to vector<16x32xf32>
    %462 = arith.truncf %461 : vector<16x32xf32> to vector<16x32xbf16>
    %c1_151 = arith.constant 1 : index
    %c0_152 = arith.constant 0 : index
    %c0_153 = arith.constant 0 : index
    %463 = vector.load %arg6[%c1_151, %c0_152, %c0_153] : memref<2x32x32xbf16, #tpu.memory_space<vmem>>, vector<1x32x32xbf16>
    %464 = vector.shape_cast %463 : vector<1x32x32xbf16> to vector<32x32xbf16>
    %cst_154 = arith.constant dense<0.000000e+00> : vector<16x32xf32>
    %465 = tpu.matmul %462, %464, %cst_154 {dimension_numbers = #tpu.dot_dimension_numbers<[1], [0], [0], [1], [0, 0, 1, 1], [], []>} : vector<16x32xbf16>, vector<32x32xbf16>, vector<16x32xf32> -> vector<16x32xf32>
    %c1_155 = arith.constant 1 : index
    %c0_156 = arith.constant 0 : index
    %c0_157 = arith.constant 0 : index
    %466 = vector.load %arg7[%c1_155, %c0_156, %c0_157] : memref<2x1x32xf32, #tpu.memory_space<vmem>>, vector<1x1x32xf32>
    %467 = vector.shape_cast %466 : vector<1x1x32xf32> to vector<1x32xf32>
    %468 = vector.broadcast %467 : vector<1x32xf32> to vector<16x32xf32>
    %469 = arith.addf %465, %468 : vector<16x32xf32>
    %470 = arith.addf %345, %469 : vector<16x32xf32>
    %471 = vector.extract_strided_slice %347 {offsets = [0, 0], sizes = [1, 32], strides = [1, 1]} : vector<3x32xf32> to vector<1x32xf32>
    %472 = vector.extract_strided_slice %349 {offsets = [0, 0], sizes = [1, 32], strides = [1, 1]} : vector<3x32xf32> to vector<1x32xf32>
    %cst_158 = arith.constant dense<0.000000e+00> : vector<16xf32>
    %473 = vector.multi_reduction <add>, %470, %cst_158 [1] : vector<16x32xf32> to vector<16xf32>
    %474 = vector.shape_cast %473 : vector<16xf32> to vector<16x1xf32>
    %cst_159 = arith.constant 3.200000e+01 : f32
    %475 = vector.broadcast %cst_159 : f32 to vector<16x1xf32>
    %476 = arith.divf %474, %475 : vector<16x1xf32>
    %477 = vector.broadcast %476 : vector<16x1xf32> to vector<16x32xf32>
    %478 = arith.subf %470, %477 : vector<16x32xf32>
    %479 = arith.mulf %478, %478 : vector<16x32xf32>
    %cst_160 = arith.constant dense<0.000000e+00> : vector<16xf32>
    %480 = vector.multi_reduction <add>, %479, %cst_160 [1] : vector<16x32xf32> to vector<16xf32>
    %481 = vector.shape_cast %480 : vector<16xf32> to vector<16x1xf32>
    %cst_161 = arith.constant 3.200000e+01 : f32
    %482 = vector.broadcast %cst_161 : f32 to vector<16x1xf32>
    %483 = arith.divf %481, %482 : vector<16x1xf32>
    %484 = vector.broadcast %476 : vector<16x1xf32> to vector<16x32xf32>
    %485 = arith.subf %470, %484 : vector<16x32xf32>
    %cst_162 = arith.constant 9.99999974E-6 : f32
    %486 = vector.broadcast %cst_162 : f32 to vector<16x1xf32>
    %487 = arith.addf %483, %486 : vector<16x1xf32>
    %488 = math.rsqrt %487 : vector<16x1xf32>
    %489 = vector.broadcast %488 : vector<16x1xf32> to vector<16x32xf32>
    %490 = arith.mulf %485, %489 : vector<16x32xf32>
    %491 = vector.broadcast %471 : vector<1x32xf32> to vector<16x32xf32>
    %492 = arith.mulf %490, %491 : vector<16x32xf32>
    %493 = vector.broadcast %472 : vector<1x32xf32> to vector<16x32xf32>
    %494 = arith.addf %492, %493 : vector<16x32xf32>
    %495 = arith.truncf %494 : vector<16x32xf32> to vector<16x32xbf16>
    %c1_163 = arith.constant 1 : index
    %c0_164 = arith.constant 0 : index
    %c0_165 = arith.constant 0 : index
    %496 = vector.load %arg8[%c1_163, %c0_164, %c0_165] : memref<2x32x32xbf16, #tpu.memory_space<vmem>>, vector<1x32x32xbf16>
    %497 = vector.shape_cast %496 : vector<1x32x32xbf16> to vector<32x32xbf16>
    %cst_166 = arith.constant dense<0.000000e+00> : vector<16x32xf32>
    %498 = tpu.matmul %495, %497, %cst_166 {dimension_numbers = #tpu.dot_dimension_numbers<[1], [0], [0], [1], [0, 0, 1, 1], [], []>} : vector<16x32xbf16>, vector<32x32xbf16>, vector<16x32xf32> -> vector<16x32xf32>
    %c1_167 = arith.constant 1 : index
    %c0_168 = arith.constant 0 : index
    %c0_169 = arith.constant 0 : index
    %499 = vector.load %arg9[%c1_167, %c0_168, %c0_169] : memref<2x1x32xf32, #tpu.memory_space<vmem>>, vector<1x1x32xf32>
    %500 = vector.shape_cast %499 : vector<1x1x32xf32> to vector<1x32xf32>
    %501 = vector.broadcast %500 : vector<1x32xf32> to vector<16x32xf32>
    %502 = arith.addf %498, %501 : vector<16x32xf32>
    %503 = arith.truncf %7 : vector<16x32xf32> to vector<16x32xbf16>
    %c1_170 = arith.constant 1 : index
    %c0_171 = arith.constant 0 : index
    %c0_172 = arith.constant 0 : index
    %504 = vector.load %arg10[%c1_170, %c0_171, %c0_172] : memref<2x32x64xbf16, #tpu.memory_space<vmem>>, vector<1x32x64xbf16>
    %505 = vector.shape_cast %504 : vector<1x32x64xbf16> to vector<32x64xbf16>
    %cst_173 = arith.constant dense<0.000000e+00> : vector<16x64xf32>
    %506 = tpu.matmul %503, %505, %cst_173 {dimension_numbers = #tpu.dot_dimension_numbers<[1], [0], [0], [1], [0, 0, 1, 1], [], []>} : vector<16x32xbf16>, vector<32x64xbf16>, vector<16x64xf32> -> vector<16x64xf32>
    %c1_174 = arith.constant 1 : index
    %c0_175 = arith.constant 0 : index
    %c0_176 = arith.constant 0 : index
    %507 = vector.load %arg11[%c1_174, %c0_175, %c0_176] : memref<2x1x64xf32, #tpu.memory_space<vmem>>, vector<1x1x64xf32>
    %508 = vector.shape_cast %507 : vector<1x1x64xf32> to vector<1x64xf32>
    %509 = vector.broadcast %508 : vector<1x64xf32> to vector<16x64xf32>
    %510 = arith.addf %506, %509 : vector<16x64xf32>
    %511 = vector.shape_cast %502 : vector<16x32xf32> to vector<2x8x32xf32>
    %512 = vector.extract_strided_slice %510 {offsets = [0, 0], sizes = [16, 32], strides = [1, 1]} : vector<16x64xf32> to vector<16x32xf32>
    %513 = vector.shape_cast %512 : vector<16x32xf32> to vector<2x8x32xf32>
    %514 = vector.extract_strided_slice %510 {offsets = [0, 32], sizes = [16, 32], strides = [1, 1]} : vector<16x64xf32> to vector<16x32xf32>
    %515 = vector.shape_cast %514 : vector<16x32xf32> to vector<2x8x32xf32>
    %516 = vector.extract_strided_slice %511 {offsets = [0, 0, 0], sizes = [2, 8, 8], strides = [1, 1, 1]} : vector<2x8x32xf32> to vector<2x8x8xf32>
    %517 = arith.truncf %516 : vector<2x8x8xf32> to vector<2x8x8xbf16>
    %518 = vector.extract_strided_slice %513 {offsets = [0, 0, 0], sizes = [2, 8, 8], strides = [1, 1, 1]} : vector<2x8x32xf32> to vector<2x8x8xf32>
    %519 = arith.truncf %518 : vector<2x8x8xf32> to vector<2x8x8xbf16>
    "tpu.trace_start"() <{level = 10 : i32, message = "bqd,bkd->bqk"}> : () -> ()
    %cst_177 = arith.constant dense<0.000000e+00> : vector<2x8x8xf32>
    %520 = tpu.matmul %517, %519, %cst_177 {dimension_numbers = #tpu.dot_dimension_numbers<[2], [2], [1], [1], [0, 0, 0, 1, 1, 1], [0], [0]>} : vector<2x8x8xbf16>, vector<2x8x8xbf16>, vector<2x8x8xf32> -> vector<2x8x8xf32>
    "tpu.trace_stop"() : () -> ()
    %cst_178 = arith.constant 0.353553385 : f32
    %521 = vector.broadcast %cst_178 : f32 to vector<2x8x8xf32>
    %522 = arith.mulf %520, %521 : vector<2x8x8xf32>
    %cst_179 = arith.constant dense<0xFF800000> : vector<2x8xf32>
    %523 = vector.multi_reduction <maximumf>, %522, %cst_179 [2] : vector<2x8x8xf32> to vector<2x8xf32>
    %524 = vector.shape_cast %523 : vector<2x8xf32> to vector<2x8x1xf32>
    %525 = vector.broadcast %524 : vector<2x8x1xf32> to vector<2x8x8xf32>
    %526 = arith.subf %522, %525 : vector<2x8x8xf32>
    %527 = math.exp %526 : vector<2x8x8xf32>
    %cst_180 = arith.constant dense<0.000000e+00> : vector<2x8xf32>
    %528 = vector.multi_reduction <add>, %527, %cst_180 [2] : vector<2x8x8xf32> to vector<2x8xf32>
    %529 = vector.shape_cast %528 : vector<2x8xf32> to vector<2x8x1xf32>
    %530 = tpu.reciprocal %529 {approx = true} : vector<2x8x1xf32> -> vector<2x8x1xf32>
    %531 = vector.broadcast %530 : vector<2x8x1xf32> to vector<2x8x8xf32>
    %532 = arith.mulf %527, %531 : vector<2x8x8xf32>
    %533 = arith.truncf %532 : vector<2x8x8xf32> to vector<2x8x8xbf16>
    %534 = vector.extract_strided_slice %515 {offsets = [0, 0, 0], sizes = [2, 8, 8], strides = [1, 1, 1]} : vector<2x8x32xf32> to vector<2x8x8xf32>
    %535 = arith.truncf %534 : vector<2x8x8xf32> to vector<2x8x8xbf16>
    "tpu.trace_start"() <{level = 10 : i32, message = "bqk,bkd->bqd"}> : () -> ()
    %cst_181 = arith.constant dense<0.000000e+00> : vector<2x8x8xf32>
    %536 = tpu.matmul %533, %535, %cst_181 {dimension_numbers = #tpu.dot_dimension_numbers<[2], [1], [1], [2], [0, 0, 0, 1, 1, 2], [0], [0]>} : vector<2x8x8xbf16>, vector<2x8x8xbf16>, vector<2x8x8xf32> -> vector<2x8x8xf32>
    "tpu.trace_stop"() : () -> ()
    %537 = vector.extract_strided_slice %511 {offsets = [0, 0, 8], sizes = [2, 8, 8], strides = [1, 1, 1]} : vector<2x8x32xf32> to vector<2x8x8xf32>
    %538 = arith.truncf %537 : vector<2x8x8xf32> to vector<2x8x8xbf16>
    %539 = vector.extract_strided_slice %513 {offsets = [0, 0, 8], sizes = [2, 8, 8], strides = [1, 1, 1]} : vector<2x8x32xf32> to vector<2x8x8xf32>
    %540 = arith.truncf %539 : vector<2x8x8xf32> to vector<2x8x8xbf16>
    "tpu.trace_start"() <{level = 10 : i32, message = "bqd,bkd->bqk"}> : () -> ()
    %cst_182 = arith.constant dense<0.000000e+00> : vector<2x8x8xf32>
    %541 = tpu.matmul %538, %540, %cst_182 {dimension_numbers = #tpu.dot_dimension_numbers<[2], [2], [1], [1], [0, 0, 0, 1, 1, 1], [0], [0]>} : vector<2x8x8xbf16>, vector<2x8x8xbf16>, vector<2x8x8xf32> -> vector<2x8x8xf32>
    "tpu.trace_stop"() : () -> ()
    %cst_183 = arith.constant 0.353553385 : f32
    %542 = vector.broadcast %cst_183 : f32 to vector<2x8x8xf32>
    %543 = arith.mulf %541, %542 : vector<2x8x8xf32>
    %cst_184 = arith.constant dense<0xFF800000> : vector<2x8xf32>
    %544 = vector.multi_reduction <maximumf>, %543, %cst_184 [2] : vector<2x8x8xf32> to vector<2x8xf32>
    %545 = vector.shape_cast %544 : vector<2x8xf32> to vector<2x8x1xf32>
    %546 = vector.broadcast %545 : vector<2x8x1xf32> to vector<2x8x8xf32>
    %547 = arith.subf %543, %546 : vector<2x8x8xf32>
    %548 = math.exp %547 : vector<2x8x8xf32>
    %cst_185 = arith.constant dense<0.000000e+00> : vector<2x8xf32>
    %549 = vector.multi_reduction <add>, %548, %cst_185 [2] : vector<2x8x8xf32> to vector<2x8xf32>
    %550 = vector.shape_cast %549 : vector<2x8xf32> to vector<2x8x1xf32>
    %551 = tpu.reciprocal %550 {approx = true} : vector<2x8x1xf32> -> vector<2x8x1xf32>
    %552 = vector.broadcast %551 : vector<2x8x1xf32> to vector<2x8x8xf32>
    %553 = arith.mulf %548, %552 : vector<2x8x8xf32>
    %554 = arith.truncf %553 : vector<2x8x8xf32> to vector<2x8x8xbf16>
    %555 = vector.extract_strided_slice %515 {offsets = [0, 0, 8], sizes = [2, 8, 8], strides = [1, 1, 1]} : vector<2x8x32xf32> to vector<2x8x8xf32>
    %556 = arith.truncf %555 : vector<2x8x8xf32> to vector<2x8x8xbf16>
    "tpu.trace_start"() <{level = 10 : i32, message = "bqk,bkd->bqd"}> : () -> ()
    %cst_186 = arith.constant dense<0.000000e+00> : vector<2x8x8xf32>
    %557 = tpu.matmul %554, %556, %cst_186 {dimension_numbers = #tpu.dot_dimension_numbers<[2], [1], [1], [2], [0, 0, 0, 1, 1, 2], [0], [0]>} : vector<2x8x8xbf16>, vector<2x8x8xbf16>, vector<2x8x8xf32> -> vector<2x8x8xf32>
    "tpu.trace_stop"() : () -> ()
    %558 = vector.extract_strided_slice %511 {offsets = [0, 0, 16], sizes = [2, 8, 8], strides = [1, 1, 1]} : vector<2x8x32xf32> to vector<2x8x8xf32>
    %559 = arith.truncf %558 : vector<2x8x8xf32> to vector<2x8x8xbf16>
    %560 = vector.extract_strided_slice %513 {offsets = [0, 0, 16], sizes = [2, 8, 8], strides = [1, 1, 1]} : vector<2x8x32xf32> to vector<2x8x8xf32>
    %561 = arith.truncf %560 : vector<2x8x8xf32> to vector<2x8x8xbf16>
    "tpu.trace_start"() <{level = 10 : i32, message = "bqd,bkd->bqk"}> : () -> ()
    %cst_187 = arith.constant dense<0.000000e+00> : vector<2x8x8xf32>
    %562 = tpu.matmul %559, %561, %cst_187 {dimension_numbers = #tpu.dot_dimension_numbers<[2], [2], [1], [1], [0, 0, 0, 1, 1, 1], [0], [0]>} : vector<2x8x8xbf16>, vector<2x8x8xbf16>, vector<2x8x8xf32> -> vector<2x8x8xf32>
    "tpu.trace_stop"() : () -> ()
    %cst_188 = arith.constant 0.353553385 : f32
    %563 = vector.broadcast %cst_188 : f32 to vector<2x8x8xf32>
    %564 = arith.mulf %562, %563 : vector<2x8x8xf32>
    %cst_189 = arith.constant dense<0xFF800000> : vector<2x8xf32>
    %565 = vector.multi_reduction <maximumf>, %564, %cst_189 [2] : vector<2x8x8xf32> to vector<2x8xf32>
    %566 = vector.shape_cast %565 : vector<2x8xf32> to vector<2x8x1xf32>
    %567 = vector.broadcast %566 : vector<2x8x1xf32> to vector<2x8x8xf32>
    %568 = arith.subf %564, %567 : vector<2x8x8xf32>
    %569 = math.exp %568 : vector<2x8x8xf32>
    %cst_190 = arith.constant dense<0.000000e+00> : vector<2x8xf32>
    %570 = vector.multi_reduction <add>, %569, %cst_190 [2] : vector<2x8x8xf32> to vector<2x8xf32>
    %571 = vector.shape_cast %570 : vector<2x8xf32> to vector<2x8x1xf32>
    %572 = tpu.reciprocal %571 {approx = true} : vector<2x8x1xf32> -> vector<2x8x1xf32>
    %573 = vector.broadcast %572 : vector<2x8x1xf32> to vector<2x8x8xf32>
    %574 = arith.mulf %569, %573 : vector<2x8x8xf32>
    %575 = arith.truncf %574 : vector<2x8x8xf32> to vector<2x8x8xbf16>
    %576 = vector.extract_strided_slice %515 {offsets = [0, 0, 16], sizes = [2, 8, 8], strides = [1, 1, 1]} : vector<2x8x32xf32> to vector<2x8x8xf32>
    %577 = arith.truncf %576 : vector<2x8x8xf32> to vector<2x8x8xbf16>
    "tpu.trace_start"() <{level = 10 : i32, message = "bqk,bkd->bqd"}> : () -> ()
    %cst_191 = arith.constant dense<0.000000e+00> : vector<2x8x8xf32>
    %578 = tpu.matmul %575, %577, %cst_191 {dimension_numbers = #tpu.dot_dimension_numbers<[2], [1], [1], [2], [0, 0, 0, 1, 1, 2], [0], [0]>} : vector<2x8x8xbf16>, vector<2x8x8xbf16>, vector<2x8x8xf32> -> vector<2x8x8xf32>
    "tpu.trace_stop"() : () -> ()
    %579 = vector.extract_strided_slice %511 {offsets = [0, 0, 24], sizes = [2, 8, 8], strides = [1, 1, 1]} : vector<2x8x32xf32> to vector<2x8x8xf32>
    %580 = arith.truncf %579 : vector<2x8x8xf32> to vector<2x8x8xbf16>
    %581 = vector.extract_strided_slice %513 {offsets = [0, 0, 24], sizes = [2, 8, 8], strides = [1, 1, 1]} : vector<2x8x32xf32> to vector<2x8x8xf32>
    %582 = arith.truncf %581 : vector<2x8x8xf32> to vector<2x8x8xbf16>
    "tpu.trace_start"() <{level = 10 : i32, message = "bqd,bkd->bqk"}> : () -> ()
    %cst_192 = arith.constant dense<0.000000e+00> : vector<2x8x8xf32>
    %583 = tpu.matmul %580, %582, %cst_192 {dimension_numbers = #tpu.dot_dimension_numbers<[2], [2], [1], [1], [0, 0, 0, 1, 1, 1], [0], [0]>} : vector<2x8x8xbf16>, vector<2x8x8xbf16>, vector<2x8x8xf32> -> vector<2x8x8xf32>
    "tpu.trace_stop"() : () -> ()
    %cst_193 = arith.constant 0.353553385 : f32
    %584 = vector.broadcast %cst_193 : f32 to vector<2x8x8xf32>
    %585 = arith.mulf %583, %584 : vector<2x8x8xf32>
    %cst_194 = arith.constant dense<0xFF800000> : vector<2x8xf32>
    %586 = vector.multi_reduction <maximumf>, %585, %cst_194 [2] : vector<2x8x8xf32> to vector<2x8xf32>
    %587 = vector.shape_cast %586 : vector<2x8xf32> to vector<2x8x1xf32>
    %588 = vector.broadcast %587 : vector<2x8x1xf32> to vector<2x8x8xf32>
    %589 = arith.subf %585, %588 : vector<2x8x8xf32>
    %590 = math.exp %589 : vector<2x8x8xf32>
    %cst_195 = arith.constant dense<0.000000e+00> : vector<2x8xf32>
    %591 = vector.multi_reduction <add>, %590, %cst_195 [2] : vector<2x8x8xf32> to vector<2x8xf32>
    %592 = vector.shape_cast %591 : vector<2x8xf32> to vector<2x8x1xf32>
    %593 = tpu.reciprocal %592 {approx = true} : vector<2x8x1xf32> -> vector<2x8x1xf32>
    %594 = vector.broadcast %593 : vector<2x8x1xf32> to vector<2x8x8xf32>
    %595 = arith.mulf %590, %594 : vector<2x8x8xf32>
    %596 = arith.truncf %595 : vector<2x8x8xf32> to vector<2x8x8xbf16>
    %597 = vector.extract_strided_slice %515 {offsets = [0, 0, 24], sizes = [2, 8, 8], strides = [1, 1, 1]} : vector<2x8x32xf32> to vector<2x8x8xf32>
    %598 = arith.truncf %597 : vector<2x8x8xf32> to vector<2x8x8xbf16>
    "tpu.trace_start"() <{level = 10 : i32, message = "bqk,bkd->bqd"}> : () -> ()
    %cst_196 = arith.constant dense<0.000000e+00> : vector<2x8x8xf32>
    %599 = tpu.matmul %596, %598, %cst_196 {dimension_numbers = #tpu.dot_dimension_numbers<[2], [1], [1], [2], [0, 0, 0, 1, 1, 2], [0], [0]>} : vector<2x8x8xbf16>, vector<2x8x8xbf16>, vector<2x8x8xf32> -> vector<2x8x8xf32>
    "tpu.trace_stop"() : () -> ()
    %600 = tpu.concatenate %536, %557, %578, %599 in 2 : vector<2x8x8xf32>, vector<2x8x8xf32>, vector<2x8x8xf32>, vector<2x8x8xf32> -> vector<2x8x32xf32>
    %601 = vector.shape_cast %600 : vector<2x8x32xf32> to vector<16x32xf32>
    %602 = arith.truncf %601 : vector<16x32xf32> to vector<16x32xbf16>
    %c1_197 = arith.constant 1 : index
    %c0_198 = arith.constant 0 : index
    %c0_199 = arith.constant 0 : index
    %603 = vector.load %arg12[%c1_197, %c0_198, %c0_199] : memref<2x32x32xbf16, #tpu.memory_space<vmem>>, vector<1x32x32xbf16>
    %604 = vector.shape_cast %603 : vector<1x32x32xbf16> to vector<32x32xbf16>
    %cst_200 = arith.constant dense<0.000000e+00> : vector<16x32xf32>
    %605 = tpu.matmul %602, %604, %cst_200 {dimension_numbers = #tpu.dot_dimension_numbers<[1], [0], [0], [1], [0, 0, 1, 1], [], []>} : vector<16x32xbf16>, vector<32x32xbf16>, vector<16x32xf32> -> vector<16x32xf32>
    %c1_201 = arith.constant 1 : index
    %c0_202 = arith.constant 0 : index
    %c0_203 = arith.constant 0 : index
    %606 = vector.load %arg13[%c1_201, %c0_202, %c0_203] : memref<2x1x32xf32, #tpu.memory_space<vmem>>, vector<1x1x32xf32>
    %607 = vector.shape_cast %606 : vector<1x1x32xf32> to vector<1x32xf32>
    %608 = vector.broadcast %607 : vector<1x32xf32> to vector<16x32xf32>
    %609 = arith.addf %605, %608 : vector<16x32xf32>
    %610 = arith.addf %494, %609 : vector<16x32xf32>
    %611 = vector.extract_strided_slice %347 {offsets = [1, 0], sizes = [1, 32], strides = [1, 1]} : vector<3x32xf32> to vector<1x32xf32>
    %612 = vector.extract_strided_slice %349 {offsets = [1, 0], sizes = [1, 32], strides = [1, 1]} : vector<3x32xf32> to vector<1x32xf32>
    %cst_204 = arith.constant dense<0.000000e+00> : vector<16xf32>
    %613 = vector.multi_reduction <add>, %610, %cst_204 [1] : vector<16x32xf32> to vector<16xf32>
    %614 = vector.shape_cast %613 : vector<16xf32> to vector<16x1xf32>
    %cst_205 = arith.constant 3.200000e+01 : f32
    %615 = vector.broadcast %cst_205 : f32 to vector<16x1xf32>
    %616 = arith.divf %614, %615 : vector<16x1xf32>
    %617 = vector.broadcast %616 : vector<16x1xf32> to vector<16x32xf32>
    %618 = arith.subf %610, %617 : vector<16x32xf32>
    %619 = arith.mulf %618, %618 : vector<16x32xf32>
    %cst_206 = arith.constant dense<0.000000e+00> : vector<16xf32>
    %620 = vector.multi_reduction <add>, %619, %cst_206 [1] : vector<16x32xf32> to vector<16xf32>
    %621 = vector.shape_cast %620 : vector<16xf32> to vector<16x1xf32>
    %cst_207 = arith.constant 3.200000e+01 : f32
    %622 = vector.broadcast %cst_207 : f32 to vector<16x1xf32>
    %623 = arith.divf %621, %622 : vector<16x1xf32>
    %624 = vector.broadcast %616 : vector<16x1xf32> to vector<16x32xf32>
    %625 = arith.subf %610, %624 : vector<16x32xf32>
    %cst_208 = arith.constant 9.99999974E-6 : f32
    %626 = vector.broadcast %cst_208 : f32 to vector<16x1xf32>
    %627 = arith.addf %623, %626 : vector<16x1xf32>
    %628 = math.rsqrt %627 : vector<16x1xf32>
    %629 = vector.broadcast %628 : vector<16x1xf32> to vector<16x32xf32>
    %630 = arith.mulf %625, %629 : vector<16x32xf32>
    %631 = vector.broadcast %611 : vector<1x32xf32> to vector<16x32xf32>
    %632 = arith.mulf %630, %631 : vector<16x32xf32>
    %633 = vector.broadcast %612 : vector<1x32xf32> to vector<16x32xf32>
    %634 = arith.addf %632, %633 : vector<16x32xf32>
    %635 = arith.truncf %634 : vector<16x32xf32> to vector<16x32xbf16>
    %c1_209 = arith.constant 1 : index
    %c0_210 = arith.constant 0 : index
    %c0_211 = arith.constant 0 : index
    %636 = vector.load %arg14[%c1_209, %c0_210, %c0_211] : memref<2x32x64xbf16, #tpu.memory_space<vmem>>, vector<1x32x64xbf16>
    %637 = vector.shape_cast %636 : vector<1x32x64xbf16> to vector<32x64xbf16>
    %cst_212 = arith.constant dense<0.000000e+00> : vector<16x64xf32>
    %638 = tpu.matmul %635, %637, %cst_212 {dimension_numbers = #tpu.dot_dimension_numbers<[1], [0], [0], [1], [0, 0, 1, 1], [], []>} : vector<16x32xbf16>, vector<32x64xbf16>, vector<16x64xf32> -> vector<16x64xf32>
    %c1_213 = arith.constant 1 : index
    %c0_214 = arith.constant 0 : index
    %c0_215 = arith.constant 0 : index
    %639 = vector.load %arg15[%c1_213, %c0_214, %c0_215] : memref<2x1x64xf32, #tpu.memory_space<vmem>>, vector<1x1x64xf32>
    %640 = vector.shape_cast %639 : vector<1x1x64xf32> to vector<1x64xf32>
    %641 = vector.broadcast %640 : vector<1x64xf32> to vector<16x64xf32>
    %642 = arith.addf %638, %641 : vector<16x64xf32>
    %cst_216 = arith.constant 0.000000e+00 : f32
    %643 = vector.broadcast %cst_216 : f32 to vector<16x64xf32>
    %644 = arith.maximumf %642, %643 : vector<16x64xf32>
    %645 = arith.truncf %644 : vector<16x64xf32> to vector<16x64xbf16>
    %c1_217 = arith.constant 1 : index
    %c0_218 = arith.constant 0 : index
    %c0_219 = arith.constant 0 : index
    %646 = vector.load %arg16[%c1_217, %c0_218, %c0_219] : memref<2x64x32xbf16, #tpu.memory_space<vmem>>, vector<1x64x32xbf16>
    %647 = vector.shape_cast %646 : vector<1x64x32xbf16> to vector<64x32xbf16>
    %cst_220 = arith.constant dense<0.000000e+00> : vector<16x32xf32>
    %648 = tpu.matmul %645, %647, %cst_220 {dimension_numbers = #tpu.dot_dimension_numbers<[1], [0], [0], [1], [0, 0, 1, 1], [], []>} : vector<16x64xbf16>, vector<64x32xbf16>, vector<16x32xf32> -> vector<16x32xf32>
    %c1_221 = arith.constant 1 : index
    %c0_222 = arith.constant 0 : index
    %c0_223 = arith.constant 0 : index
    %649 = vector.load %arg17[%c1_221, %c0_222, %c0_223] : memref<2x1x32xf32, #tpu.memory_space<vmem>>, vector<1x1x32xf32>
    %650 = vector.shape_cast %649 : vector<1x1x32xf32> to vector<1x32xf32>
    %651 = vector.broadcast %650 : vector<1x32xf32> to vector<16x32xf32>
    %652 = arith.addf %648, %651 : vector<16x32xf32>
    %653 = arith.addf %634, %652 : vector<16x32xf32>
    %654 = vector.extract_strided_slice %347 {offsets = [2, 0], sizes = [1, 32], strides = [1, 1]} : vector<3x32xf32> to vector<1x32xf32>
    %655 = vector.extract_strided_slice %349 {offsets = [2, 0], sizes = [1, 32], strides = [1, 1]} : vector<3x32xf32> to vector<1x32xf32>
    %cst_224 = arith.constant dense<0.000000e+00> : vector<16xf32>
    %656 = vector.multi_reduction <add>, %653, %cst_224 [1] : vector<16x32xf32> to vector<16xf32>
    %657 = vector.shape_cast %656 : vector<16xf32> to vector<16x1xf32>
    %cst_225 = arith.constant 3.200000e+01 : f32
    %658 = vector.broadcast %cst_225 : f32 to vector<16x1xf32>
    %659 = arith.divf %657, %658 : vector<16x1xf32>
    %660 = vector.broadcast %659 : vector<16x1xf32> to vector<16x32xf32>
    %661 = arith.subf %653, %660 : vector<16x32xf32>
    %662 = arith.mulf %661, %661 : vector<16x32xf32>
    %cst_226 = arith.constant dense<0.000000e+00> : vector<16xf32>
    %663 = vector.multi_reduction <add>, %662, %cst_226 [1] : vector<16x32xf32> to vector<16xf32>
    %664 = vector.shape_cast %663 : vector<16xf32> to vector<16x1xf32>
    %cst_227 = arith.constant 3.200000e+01 : f32
    %665 = vector.broadcast %cst_227 : f32 to vector<16x1xf32>
    %666 = arith.divf %664, %665 : vector<16x1xf32>
    %667 = vector.broadcast %659 : vector<16x1xf32> to vector<16x32xf32>
    %668 = arith.subf %653, %667 : vector<16x32xf32>
    %cst_228 = arith.constant 9.99999974E-6 : f32
    %669 = vector.broadcast %cst_228 : f32 to vector<16x1xf32>
    %670 = arith.addf %666, %669 : vector<16x1xf32>
    %671 = math.rsqrt %670 : vector<16x1xf32>
    %672 = vector.broadcast %671 : vector<16x1xf32> to vector<16x32xf32>
    %673 = arith.mulf %668, %672 : vector<16x32xf32>
    %674 = vector.broadcast %654 : vector<1x32xf32> to vector<16x32xf32>
    %675 = arith.mulf %673, %674 : vector<16x32xf32>
    %676 = vector.broadcast %655 : vector<1x32xf32> to vector<16x32xf32>
    %677 = arith.addf %675, %676 : vector<16x32xf32>
    %678 = arith.truncf %677 : vector<16x32xf32> to vector<16x32xbf16>
    %c0_229 = arith.constant 0 : index
    %c0_230 = arith.constant 0 : index
    %679 = vector.load %arg20[%c0_229, %c0_230] : memref<32x128xbf16, #tpu.memory_space<vmem>>, vector<32x128xbf16>
    %cst_231 = arith.constant dense<0.000000e+00> : vector<16x128xf32>
    %680 = tpu.matmul %678, %679, %cst_231 {dimension_numbers = #tpu.dot_dimension_numbers<[1], [0], [0], [1], [0, 0, 1, 1], [], []>} : vector<16x32xbf16>, vector<32x128xbf16>, vector<16x128xf32> -> vector<16x128xf32>
    %681 = vector.shape_cast %680 : vector<16x128xf32> to vector<2x8x128xf32>
    %c0_232 = arith.constant 0 : index
    %c0_233 = arith.constant 0 : index
    %c0_234 = arith.constant 0 : index
    %682 = vector.load %arg21[%c0_232, %c0_233, %c0_234] : memref<2x8x128xf32, #tpu.memory_space<vmem>>, vector<2x8x128xf32>
    tpu.vector_store %arg21[%c0_232, %c0_233, %c0_234], %681 {strides = array<i32>} : memref<2x8x128xf32, #tpu.memory_space<vmem>>, vector<2x8x128xf32>,
    %cst_235 = arith.constant dense<0xFF800000> : vector<16xf32>
    %683 = vector.multi_reduction <maximumf>, %677, %cst_235 [1] : vector<16x32xf32> to vector<16xf32>
    %684 = vector.shape_cast %683 : vector<16xf32> to vector<16x1xf32>
    %685 = vector.broadcast %684 : vector<16x1xf32> to vector<16x32xf32>
    %686 = arith.subf %677, %685 : vector<16x32xf32>
    %687 = math.exp %686 : vector<16x32xf32>
    %cst_236 = arith.constant dense<0.000000e+00> : vector<16xf32>
    %688 = vector.multi_reduction <add>, %687, %cst_236 [1] : vector<16x32xf32> to vector<16xf32>
    %689 = vector.shape_cast %688 : vector<16xf32> to vector<16x1xf32>
    %690 = vector.broadcast %689 : vector<16x1xf32> to vector<16x32xf32>
    %691 = arith.divf %687, %690 : vector<16x32xf32>
    %692 = vector.shape_cast %691 : vector<16x32xf32> to vector<2x8x32xf32>
    %c0_237 = arith.constant 0 : index
    %c0_238 = arith.constant 0 : index
    %c0_239 = arith.constant 0 : index
    %693 = vector.load %arg22[%c0_237, %c0_238, %c0_239] : memref<2x8x32xf32, #tpu.memory_space<vmem>>, vector<2x8x32xf32>
    tpu.vector_store %arg22[%c0_237, %c0_238, %c0_239], %692 {strides = array<i32>} : memref<2x8x32xf32, #tpu.memory_space<vmem>>, vector<2x8x32xf32>,
    return
  }
  func.func @transform_0(%arg0: i32) -> (i32, i32, i32) {
    %c0_i32 = arith.constant 0 : i32
    %c0_i32_0 = arith.constant 0 : i32
    %c0_i32_1 = arith.constant 0 : i32
    return %arg0, %c0_i32, %c0_i32_0 : i32, i32, i32
  }
  func.func @transform_1(%arg0: i32) -> (i32, i32) {
    %c0_i32 = arith.constant 0 : i32
    %c0_i32_0 = arith.constant 0 : i32
    %c0_i32_1 = arith.constant 0 : i32
    return %c0_i32, %c0_i32_0 : i32, i32
  }
  func.func @transform_2(%arg0: i32) -> (i32, i32, i32) {
    %c0_i32 = arith.constant 0 : i32
    %c0_i32_0 = arith.constant 0 : i32
    %c0_i32_1 = arith.constant 0 : i32
    return %arg0, %c0_i32, %c0_i32_0 : i32, i32, i32
  }
  func.func @transform_3(%arg0: i32) -> (i32, i32, i32) {
    %c0_i32 = arith.constant 0 : i32
    %c0_i32_0 = arith.constant 0 : i32
    %c0_i32_1 = arith.constant 0 : i32
    %c0_i32_2 = arith.constant 0 : i32
    return %c0_i32, %c0_i32_0, %c0_i32_1 : i32, i32, i32
  }
  func.func @transform_4(%arg0: i32) -> (i32, i32, i32) {
    %c0_i32 = arith.constant 0 : i32
    %c0_i32_0 = arith.constant 0 : i32
    %c0_i32_1 = arith.constant 0 : i32
    %c0_i32_2 = arith.constant 0 : i32
    return %c0_i32, %c0_i32_0, %c0_i32_1 : i32, i32, i32
  }
  func.func @transform_5(%arg0: i32) -> (i32, i32, i32) {
    %c0_i32 = arith.constant 0 : i32
    %c0_i32_0 = arith.constant 0 : i32
    %c0_i32_1 = arith.constant 0 : i32
    %c0_i32_2 = arith.constant 0 : i32
    return %c0_i32, %c0_i32_0, %c0_i32_1 : i32, i32, i32
  }
  func.func @transform_6(%arg0: i32) -> (i32, i32, i32) {
    %c0_i32 = arith.constant 0 : i32
    %c0_i32_0 = arith.constant 0 : i32
    %c0_i32_1 = arith.constant 0 : i32
    %c0_i32_2 = arith.constant 0 : i32
    return %c0_i32, %c0_i32_0, %c0_i32_1 : i32, i32, i32
  }
  func.func @transform_7(%arg0: i32) -> (i32, i32, i32) {
    %c0_i32 = arith.constant 0 : i32
    %c0_i32_0 = arith.constant 0 : i32
    %c0_i32_1 = arith.constant 0 : i32
    %c0_i32_2 = arith.constant 0 : i32
    return %c0_i32, %c0_i32_0, %c0_i32_1 : i32, i32, i32
  }
  func.func @transform_8(%arg0: i32) -> (i32, i32, i32) {
    %c0_i32 = arith.constant 0 : i32
    %c0_i32_0 = arith.constant 0 : i32
    %c0_i32_1 = arith.constant 0 : i32
    %c0_i32_2 = arith.constant 0 : i32
    return %c0_i32, %c0_i32_0, %c0_i32_1 : i32, i32, i32
  }
  func.func @transform_9(%arg0: i32) -> (i32, i32, i32) {
    %c0_i32 = arith.constant 0 : i32
    %c0_i32_0 = arith.constant 0 : i32
    %c0_i32_1 = arith.constant 0 : i32
    %c0_i32_2 = arith.constant 0 : i32
    return %c0_i32, %c0_i32_0, %c0_i32_1 : i32, i32, i32
  }
  func.func @transform_10(%arg0: i32) -> (i32, i32, i32) {
    %c0_i32 = arith.constant 0 : i32
    %c0_i32_0 = arith.constant 0 : i32
    %c0_i32_1 = arith.constant 0 : i32
    %c0_i32_2 = arith.constant 0 : i32
    return %c0_i32, %c0_i32_0, %c0_i32_1 : i32, i32, i32
  }
  func.func @transform_11(%arg0: i32) -> (i32, i32, i32) {
    %c0_i32 = arith.constant 0 : i32
    %c0_i32_0 = arith.constant 0 : i32
    %c0_i32_1 = arith.constant 0 : i32
    %c0_i32_2 = arith.constant 0 : i32
    return %c0_i32, %c0_i32_0, %c0_i32_1 : i32, i32, i32
  }
  func.func @transform_12(%arg0: i32) -> (i32, i32, i32) {
    %c0_i32 = arith.constant 0 : i32
    %c0_i32_0 = arith.constant 0 : i32
    %c0_i32_1 = arith.constant 0 : i32
    %c0_i32_2 = arith.constant 0 : i32
    return %c0_i32, %c0_i32_0, %c0_i32_1 : i32, i32, i32
  }
  func.func @transform_13(%arg0: i32) -> (i32, i32, i32) {
    %c0_i32 = arith.constant 0 : i32
    %c0_i32_0 = arith.constant 0 : i32
    %c0_i32_1 = arith.constant 0 : i32
    %c0_i32_2 = arith.constant 0 : i32
    return %c0_i32, %c0_i32_0, %c0_i32_1 : i32, i32, i32
  }
  func.func @transform_14(%arg0: i32) -> (i32, i32, i32) {
    %c0_i32 = arith.constant 0 : i32
    %c0_i32_0 = arith.constant 0 : i32
    %c0_i32_1 = arith.constant 0 : i32
    %c0_i32_2 = arith.constant 0 : i32
    return %c0_i32, %c0_i32_0, %c0_i32_1 : i32, i32, i32
  }
  func.func @transform_15(%arg0: i32) -> (i32, i32, i32) {
    %c0_i32 = arith.constant 0 : i32
    %c0_i32_0 = arith.constant 0 : i32
    %c0_i32_1 = arith.constant 0 : i32
    %c0_i32_2 = arith.constant 0 : i32
    return %c0_i32, %c0_i32_0, %c0_i32_1 : i32, i32, i32
  }
  func.func @transform_16(%arg0: i32) -> (i32, i32, i32) {
    %c0_i32 = arith.constant 0 : i32
    %c0_i32_0 = arith.constant 0 : i32
    %c0_i32_1 = arith.constant 0 : i32
    %c0_i32_2 = arith.constant 0 : i32
    return %c0_i32, %c0_i32_0, %c0_i32_1 : i32, i32, i32
  }
  func.func @transform_17(%arg0: i32) -> (i32, i32, i32) {
    %c0_i32 = arith.constant 0 : i32
    %c0_i32_0 = arith.constant 0 : i32
    %c0_i32_1 = arith.constant 0 : i32
    %c0_i32_2 = arith.constant 0 : i32
    return %c0_i32, %c0_i32_0, %c0_i32_1 : i32, i32, i32
  }
  func.func @transform_18(%arg0: i32) -> (i32, i32, i32) {
    %c0_i32 = arith.constant 0 : i32
    %c0_i32_0 = arith.constant 0 : i32
    %c0_i32_1 = arith.constant 0 : i32
    %c0_i32_2 = arith.constant 0 : i32
    return %c0_i32, %c0_i32_0, %c0_i32_1 : i32, i32, i32
  }
  func.func @transform_19(%arg0: i32) -> (i32, i32) {
    %c0_i32 = arith.constant 0 : i32
    %c0_i32_0 = arith.constant 0 : i32
    %c0_i32_1 = arith.constant 0 : i32
    return %c0_i32, %c0_i32_0 : i32, i32
  }
  func.func @transform_20(%arg0: i32) -> (i32, i32, i32) {
    %c0_i32 = arith.constant 0 : i32
    %c0_i32_0 = arith.constant 0 : i32
    %c0_i32_1 = arith.constant 0 : i32
    return %arg0, %c0_i32, %c0_i32_0 : i32, i32, i32
  }
  func.func @transform_21(%arg0: i32) -> (i32, i32, i32) {
    %c0_i32 = arith.constant 0 : i32
    %c0_i32_0 = arith.constant 0 : i32
    %c0_i32_1 = arith.constant 0 : i32
    return %arg0, %c0_i32, %c0_i32_0 : i32, i32, i32
  }
}

</mosaic_0001>

<bundles_post_ra>
// kernel: tpu_custom_call.1
= control target key start
LH: loop header
LB: loop body
LE: loop exit
PB: predicated region body
PF: predicated region fallthrough
CT: control target
= control target key end

     0   :  { %s8137_s0 = inlined_call_operand.hbm [shape: f32[2,8,32], index: 0, kind: input, shape index: {}]   ;;  %s8138_s1 = inlined_call_operand.hbm [shape: f32[8,32], index: 1, kind: input, shape index: {}]   ;;  %s8139_s2 = inlined_call_operand.hbm [shape: f32[2,8,32], index: 2, kind: input, shape index: {}]   ;;  %s8140_s3 = inlined_call_operand.vmem [shape: bf16[2,32,96], index: 3, kind: input, shape index: {}]   ;;  %s8141_s4 = inlined_call_operand.hbm [shape: f32[2,1,96], index: 4, kind: input, shape index: {}]   ;;  %s8142_s5 = inlined_call_operand.vmem [shape: bf16[2,32,32], index: 5, kind: input, shape index: {}]   ;;  %s8143_s6 = inlined_call_operand.hbm [shape: f32[2,1,32], index: 6, kind: input, shape index: {}]   ;;  %s8144_s7 = inlined_call_operand.vmem [shape: bf16[2,32,32], index: 7, kind: input, shape index: {}]   ;;  %s8145_s8 = inlined_call_operand.hbm [shape: f32[2,1,32], index: 8, kind: input, shape index: {}]   ;;  %s8146_s9 = inlined_call_operand.vmem [shape: bf16[2,32,64], index: 9, kind: input, shape index: {}]   ;;  %s8147_s10 = inlined_call_operand.hbm [shape: f32[2,1,64], index: 10, kind: input, shape index: {}]   ;;  %s8148_s11 = inlined_call_operand.hbm [shape: bf16[2,32,32], index: 11, kind: input, shape index: {}]   ;;  %s8149_s12 = inlined_call_operand.hbm [shape: f32[2,1,32], index: 12, kind: input, shape index: {}]   ;;  %s8150_s13 = inlined_call_operand.hbm [shape: bf16[2,32,64], index: 13, kind: input, shape index: {}]   ;;  %s8151_s14 = inlined_call_operand.hbm [shape: f32[2,1,64], index: 14, kind: input, shape index: {}]   ;;  %s8152_s15 = inlined_call_operand.vmem [shape: bf16[2,64,32], index: 15, kind: input, shape index: {}]   ;;  %s8153_s16 = inlined_call_operand.hbm [shape: f32[2,1,32], index: 16, kind: input, shape index: {}]   ;;  %s8154_s17 = inlined_call_operand.vmem [shape: f32[2,3,32], index: 17, kind: input, shape index: {}]   ;;  %s8155_s18 = inlined_call_operand.vmem [shape: f32[2,3,32], index: 18, kind: input, shape index: {}]   ;;  %s8156_s19 = inlined_call_operand.vmem [shape: bf16[32,128], index: 19, kind: input, shape index: {}]   ;;  %s8157_s20 = inlined_call_operand.hbm [shape: f32[2,8,128], index: 20, kind: output, shape index: {0}]   ;;  %s8158_s21 = inlined_call_operand.hbm [shape: f32[2,8,32], index: 21, kind: output, shape index: {1}]  }
   0x1   :  { %8169 = sst [smem:[#allocation34_spill]] %s8137_s0 }
   0x2   :  { %8170 = sst [smem:[#allocation35_spill]] %s8138_s1 }
   0x3   :  { %8171 = sst [smem:[#allocation36_spill]] %s8139_s2 }
   0x4   :  { %8172 = sst [smem:[#allocation37_spill]] %s8140_s3 }
   0x5   :  { %8173 = sst [smem:[#allocation38_spill]] %s8141_s4 }
   0x6   :  { %8174 = sst [smem:[#allocation39_spill]] %s8142_s5 }
   0x7   :  { %8175 = sst [smem:[#allocation40_spill]] %s8157_s20 }
   0x8   :  { %8176 = sst [smem:[#allocation41_spill]] %s8158_s21 }
   0x9   :  { %27 = vsyncpa [#allocation3], 0 }
   0xa   :  { %28 = vsyncpa [#allocation6], 0 }
   0xb   :  { %29 = vsyncpa [#allocation9], 0 }
   0xc   :  { %30 = vsyncpa [#allocation12], 0 }
   0xd   :  { %31 = vsyncpa [#allocation15], 0 }
   0xe   :  { %32 = vsyncpa [#allocation18], 0 }
   0xf   :  { %33 = vsyncpa [#allocation21], 0 }
  0x10   :  { %34 = vsyncpa [#allocation4], 0 }
  0x11   :  { %35 = vsyncpa [#allocation24], 0  ;;  %s6765_s2 = smov [#allocation5]   ;;  %s6766_s26 = smov [#allocation8]  }
  0x12   :  { %s54_s25 = sshll.u32 %s6765_s2, 4  ;;  %s77_s27 = sshll.u32 %s6766_s26, 4  ;;  %s55_s25 = int_to_ptr.vmem [resolvable:$true] %s54_s25  ;;  %s6909_s27 = int_to_ptr.vmem [resolvable:$true] %s77_s27 }
  0x13   :  { %s8177_s29 = sld [smem:[#allocation35_spill]] }
  0x19   :  { %s6439_s0 = scalar_lea.hbm %s8177_s29, 128 }
  0x1a   :  { %p6440_p0 = scmp.ne.s32.totalorder %s8177_s29, %s6439_s0  ;;  %p6443_p1 = scmp.lt.u32.totalorder %s6439_s0, %s8177_s29 }
  0x1c   :  { %p6445_p2 = pnand %p6443_p1, %p6440_p0 }
  0x1e   :  { %6448 = shalt.err (!%p6445_p2)
}
  0x1f   :  { %s6449_s23 = scalar_lea.vmem %s55_s25, 128  ;;  %p6454_p4 = scmp.lt.s32.totalorder %s55_s25, %s55_s25 }
  0x20   :  { %p6450_p3 = scmp.ne.s32.totalorder %s55_s25, %s6449_s23  ;;  %p6455_p5 = scmp.lt.s32.totalorder %s6449_s23, %s6449_s23 }
  0x22   :  { %p6456_p6 = por %p6455_p5, %p6454_p4 }
  0x24   :  { %p6457_p7 = pnand %p6456_p6, %p6450_p3 }
  0x26   :  { %6460 = shalt.err (!%p6457_p7)
}
  0x27   :  { %57 = dma.hbm_to_vmem [thread:$0]  %s8177_s29, 128, %s55_s25, [#allocation6]  }
  0x28   :  { %s8178_s3 = sld [smem:[#allocation38_spill]] }
  0x2e   :  { %s6461_s28 = scalar_lea.hbm %s8178_s3, 32 }
  0x2f   :  { %p6462_p8 = scmp.ne.s32.totalorder %s8178_s3, %s6461_s28  ;;  %p6465_p9 = scmp.lt.u32.totalorder %s6461_s28, %s8178_s3 }
  0x31   :  { %p6467_p10 = pnand %p6465_p9, %p6462_p8 }
  0x33   :  { %6470 = shalt.err (!%p6467_p10)
}
  0x34   :  { %s6471_s22 = scalar_lea.vmem %s6909_s27, 32  ;;  %p6476_p12 = scmp.lt.s32.totalorder %s6909_s27, %s6909_s27 }
  0x35   :  { %p6472_p11 = scmp.ne.s32.totalorder %s6909_s27, %s6471_s22  ;;  %p6477_p13 = scmp.lt.s32.totalorder %s6471_s22, %s6471_s22 }
  0x37   :  { %p6478_p0 = por %p6477_p13, %p6476_p12 }
  0x39   :  { %p6479_p1 = pnand %p6478_p0, %p6472_p11 }
  0x3b   :  { %6482 = shalt.err (!%p6479_p1)
}
  0x3c   :  { %s6767_s25 = smov 16   ;;  %s6768_s29 = smov 1  }
  0x3d   :  { %83 = dma.hbm_to_vmem [thread:$0]  %s8178_s3, 32, %s6909_s27, [#allocation9], %s6767_s25, %s6767_s25, %s6768_s29  }
  0x3e   :  { %s6769_s24 = smov [#allocation11]   ;;  %s6770_s26 = smov [#allocation14]  }
  0x3f   :  { %s105_s2 = sshll.u32 %s6769_s24, 4  ;;  %s131_s28 = sshll.u32 %s6770_s26, 4  ;;  %s106_s2 = int_to_ptr.vmem [resolvable:$true] %s105_s2  ;;  %s6943_s28 = int_to_ptr.vmem [resolvable:$true] %s131_s28 }
  0x40   :  { %s6483_s0 = scalar_lea.hbm %s8145_s8, 32 }
  0x41   :  { %p6484_p2 = scmp.ne.s32.totalorder %s8145_s8, %s6483_s0  ;;  %p6487_p3 = scmp.lt.u32.totalorder %s6483_s0, %s8145_s8 }
  0x43   :  { %p6489_p4 = pnand %p6487_p3, %p6484_p2 }
  0x45   :  { %6492 = shalt.err (!%p6489_p4)
}
  0x46   :  { %s6493_s27 = scalar_lea.vmem %s106_s2, 32  ;;  %p6498_p6 = scmp.lt.s32.totalorder %s106_s2, %s106_s2 }
  0x47   :  { %p6494_p5 = scmp.ne.s32.totalorder %s106_s2, %s6493_s27  ;;  %p6499_p7 = scmp.lt.s32.totalorder %s6493_s27, %s6493_s27 }
  0x49   :  { %p6500_p8 = por %p6499_p7, %p6498_p6 }
  0x4b   :  { %p6501_p9 = pnand %p6500_p8, %p6494_p5 }
  0x4d   :  { %6504 = shalt.err (!%p6501_p9)
}
  0x4e   :  { %111 = dma.hbm_to_vmem [thread:$0]  %s8145_s8, 32, %s106_s2, [#allocation12], %s6767_s25, %s6767_s25, %s6768_s29  }
  0x4f   :  { %s6505_s20 = scalar_lea.hbm %s8148_s11, 512 }
  0x50   :  { %p6506_p10 = scmp.ne.s32.totalorder %s8148_s11, %s6505_s20  ;;  %p6509_p11 = scmp.lt.u32.totalorder %s6505_s20, %s8148_s11 }
  0x52   :  { %p6511_p12 = pnand %p6509_p11, %p6506_p10 }
  0x54   :  { %6514 = shalt.err (!%p6511_p12)
}
  0x55   :  { %s6515_s0 = scalar_lea.vmem %s6943_s28, 512  ;;  %p6520_p0 = scmp.lt.s32.totalorder %s6943_s28, %s6943_s28 }
  0x56   :  { %p6516_p13 = scmp.ne.s32.totalorder %s6943_s28, %s6515_s0  ;;  %p6521_p1 = scmp.lt.s32.totalorder %s6515_s0, %s6515_s0 }
  0x58   :  { %p6522_p2 = por %p6521_p1, %p6520_p0 }
  0x5a   :  { %p6523_p3 = pnand %p6522_p2, %p6516_p13 }
  0x5c   :  { %6526 = shalt.err (!%p6523_p3)
}
  0x5d   :  { %s8167_s8 = smov 64   ;;  %s6772_s2 = smov 4  }
  0x5e   :  { %137 = dma.hbm_to_vmem [thread:$0]  %s8148_s11, 512, %s6943_s28, [#allocation15], %s8167_s8, %s8167_s8, %s6772_s2  }
  0x5f   :  { %s6773_s27 = smov [#allocation17]   ;;  %s6774_s23 = smov [#allocation2]  }
  0x60   :  { %s155_s3 = sshll.u32 %s6773_s27, 4  ;;  %s41_s1 = sshll.u32 %s6774_s23, 4  ;;  %s156_s3 = int_to_ptr.vmem [resolvable:$true] %s155_s3  ;;  %s6979_s1 = int_to_ptr.vmem [resolvable:$true] %s41_s1 }
  0x61   :  { %s6527_s21 = scalar_lea.hbm %s8150_s13, 512 }
  0x62   :  { %p6528_p4 = scmp.ne.s32.totalorder %s8150_s13, %s6527_s21  ;;  %p6531_p5 = scmp.lt.u32.totalorder %s6527_s21, %s8150_s13 }
  0x64   :  { %p6533_p6 = pnand %p6531_p5, %p6528_p4 }
  0x66   :  { %6536 = shalt.err (!%p6533_p6)
}
  0x67   :  { %s6537_s11 = scalar_lea.vmem %s156_s3, 512  ;;  %p6542_p8 = scmp.lt.s32.totalorder %s156_s3, %s156_s3 }
  0x68   :  { %p6538_p7 = scmp.ne.s32.totalorder %s156_s3, %s6537_s11  ;;  %p6543_p9 = scmp.lt.s32.totalorder %s6537_s11, %s6537_s11 }
  0x6a   :  { %p6544_p10 = por %p6543_p9, %p6542_p8 }
  0x6c   :  { %p6545_p11 = pnand %p6544_p10, %p6538_p7 }
  0x6e   :  { %6548 = shalt.err (!%p6545_p11)
}
  0x6f   :  { %161 = dma.hbm_to_vmem [thread:$0]  %s8150_s13, 512, %s156_s3, [#allocation18], %s8167_s8, %s8167_s8, %s6772_s2  }
  0x70   :  { %s8179_s23 = sld [smem:[#allocation34_spill]] }
  0x76   :  { %s6549_s24 = scalar_lea.hbm %s8179_s23, 256 }
  0x77   :  { %p6550_p12 = scmp.ne.s32.totalorder %s8179_s23, %s6549_s24  ;;  %p6553_p13 = scmp.lt.u32.totalorder %s6549_s24, %s8179_s23 }
  0x79   :  { %p6555_p0 = pnand %p6553_p13, %p6550_p12 }
  0x7b   :  { %6558 = shalt.err (!%p6555_p0)
}
  0x7c   :  { %s6559_s30 = scalar_lea.vmem %s6979_s1, 256  ;;  %p6564_p2 = scmp.lt.s32.totalorder %s6979_s1, %s6979_s1 }
  0x7d   :  { %p6560_p1 = scmp.ne.s32.totalorder %s6979_s1, %s6559_s30  ;;  %p6565_p3 = scmp.lt.s32.totalorder %s6559_s30, %s6559_s30 }
  0x7f   :  { %p6566_p4 = por %p6565_p3, %p6564_p2 }
  0x81   :  { %p6567_p5 = pnand %p6566_p4, %p6560_p1 }
  0x83   :  { %6570 = shalt.err (!%p6567_p5)
}
  0x84   :  { %s6775_s13 = smov 128   ;;  %s6776_s2 = smov 8  }
  0x85   :  { %47 = dma.hbm_to_vmem [thread:$0]  %s8179_s23, 256, %s6979_s1, [#allocation3], %s6775_s13, %s6775_s13, %s6776_s2  }
  0x86   :  { %s6777_s11 = smov [#allocation7]   ;;  %s6778_s5 = smov [#allocation10]  }
  0x87   :  { %s63_s28 = sshll.u32 %s6777_s11, 4  ;;  %s91_s22 = sshll.u32 %s6778_s5, 4  ;;  %s64_s28 = int_to_ptr.vmem [resolvable:$true] %s63_s28  ;;  %s7015_s22 = int_to_ptr.vmem [resolvable:$true] %s91_s22 }
  0x88   :  { %s8180_s20 = sld [smem:[#allocation36_spill]] }
  0x8e   :  { %s6571_s21 = scalar_lea.hbm %s8180_s20, 256 }
  0x8f   :  { %p6572_p6 = scmp.ne.s32.totalorder %s8180_s20, %s6571_s21  ;;  %p6575_p7 = scmp.lt.u32.totalorder %s6571_s21, %s8180_s20 }
  0x91   :  { %p6577_p8 = pnand %p6575_p7, %p6572_p6 }
  0x93   :  { %6580 = shalt.err (!%p6577_p8)
}
  0x94   :  { %s6581_s1 = scalar_lea.vmem %s64_s28, 256  ;;  %p6586_p10 = scmp.lt.s32.totalorder %s64_s28, %s64_s28 }
  0x95   :  { %p6582_p9 = scmp.ne.s32.totalorder %s64_s28, %s6581_s1  ;;  %p6587_p11 = scmp.lt.s32.totalorder %s6581_s1, %s6581_s1 }
  0x97   :  { %p6588_p12 = por %p6587_p11, %p6586_p10 }
  0x99   :  { %p6589_p13 = pnand %p6588_p12, %p6582_p9 }
  0x9b   :  { %6592 = shalt.err (!%p6589_p13)
}
  0x9c   :  { %69 = dma.hbm_to_vmem [thread:$0]  %s8180_s20, 256, %s64_s28, [#allocation6], %s6775_s13, %s6775_s13, %s6776_s2  }
  0x9d   :  { %s6593_s8 = scalar_lea.hbm %s8143_s6, 32 }
  0x9e   :  { %p6594_p0 = scmp.ne.s32.totalorder %s8143_s6, %s6593_s8  ;;  %p6597_p1 = scmp.lt.u32.totalorder %s6593_s8, %s8143_s6 }
  0xa0   :  { %p6599_p2 = pnand %p6597_p1, %p6594_p0 }
  0xa2   :  { %6602 = shalt.err (!%p6599_p2)
}
  0xa3   :  { %s6603_s26 = scalar_lea.vmem %s7015_s22, 32  ;;  %p6608_p4 = scmp.lt.s32.totalorder %s7015_s22, %s7015_s22 }
  0xa4   :  { %p6604_p3 = scmp.ne.s32.totalorder %s7015_s22, %s6603_s26  ;;  %p6609_p5 = scmp.lt.s32.totalorder %s6603_s26, %s6603_s26 }
  0xa6   :  { %p6610_p6 = por %p6609_p5, %p6608_p4 }
  0xa8   :  { %p6611_p7 = pnand %p6610_p6, %p6604_p3 }
  0xaa   :  { %6614 = shalt.err (!%p6611_p7)
}
  0xab   :  { %97 = dma.hbm_to_vmem [thread:$0]  %s8143_s6, 32, %s7015_s22, [#allocation9], %s6767_s25, %s6767_s25, %s6768_s29  }
  0xac   :  { %s6779_s4 = smov [#allocation13]   ;;  %s6780_s1 = smov [#allocation16]  }
  0xad   :  { %s119_s30 = sshll.u32 %s6779_s4, 4  ;;  %s143_s23 = sshll.u32 %s6780_s1, 4  ;;  %s120_s30 = int_to_ptr.vmem [resolvable:$true] %s119_s30  ;;  %s7052_s23 = int_to_ptr.vmem [resolvable:$true] %s143_s23 }
  0xae   :  { %s6615_s11 = scalar_lea.hbm %s8147_s10, 32 }
  0xaf   :  { %p6616_p8 = scmp.ne.s32.totalorder %s8147_s10, %s6615_s11  ;;  %p6619_p9 = scmp.lt.u32.totalorder %s6615_s11, %s8147_s10 }
  0xb1   :  { %p6621_p10 = pnand %p6619_p9, %p6616_p8 }
  0xb3   :  { %6624 = shalt.err (!%p6621_p10)
}
  0xb4   :  { %s6625_s6 = scalar_lea.vmem %s120_s30, 32  ;;  %p6630_p12 = scmp.lt.s32.totalorder %s120_s30, %s120_s30 }
  0xb5   :  { %p6626_p11 = scmp.ne.s32.totalorder %s120_s30, %s6625_s6  ;;  %p6631_p13 = scmp.lt.s32.totalorder %s6625_s6, %s6625_s6 }
  0xb7   :  { %p6632_p0 = por %p6631_p13, %p6630_p12 }
  0xb9   :  { %p6633_p1 = pnand %p6632_p0, %p6626_p11 }
  0xbb   :  { %6636 = shalt.err (!%p6633_p1)
}
  0xbc   :  { %125 = dma.hbm_to_vmem [thread:$0]  %s8147_s10, 32, %s120_s30, [#allocation12], %s6767_s25, %s6767_s25, %s6768_s29  }
  0xbd   :  { %s6637_s20 = scalar_lea.hbm %s8149_s12, 32 }
  0xbe   :  { %p6638_p2 = scmp.ne.s32.totalorder %s8149_s12, %s6637_s20  ;;  %p6641_p3 = scmp.lt.u32.totalorder %s6637_s20, %s8149_s12 }
  0xc0   :  { %p6643_p4 = pnand %p6641_p3, %p6638_p2 }
  0xc2   :  { %6646 = shalt.err (!%p6643_p4)
}
  0xc3   :  { %s6647_s11 = scalar_lea.vmem %s7052_s23, 32  ;;  %p6652_p6 = scmp.lt.s32.totalorder %s7052_s23, %s7052_s23 }
  0xc4   :  { %p6648_p5 = scmp.ne.s32.totalorder %s7052_s23, %s6647_s11  ;;  %p6653_p7 = scmp.lt.s32.totalorder %s6647_s11, %s6647_s11 }
  0xc6   :  { %p6654_p8 = por %p6653_p7, %p6652_p6 }
  0xc8   :  { %p6655_p9 = pnand %p6654_p8, %p6648_p5 }
  0xca   :  { %6658 = shalt.err (!%p6655_p9)
}
  0xcb   :  { %149 = dma.hbm_to_vmem [thread:$0]  %s8149_s12, 32, %s7052_s23, [#allocation15], %s6767_s25, %s6767_s25, %s6768_s29  }
  0xcc   :  { %s6781_s8 = smov [#allocation19]   ;;  %s6782_s27 = smov [#allocation20]  }
  0xcd   :  { %s167_s5 = sshll.u32 %s6781_s8, 4  ;;  %s181_s24 = sshll.u32 %s6782_s27, 4  ;;  %s168_s5 = int_to_ptr.vmem [resolvable:$true] %s167_s5  ;;  %s7089_s24 = int_to_ptr.vmem [resolvable:$true] %s181_s24 }
  0xce   :  { %s6659_s21 = scalar_lea.hbm %s8151_s14, 32 }
  0xcf   :  { %p6660_p10 = scmp.ne.s32.totalorder %s8151_s14, %s6659_s21  ;;  %p6663_p11 = scmp.lt.u32.totalorder %s6659_s21, %s8151_s14 }
  0xd1   :  { %p6665_p12 = pnand %p6663_p11, %p6660_p10 }
  0xd3   :  { %6668 = shalt.err (!%p6665_p12)
}
  0xd4   :  { %s6669_s12 = scalar_lea.vmem %s168_s5, 32  ;;  %p6674_p0 = scmp.lt.s32.totalorder %s168_s5, %s168_s5 }
  0xd5   :  { %p6670_p13 = scmp.ne.s32.totalorder %s168_s5, %s6669_s12  ;;  %p6675_p1 = scmp.lt.s32.totalorder %s6669_s12, %s6669_s12 }
  0xd7   :  { %p6676_p2 = por %p6675_p1, %p6674_p0 }
  0xd9   :  { %p6677_p3 = pnand %p6676_p2, %p6670_p13 }
  0xdb   :  { %6680 = shalt.err (!%p6677_p3)
}
  0xdc   :  { %173 = dma.hbm_to_vmem [thread:$0]  %s8151_s14, 32, %s168_s5, [#allocation18], %s6767_s25, %s6767_s25, %s6768_s29  }
  0xdd   :  { %s6681_s11 = scalar_lea.hbm %s8153_s16, 32 }
  0xde   :  { %p6682_p4 = scmp.ne.s32.totalorder %s8153_s16, %s6681_s11  ;;  %p6685_p5 = scmp.lt.u32.totalorder %s6681_s11, %s8153_s16 }
  0xe0   :  { %p6687_p6 = pnand %p6685_p5, %p6682_p4 }
  0xe2   :  { %6690 = shalt.err (!%p6687_p6)
}
  0xe3   :  { %s6691_s6 = scalar_lea.vmem %s7089_s24, 32  ;;  %p6696_p8 = scmp.lt.s32.totalorder %s7089_s24, %s7089_s24 }
  0xe4   :  { %p6692_p7 = scmp.ne.s32.totalorder %s7089_s24, %s6691_s6  ;;  %p6697_p9 = scmp.lt.s32.totalorder %s6691_s6, %s6691_s6 }
  0xe6   :  { %p6698_p10 = por %p6697_p9, %p6696_p8 }
  0xe8   :  { %p6699_p11 = pnand %p6698_p10, %p6692_p7 }
  0xea   :  { %6702 = shalt.err (!%p6699_p11)
}
  0xeb   :  { %187 = dma.hbm_to_vmem [thread:$0]  %s8153_s16, 32, %s7089_s24, [#allocation21], %s6767_s25, %s6767_s25, %s6768_s29  }
  0xec   :  { %6747 = dma.done.wait [#allocation3], 256  }
  0xed   :  { %6748 = vsyncadd [#allocation3], 4294967040 }
  0xee   :  { %6749 = dma.done.wait [#allocation6], 384  }
  0xef   :  { %6750 = vsyncadd [#allocation6], 4294966912 }
  0xf0   :  { %6751 = dma.done.wait [#allocation9], 64  }
  0xf1   :  { %6752 = vsyncadd [#allocation9], 4294967232 }
  0xf2   :  { %6753 = dma.done.wait [#allocation12], 64  }
  0xf3   :  { %6754 = vsyncadd [#allocation12], 4294967232 }
  0xf4   :  { %6755 = dma.done.wait [#allocation15], 544  }
  0xf5   :  { %6756 = vsyncadd [#allocation15], 4294966752 }
  0xf6   :  { %6757 = dma.done.wait [#allocation18], 544  }
  0xf7   :  { %6758 = vsyncadd [#allocation18], 4294966752 }
  0xf8   :  { %6759 = dma.done.wait [#allocation21], 32  }
  0xf9   :  { %6760 = vsyncadd [#allocation21], 4294967264  ;;  %v6783_v0 = vmov 0.0   ;;  %vm6784_vm0 = vmmov 0   ;;  %s8181_s24 = sld [smem:[#allocation37_spill]]  ;;  %v231_v3 = vld [vmem:[#allocation2] sm:$0xff]  ;;  %v238_v22 = vlaneseq }
  0xfa   :  { %5639 = vmatprep.subr.bf16.mxu0 %v6783_v0  ;;  %5643 = vmatprep.mubr.msk.bf16.mxu0 %vm6784_vm0, %v6783_v0  ;;  %v232_v4 = vld [vmem:[#allocation2 + $0x8] sm:$0xff]  ;;  %v233_v5 = vld [vmem:[#allocation5] sm:$0xff]  ;;  %vm270_vm1 = vcmask 261120   ;;  %s6785_s26 = smov 96   ;;  %vm320_vm2 = vcmask 64512   ;;  %s8182_s28 = smov 64  }
  0xfb   :  { %5647 = vmatprep.subr.bf16.mxu1 %v6783_v0  ;;  %5649 = vmatprep.mubr.msk.bf16.mxu1 %vm6784_vm0, %v6783_v0  ;;  %v7139_v6 = vadd.f32 %v233_v5, %v231_v3  ;;  %v7141_v7 = vadd.f32 %v233_v5, %v232_v4  ;;  %v5309_v9 = vld [vmem:[#allocation8] ss:$0 sm:$0xff]  ;;  %v7169_v23 = vshrl.u32 %v238_v22, 7  ;;  %v241_v24 = vand.u32 127, %v238_v22  ;;  %s6787_s20 = smov 88   ;;  %s6788_s4 = smov 120  }
  0xfc   :  { %v6786_v26 = vmov -1e+09   ;;  %vm449_vm4 = vcmask 1043456   ;;  %s6789_s12 = smov 56   ;;  %s6790_s23 = smov 80   ;;  %vm1239_vm5 = vcmask 130048  }
  0xfd   :  { %v246_v8 = vpack.c.bf16 %v7141_v7, %v7139_v6  ;;  %vm242_vm3 = vcmp.le.s32.totalorder %v241_v24, %v7169_v23  ;;  %s6791_s1 = smov 112   ;;  %s6792_s3 = smov 48   ;;  %vm1242_vm6 = vcmask 195584   ;;  %vm2626_vm7 = vcmask 523264  }
  0xfe   :  { %v7172_v27 = vsel %vm242_vm3, 0.0, %v6786_v26  ;;  %s6793_s0 = smov 72   ;;  %s6794_s11 = smov 104  }
  0xff   :  { %v6245_v1 = vld [vmem:[%s8181_s24] sm:$0xff]   ;;  %v6246_v2 = vld [vmem:[%s8181_s24 + $0x8] sm:$0xff]   ;;  %s6795_s10 = smov 40   ;;  %s8183_s27 = sld [smem:[#allocation39_spill]] }
 0x100   :  { %5640 = vmatpush3.bf16.msra.mxu0 %v6245_v1  ;;  %s6796_s5 = smov 24  }
 0x101   :  { %5641 = vmatprep.subr.bf16.mxu0 %v6783_v0 }
 0x104   :  { %5642 = vmatpush3.bf16.msra.mxu0 %v6246_v2 }
 0x105   :  { %5653 = vmatprep.subr.bf16.mxu0 %v6783_v0 }
 0x107   :  { %5644 = vmatmul.mubr.msk.bf16.vlgmr.msra.gmra.mrb[0].mxu0 %vm270_vm1, %v246_v8 }
 0x108   :  { %5655 = vmatprep.mubr.msk.bf16.mxu0 %vm6784_vm0, %v6783_v0 }
 0x1da   :  { %v308_v10 = vpop.f32.mrb[0].mxu0 }
 0x1db   :  { %v309_v11 = vadd.f32 %v5309_v9, %v308_v10  ;;  %v5645_v12 = vpop.f32.mrb[1].mxu0 }
 0x1dc   :  { %v311_v13 = vpop.f32.mrb[2].mxu0 }
 0x1dd   :  { %v7149_v14 = vpack.c.bf16 %v309_v11, %v309_v11  ;;  %v312_v15 = vadd.f32 %v5309_v9, %v311_v13  ;;  %v5646_v16 = vpop.f32.mrb[3].mxu0 }
 0x1df   :  { %318 = vrot.lane.b32.xlu0 %v7149_v14, %s6785_s26  ;;  %v7153_v17 = vpack.c.bf16 %v312_v15, %v312_v15 }
 0x1e3   :  { %368 = vrot.lane.b32.xlu0 %v7153_v17, %s6785_s26 }
 0x251   :  { %v319_v18 = vpop.permute.xlu0 %318 }
 0x252   :  { %v325_v19 = vsel %vm320_vm2, %v319_v18, 0 }
 0x253   :  { %5648 = vmatpush3.bf16.xpose.msra.mxu1 %v325_v19 }
 0x254   :  { %5659 = vmatprep.subr.bf16.mxu1 %v6783_v0 }
 0x255   :  { %v369_v20 = vpop.permute.xlu0 %368 }
 0x256   :  { %v374_v21 = vsel %vm320_vm2, %v369_v20, 0 }
 0x257   :  { %5654 = vmatpush3.bf16.xpose.msra.mxu0 %v374_v21 }
 0x258   :  { %5665 = vmatprep.subr.bf16.mxu0 %v6783_v0 }
 0x25a   :  { %5650 = vmatmul.mubr.msk.bf16.vlgmr.msra.gmra.mrb[0].mxu1 %vm320_vm2, %v7149_v14 }
 0x25b   :  { %5661 = vmatprep.mubr.msk.bf16.mxu1 %vm6784_vm0, %v6783_v0 }
 0x25e   :  { %5656 = vmatmul.mubr.msk.bf16.vlgmr.msra.gmra.mrb[4].mxu0 %vm320_vm2, %v7153_v17 }
 0x25f   :  { %5667 = vmatprep.mubr.msk.bf16.mxu0 %vm6784_vm0, %v6783_v0 }
 0x32d   :  { %v361_v25 = vpop.f32.mrb[0].mxu1 }
 0x32e   :  { %v416_v28 = vmul.f32 0.35355338, %v361_v25  ;;  %v5651_v29 = vpop.f32.mrb[1].mxu1 }
 0x32f   :  { %v364_v30 = vpop.f32.mrb[2].mxu1 }
 0x330   :  { %v5652_v31 = vpop.f32.mrb[3].mxu1  ;;  %v418_v32 = vadd.f32 %v416_v28, %v7172_v27 }
 0x331   :  { %v410_v33 = vpop.f32.mrb[4].mxu0 }
 0x332   :  { %v417_v34 = vmul.f32 0.35355338, %v410_v33  ;;  %v5657_v35 = vpop.f32.mrb[5].mxu0  ;;  %v420_v36 = vsel %vm320_vm2, %v418_v32, -inf }
 0x333   :  { %421 = vmax.xlane.f32.xlu1 %v420_v36  ;;  %v413_v37 = vpop.f32.mrb[6].mxu0 }
 0x334   :  { %v5658_v38 = vpop.f32.mrb[7].mxu0  ;;  %v419_v39 = vadd.f32 %v417_v34, %v7172_v27 }
 0x336   :  { %v423_v40 = vsel %vm320_vm2, %v419_v39, -inf }
 0x337   :  { %424 = vmax.xlane.f32.xlu1 %v423_v40 }
 0x348   :  { %444 = vrot.lane.b32.xlu1 %v7149_v14, %s8182_s28 }
 0x34c   :  { %493 = vrot.lane.b32.xlu1 %v7153_v17, %s8182_s28 }
 0x350   :  { %543 = vrot.lane.b32.xlu1 %v7149_v14, %s6787_s20 }
 0x3c0   :  { %v422_v41 = vpop.xlane.xlu1 %421 }
 0x3c1   :  { %v426_v42 = vsub.f32 %v418_v32, %v422_v41 }
 0x3c3   :  { %v428_v43 = vmul.f32 1.442695, %v426_v42 }
 0x3c4   :  { %v425_v44 = vpop.xlane.xlu1 %424 }
 0x3c5   :  { %6279 = vpow2.f32 %v428_v43  ;;  %v427_v45 = vsub.f32 %v419_v39, %v425_v44 }
 0x3c7   :  { %v430_v46 = vmul.f32 1.442695, %v427_v45 }
 0x3c8   :  { %v445_v47 = vpop.permute.xlu1 %444 }
 0x3c9   :  { %6281 = vpow2.f32 %v430_v46  ;;  %v451_v48 = vsel %vm449_vm4, %v445_v47, 0 }
 0x3ca   :  { %5660 = vmatpush3.bf16.msra.mxu1 %v451_v48 }
 0x3cb   :  { %5671 = vmatprep.subr.bf16.mxu1 %v6783_v0 }
 0x3cc   :  { %v494_v49 = vpop.permute.xlu1 %493 }
 0x3cd   :  { %v499_v50 = vsel %vm449_vm4, %v494_v49, 0 }
 0x3ce   :  { %5666 = vmatpush3.bf16.msra.mxu0 %v499_v50 }
 0x3cf   :  { %v6280_v51 = vpop.eup %6279  ;;  %5677 = vmatprep.subr.bf16.mxu0 %v6783_v0 }
 0x3d0   :  { %v432_v52 = vsel %vm320_vm2, %v6280_v51, 0.0  ;;  %v544_v55 = vpop.permute.xlu1 %543 }
 0x3d1   :  { %433 = vadd.xlane.f32.xlu0 %v432_v52  ;;  %v549_v62 = vsel %vm320_vm2, %v544_v55, 0 }
 0x3d3   :  { %v6282_v53 = vpop.eup %6281 }
 0x3d4   :  { %v435_v54 = vsel %vm320_vm2, %v6282_v53, 0.0 }
 0x3d5   :  { %436 = vadd.xlane.f32.xlu1 %v435_v54 }
 0x3e6   :  { %593 = vrot.lane.b32.xlu1 %v7153_v17, %s6787_s20 }
 0x3e7   :  { %541 = vrot.lane.b32.xlu0 %v7149_v14, %s6788_s4 }
 0x3ea   :  { %591 = vrot.lane.b32.xlu1 %v7153_v17, %s6788_s4 }
 0x45e   :  { %v434_v56 = vpop.xlane.xlu0 %433 }
 0x45f   :  { %6283 = vrcp.f32 %v434_v56 }
 0x462   :  { %v437_v57 = vpop.xlane.xlu1 %436  ;;  %v542_v4 = vpop.permute.xlu0 %541 }
 0x463   :  { %6285 = vrcp.f32 %v437_v57 }
 0x466   :  { %v594_v1 = vpop.permute.xlu1 %593 }
 0x467   :  { %v599_v3 = vsel %vm320_vm2, %v594_v1, 0 }
 0x469   :  { %v6284_v58 = vpop.eup %6283 }
 0x46a   :  { %v440_v59 = vmul.f32 %v6284_v58, %v6280_v51  ;;  %v592_v5 = vpop.permute.xlu1 %591 }
 0x46c   :  { %v442_v60 = vpack.c.bf16 %v440_v59, %v440_v59 }
 0x46d   :  { %v6286_v61 = vpop.eup %6285 }
 0x46e   :  { %5662 = vmatmul.mubr.msk.bf16.vlgmr.msra.gmra.mrb[4].mxu1 %vm320_vm2, %v442_v60  ;;  %v441_v63 = vmul.f32 %v6286_v61, %v6282_v53 }
 0x46f   :  { %5672 = vmatpush3.bf16.xpose.msra.mxu1 %v549_v62  ;;  %5673 = vmatprep.mubr.msk.bf16.mxu1 %vm6784_vm0, %v6783_v0 }
 0x470   :  { %v443_v2 = vpack.c.bf16 %v441_v63, %v441_v63  ;;  %5683 = vmatprep.subr.bf16.mxu1 %v6783_v0 }
 0x472   :  { %5668 = vmatmul.mubr.msk.bf16.vlgmr.msra.gmra.mrb[8].mxu0 %vm320_vm2, %v443_v2 }
 0x473   :  { %5678 = vmatpush3.bf16.xpose.msra.mxu0 %v599_v3  ;;  %5679 = vmatprep.mubr.msk.bf16.mxu0 %vm6784_vm0, %v6783_v0 }
 0x474   :  { %5689 = vmatprep.subr.bf16.mxu0 %v6783_v0 }
 0x476   :  { %5674 = vmatmul.mubr.msk.bf16.vlgmr.msra.gmra.mrb[8].mxu1 %vm320_vm2, %v542_v4 }
 0x477   :  { %5685 = vmatprep.mubr.msk.bf16.mxu1 %vm6784_vm0, %v6783_v0 }
 0x47a   :  { %5680 = vmatmul.mubr.msk.bf16.vlgmr.msra.gmra.mrb[12].mxu0 %vm320_vm2, %v592_v5 }
 0x47b   :  { %5691 = vmatprep.mubr.msk.bf16.mxu0 %vm6784_vm0, %v6783_v0 }
 0x541   :  { %v7212_v8 = vpop.f32.mrb[4].mxu1 }
 0x542   :  { %v5663_v9 = vpop.f32.mrb[5].mxu1 }
 0x543   :  { %v490_v10 = vpop.f32.mrb[6].mxu1 }
 0x544   :  { %v5664_v11 = vpop.f32.mrb[7].mxu1 }
 0x545   :  { %v7214_v12 = vpop.f32.mrb[8].mxu0 }
 0x546   :  { %v5669_v13 = vpop.f32.mrb[9].mxu0 }
 0x547   :  { %v538_v15 = vpop.f32.mrb[10].mxu0 }
 0x548   :  { %v5670_v16 = vpop.f32.mrb[11].mxu0 }
 0x549   :  { %v585_v18 = vpop.f32.mrb[8].mxu1 }
 0x54a   :  { %v641_v19 = vmul.f32 0.35355338, %v585_v18  ;;  %v5675_v20 = vpop.f32.mrb[9].mxu1 }
 0x54b   :  { %v588_v21 = vpop.f32.mrb[10].mxu1 }
 0x54c   :  { %v5676_v22 = vpop.f32.mrb[11].mxu1  ;;  %v643_v24 = vadd.f32 %v641_v19, %v7172_v27 }
 0x54d   :  { %v635_v25 = vpop.f32.mrb[12].mxu0 }
 0x54e   :  { %v642_v26 = vmul.f32 0.35355338, %v635_v25  ;;  %v5681_v28 = vpop.f32.mrb[13].mxu0  ;;  %v645_v29 = vsel %vm320_vm2, %v643_v24, -inf }
 0x54f   :  { %646 = vmax.xlane.f32.xlu1 %v645_v29  ;;  %v638_v30 = vpop.f32.mrb[14].mxu0 }
 0x550   :  { %v5682_v31 = vpop.f32.mrb[15].mxu0  ;;  %v644_v32 = vadd.f32 %v642_v26, %v7172_v27 }
 0x552   :  { %v648_v33 = vsel %vm320_vm2, %v644_v32, -inf }
 0x553   :  { %649 = vmax.xlane.f32.xlu0 %v648_v33 }
 0x560   :  { %669 = vrot.lane.b32.xlu1 %v7149_v14, %s6789_s12 }
 0x564   :  { %767 = vrot.lane.b32.xlu1 %v7149_v14, %s6790_s23 }
 0x569   :  { %717 = vrot.lane.b32.xlu0 %v7153_v17, %s6789_s12 }
 0x56d   :  { %765 = vrot.lane.b32.xlu0 %v7149_v14, %s6791_s1 }
 0x5dc   :  { %v647_v34 = vpop.xlane.xlu1 %646 }
 0x5dd   :  { %v651_v35 = vsub.f32 %v643_v24, %v647_v34 }
 0x5df   :  { %v653_v36 = vmul.f32 1.442695, %v651_v35 }
 0x5e0   :  { %v670_v37 = vpop.permute.xlu1 %669  ;;  %v650_v38 = vpop.xlane.xlu0 %649 }
 0x5e1   :  { %6287 = vpow2.f32 %v653_v36  ;;  %v675_v39 = vsel %vm449_vm4, %v670_v37, 0  ;;  %v652_v40 = vsub.f32 %v644_v32, %v650_v38 }
 0x5e2   :  { %5684 = vmatpush3.bf16.msra.mxu1 %v675_v39 }
 0x5e3   :  { %v655_v41 = vmul.f32 1.442695, %v652_v40  ;;  %5695 = vmatprep.subr.bf16.mxu1 %v6783_v0 }
 0x5e4   :  { %v718_v42 = vpop.permute.xlu0 %717  ;;  %v768_v48 = vpop.permute.xlu1 %767 }
 0x5e5   :  { %6289 = vpow2.f32 %v655_v41  ;;  %v723_v43 = vsel %vm449_vm4, %v718_v42, 0  ;;  %v773_v55 = vsel %vm320_vm2, %v768_v48, 0 }
 0x5e6   :  { %5690 = vmatpush3.bf16.msra.mxu0 %v723_v43 }
 0x5e7   :  { %5701 = vmatprep.subr.bf16.mxu0 %v6783_v0 }
 0x5e8   :  { %v766_v60 = vpop.permute.xlu0 %765 }
 0x5eb   :  { %v6288_v44 = vpop.eup %6287 }
 0x5ec   :  { %v657_v45 = vsel %vm320_vm2, %v6288_v44, 0.0 }
 0x5ed   :  { %658 = vadd.xlane.f32.xlu1 %v657_v45 }
 0x5ef   :  { %v6290_v46 = vpop.eup %6289 }
 0x5f0   :  { %v660_v47 = vsel %vm320_vm2, %v6290_v46, 0.0 }
 0x5f1   :  { %661 = vadd.xlane.f32.xlu1 %v660_v47 }
 0x602   :  { %817 = vrot.lane.b32.xlu1 %v7153_v17, %s6790_s23 }
 0x606   :  { %815 = vrot.lane.b32.xlu1 %v7153_v17, %s6791_s1 }
 0x67a   :  { %v659_v49 = vpop.xlane.xlu1 %658 }
 0x67b   :  { %6291 = vrcp.f32 %v659_v49 }
 0x67e   :  { %v662_v50 = vpop.xlane.xlu1 %661 }
 0x67f   :  { %6293 = vrcp.f32 %v662_v50 }
 0x682   :  { %v818_v57 = vpop.permute.xlu1 %817 }
 0x683   :  { %v823_v59 = vsel %vm320_vm2, %v818_v57, 0 }
 0x685   :  { %v6292_v51 = vpop.eup %6291 }
 0x686   :  { %v665_v52 = vmul.f32 %v6292_v51, %v6288_v44  ;;  %v816_v61 = vpop.permute.xlu1 %815 }
 0x688   :  { %v667_v53 = vpack.c.bf16 %v665_v52, %v665_v52 }
 0x689   :  { %v6294_v54 = vpop.eup %6293 }
 0x68a   :  { %5686 = vmatmul.mubr.msk.bf16.vlgmr.msra.gmra.mrb[12].mxu1 %vm320_vm2, %v667_v53  ;;  %v666_v56 = vmul.f32 %v6294_v54, %v6290_v46 }
 0x68b   :  { %5696 = vmatpush3.bf16.xpose.msra.mxu1 %v773_v55  ;;  %5697 = vmatprep.mubr.msk.bf16.mxu1 %vm6784_vm0, %v6783_v0 }
 0x68c   :  { %v668_v58 = vpack.c.bf16 %v666_v56, %v666_v56  ;;  %5707 = vmatprep.subr.bf16.mxu1 %v6783_v0 }
 0x68e   :  { %5692 = vmatmul.mubr.msk.bf16.vlgmr.msra.gmra.mrb[16].mxu0 %vm320_vm2, %v668_v58 }
 0x68f   :  { %5702 = vmatpush3.bf16.xpose.msra.mxu0 %v823_v59  ;;  %5703 = vmatprep.mubr.msk.bf16.mxu0 %vm6784_vm0, %v6783_v0 }
 0x690   :  { %5713 = vmatprep.subr.bf16.mxu0 %v6783_v0 }
 0x692   :  { %5698 = vmatmul.mubr.msk.bf16.vlgmr.msra.gmra.mrb[16].mxu1 %vm320_vm2, %v766_v60 }
 0x693   :  { %5709 = vmatprep.mubr.msk.bf16.mxu1 %vm6784_vm0, %v6783_v0 }
 0x696   :  { %5704 = vmatmul.mubr.msk.bf16.vlgmr.msra.gmra.mrb[20].mxu0 %vm320_vm2, %v816_v61 }
 0x697   :  { %5715 = vmatprep.mubr.msk.bf16.mxu0 %vm6784_vm0, %v6783_v0 }
 0x75d   :  { %v7254_v62 = vpop.f32.mrb[12].mxu1 }
 0x75e   :  { %v5687_v63 = vpop.f32.mrb[13].mxu1 }
 0x75f   :  { %v714_v1 = vpop.f32.mrb[14].mxu1 }
 0x760   :  { %v5688_v2 = vpop.f32.mrb[15].mxu1 }
 0x761   :  { %v7256_v3 = vpop.f32.mrb[16].mxu0 }
 0x762   :  { %v6185_v4 = vpack.i.bf16 %v7256_v3, %v7254_v62  ;;  %v5693_v5 = vpop.f32.mrb[17].mxu0 }
 0x763   :  { %v762_v9 = vpop.f32.mrb[18].mxu0 }
 0x764   :  { %v5694_v10 = vpop.f32.mrb[19].mxu0 }
 0x765   :  { %v809_v11 = vpop.f32.mrb[16].mxu1 }
 0x766   :  { %v865_v13 = vmul.f32 0.35355338, %v809_v11  ;;  %v5699_v15 = vpop.f32.mrb[17].mxu1 }
 0x767   :  { %v812_v16 = vpop.f32.mrb[18].mxu1 }
 0x768   :  { %v5700_v18 = vpop.f32.mrb[19].mxu1  ;;  %v867_v19 = vadd.f32 %v865_v13, %v7172_v27 }
 0x769   :  { %v859_v20 = vpop.f32.mrb[20].mxu0 }
 0x76a   :  { %v866_v21 = vmul.f32 0.35355338, %v859_v20  ;;  %v5705_v22 = vpop.f32.mrb[21].mxu0  ;;  %v869_v24 = vsel %vm320_vm2, %v867_v19, -inf }
 0x76b   :  { %870 = vmax.xlane.f32.xlu0 %v869_v24  ;;  %v862_v25 = vpop.f32.mrb[22].mxu0 }
 0x76c   :  { %v5706_v26 = vpop.f32.mrb[23].mxu0  ;;  %v868_v28 = vadd.f32 %v866_v21, %v7172_v27 }
 0x76e   :  { %v872_v29 = vsel %vm320_vm2, %v868_v28, -inf }
 0x76f   :  { %873 = vmax.xlane.f32.xlu1 %v872_v29 }
 0x780   :  { %893 = vrot.lane.b32.xlu1 %v7149_v14, %s6792_s3 }
 0x784   :  { %991 = vrot.lane.b32.xlu1 %v7149_v14, %s6793_s0 }
 0x788   :  { %1041 = vrot.lane.b32.xlu1 %v7153_v17, %s6793_s0 }
 0x78c   :  { %1039 = vrot.lane.b32.xlu1 %v7153_v17, %s6794_s11 }
 0x7f8   :  { %v871_v30 = vpop.xlane.xlu0 %870 }
 0x7f9   :  { %v875_v31 = vsub.f32 %v867_v19, %v871_v30 }
 0x7fb   :  { %v877_v32 = vmul.f32 1.442695, %v875_v31 }
 0x7fc   :  { %v874_v33 = vpop.xlane.xlu1 %873 }
 0x7fd   :  { %6295 = vpow2.f32 %v877_v32  ;;  %v876_v34 = vsub.f32 %v868_v28, %v874_v33 }
 0x7ff   :  { %v879_v35 = vmul.f32 1.442695, %v876_v34 }
 0x800   :  { %v894_v36 = vpop.permute.xlu1 %893 }
 0x801   :  { %6297 = vpow2.f32 %v879_v35  ;;  %v899_v37 = vsel %vm449_vm4, %v894_v36, 0 }
 0x802   :  { %5708 = vmatpush3.bf16.msra.mxu1 %v899_v37 }
 0x803   :  { %5719 = vmatprep.subr.bf16.mxu1 %v6783_v0 }
 0x804   :  { %v992_v47 = vpop.permute.xlu1 %991 }
 0x805   :  { %v997_v51 = vsel %vm320_vm2, %v992_v47, 0  ;;  %v6248_v47 = vld [vmem:[%s8183_s27 + $0x8] sm:$0xff]  }
 0x807   :  { %v6296_v38 = vpop.eup %6295 }
 0x808   :  { %v881_v39 = vsel %vm320_vm2, %v6296_v38, 0.0  ;;  %v1042_v53 = vpop.permute.xlu1 %1041 }
 0x809   :  { %882 = vadd.xlane.f32.xlu0 %v881_v39  ;;  %v1047_v55 = vsel %vm320_vm2, %v1042_v53, 0 }
 0x80b   :  { %v6298_v40 = vpop.eup %6297 }
 0x80c   :  { %v884_v41 = vsel %vm320_vm2, %v6298_v40, 0.0  ;;  %v1040_v57 = vpop.permute.xlu1 %1039 }
 0x80d   :  { %885 = vadd.xlane.f32.xlu0 %v884_v41 }
 0x823   :  { %941 = vrot.lane.b32.xlu0 %v7153_v17, %s6792_s3 }
 0x827   :  { %989 = vrot.lane.b32.xlu0 %v7149_v14, %s6794_s11 }
 0x896   :  { %v883_v42 = vpop.xlane.xlu0 %882 }
 0x897   :  { %6299 = vrcp.f32 %v883_v42 }
 0x89a   :  { %v886_v43 = vpop.xlane.xlu0 %885 }
 0x89b   :  { %6301 = vrcp.f32 %v886_v43 }
 0x89e   :  { %v942_v44 = vpop.permute.xlu0 %941 }
 0x89f   :  { %v947_v45 = vsel %vm449_vm4, %v942_v44, 0 }
 0x8a0   :  { %5714 = vmatpush3.bf16.msra.mxu0 %v947_v45 }
 0x8a1   :  { %v6300_v46 = vpop.eup %6299  ;;  %5725 = vmatprep.subr.bf16.mxu0 %v6783_v0 }
 0x8a2   :  { %v889_v48 = vmul.f32 %v6300_v46, %v6296_v38  ;;  %v990_v56 = vpop.permute.xlu0 %989  ;;  %v6247_v46 = vld [vmem:[%s8183_s27] sm:$0xff]  }
 0x8a4   :  { %v891_v49 = vpack.c.bf16 %v889_v48, %v889_v48 }
 0x8a5   :  { %v6302_v50 = vpop.eup %6301 }
 0x8a6   :  { %5710 = vmatmul.mubr.msk.bf16.vlgmr.msra.gmra.mrb[20].mxu1 %vm320_vm2, %v891_v49  ;;  %v890_v52 = vmul.f32 %v6302_v50, %v6298_v40 }
 0x8a7   :  { %5720 = vmatpush3.bf16.xpose.msra.mxu1 %v997_v51  ;;  %5721 = vmatprep.mubr.msk.bf16.mxu1 %vm6784_vm0, %v6783_v0 }
 0x8a8   :  { %v892_v54 = vpack.c.bf16 %v890_v52, %v890_v52  ;;  %5731 = vmatprep.subr.bf16.mxu1 %v6783_v0 }
 0x8aa   :  { %5716 = vmatmul.mubr.msk.bf16.vlgmr.msra.gmra.mrb[24].mxu0 %vm320_vm2, %v892_v54 }
 0x8ab   :  { %5726 = vmatpush3.bf16.xpose.msra.mxu0 %v1047_v55  ;;  %5727 = vmatprep.mubr.msk.bf16.mxu0 %vm6784_vm0, %v6783_v0 }
 0x8ac   :  { %5737 = vmatprep.subr.bf16.mxu0 %v6783_v0 }
 0x8ae   :  { %5722 = vmatmul.mubr.msk.bf16.vlgmr.msra.gmra.mrb[24].mxu1 %vm320_vm2, %v990_v56 }
 0x8af   :  { %5733 = vmatprep.mubr.msk.bf16.mxu1 %vm6784_vm0, %v6783_v0 }
 0x8b2   :  { %5728 = vmatmul.mubr.msk.bf16.vlgmr.msra.gmra.mrb[28].mxu0 %vm320_vm2, %v1040_v57 }
 0x8b3   :  { %5739 = vmatprep.mubr.msk.bf16.mxu0 %vm6784_vm0, %v6783_v0 }
 0x979   :  { %v935_v58 = vpop.f32.mrb[20].mxu1 }
 0x97a   :  { %v5711_v59 = vpop.f32.mrb[21].mxu1 }
 0x97b   :  { %v938_v60 = vpop.f32.mrb[22].mxu1 }
 0x97c   :  { %v5712_v61 = vpop.f32.mrb[23].mxu1 }
 0x97d   :  { %v983_v63 = vpop.f32.mrb[24].mxu0 }
 0x97e   :  { %v6190_v1 = vpack.i.bf16 %v983_v63, %v935_v58  ;;  %v5717_v2 = vpop.f32.mrb[25].mxu0 }
 0x97f   :  { %v986_v5 = vpop.f32.mrb[26].mxu0 }
 0x980   :  { %v5718_v9 = vpop.f32.mrb[27].mxu0 }
 0x981   :  { %v1033_v10 = vpop.f32.mrb[24].mxu1 }
 0x982   :  { %v1089_v11 = vmul.f32 0.35355338, %v1033_v10  ;;  %v5723_v13 = vpop.f32.mrb[25].mxu1 }
 0x983   :  { %v1036_v15 = vpop.f32.mrb[26].mxu1 }
 0x984   :  { %v5724_v16 = vpop.f32.mrb[27].mxu1  ;;  %v1091_v18 = vadd.f32 %v1089_v11, %v7172_v27 }
 0x985   :  { %v1083_v19 = vpop.f32.mrb[28].mxu0 }
 0x986   :  { %v1090_v20 = vmul.f32 0.35355338, %v1083_v19  ;;  %v5729_v21 = vpop.f32.mrb[29].mxu0  ;;  %v1093_v22 = vsel %vm320_vm2, %v1091_v18, -inf }
 0x987   :  { %1094 = vmax.xlane.f32.xlu0 %v1093_v22  ;;  %v1086_v24 = vpop.f32.mrb[30].mxu0 }
 0x988   :  { %v5730_v25 = vpop.f32.mrb[31].mxu0  ;;  %v1092_v26 = vadd.f32 %v1090_v20, %v7172_v27 }
 0x98a   :  { %v1096_v28 = vsel %vm320_vm2, %v1092_v26, -inf }
 0x98b   :  { %1097 = vmax.xlane.f32.xlu1 %v1096_v28 }
 0x99c   :  { %1117 = vrot.lane.b32.xlu1 %v7149_v14, %s6795_s10 }
 0x9a0   :  { %6186 = vrot.lane.b32.xlu1 %v6185_v4, %s6776_s2 }
 0x9a4   :  { %6191 = vrot.lane.b32.xlu1 %v6190_v1, %s6767_s25 }
 0xa14   :  { %v1095_v29 = vpop.xlane.xlu0 %1094 }
 0xa15   :  { %v1099_v30 = vsub.f32 %v1091_v18, %v1095_v29 }
 0xa17   :  { %v1101_v31 = vmul.f32 1.442695, %v1099_v30 }
 0xa18   :  { %v1098_v32 = vpop.xlane.xlu1 %1097 }
 0xa19   :  { %6303 = vpow2.f32 %v1101_v31  ;;  %v1100_v33 = vsub.f32 %v1092_v26, %v1098_v32 }
 0xa1b   :  { %v1103_v34 = vmul.f32 1.442695, %v1100_v33 }
 0xa1c   :  { %v1118_v35 = vpop.permute.xlu1 %1117 }
 0xa1d   :  { %6305 = vpow2.f32 %v1103_v34  ;;  %v1123_v36 = vsel %vm449_vm4, %v1118_v35, 0 }
 0xa1e   :  { %5732 = vmatpush3.bf16.msra.mxu1 %v1123_v36 }
 0xa1f   :  { %5743 = vmatprep.subr.bf16.mxu1 %v6783_v0 }
 0xa20   :  { %v6187_v57 = vpop.permute.xlu1 %6186 }
 0xa21   :  { %v6189_v59 = vunpack.i.h.bf16 %v6187_v57  ;;  %v6188_v60 = vunpack.i.l.bf16 %v6187_v57 }
 0xa23   :  { %v6304_v14 = vpop.eup %6303  ;;  %v1238_v2 = vsel %vm320_vm2, %v7214_v12, %v6189_v59  ;;  %v1237_v5 = vsel %vm320_vm2, %v7212_v8, %v6188_v60  ;;  %v5329_v12 = vld [vmem:[#allocation10] ss:$0 sm:$0xff]  ;;  %v5337_v60 = vld [vmem:[#allocation13] ss:$0 sm:$0xff] }
 0xa24   :  { %v1105_v62 = vsel %vm320_vm2, %v6304_v14, 0.0  ;;  %v6192_v58 = vpop.permute.xlu1 %6191 }
 0xa25   :  { %1106 = vadd.xlane.f32.xlu0 %v1105_v62  ;;  %v6194_v61 = vunpack.i.h.bf16 %v6192_v58  ;;  %v6193_v63 = vunpack.i.l.bf16 %v6192_v58 }
 0xa27   :  { %v6306_v3 = vpop.eup %6305  ;;  %v1240_v11 = vsel %vm1239_vm5, %v1237_v5, %v6193_v63  ;;  %v1241_v13 = vsel %vm1239_vm5, %v1238_v2, %v6194_v61 }
 0xa28   :  { %v1108_v4 = vsel %vm320_vm2, %v6306_v3, 0.0 }
 0xa29   :  { %1109 = vadd.xlane.f32.xlu0 %v1108_v4  ;;  %v236_v4 = vld [vmem:[#allocation7] sm:$0xff] }
 0xa3f   :  { %1165 = vrot.lane.b32.xlu0 %v7153_v17, %s6795_s10 }
 0xab2   :  { %v1107_v37 = vpop.xlane.xlu0 %1106 }
 0xab3   :  { %6307 = vrcp.f32 %v1107_v37  ;;  %v237_v37 = vld [vmem:[#allocation7 + $0x8] sm:$0xff] }
 0xab6   :  { %v1110_v38 = vpop.xlane.xlu0 %1109 }
 0xab7   :  { %6309 = vrcp.f32 %v1110_v38  ;;  %v7356_v38 = vpack.c.bf16 %v237_v37, %v236_v4 }
 0xaba   :  { %v1166_v39 = vpop.permute.xlu0 %1165 }
 0xabb   :  { %v1171_v40 = vsel %vm449_vm4, %v1166_v39, 0  ;;  %v6251_v39 = vld [vmem:[%s8144_s7] sm:$0xff]  }
 0xabc   :  { %5738 = vmatpush3.bf16.msra.mxu0 %v1171_v40  ;;  %v6252_v40 = vld [vmem:[%s8144_s7 + $0x8] sm:$0xff]  }
 0xabd   :  { %v6308_v41 = vpop.eup %6307  ;;  %5751 = vmatprep.subr.bf16.mxu0 %v6783_v0 }
 0xabe   :  { %v1113_v42 = vmul.f32 %v6308_v41, %v6304_v14 }
 0xac0   :  { %v1115_v43 = vpack.c.bf16 %v1113_v42, %v1113_v42 }
 0xac1   :  { %v6310_v44 = vpop.eup %6309 }
 0xac2   :  { %5734 = vmatmul.mubr.msk.bf16.vlgmr.msra.gmra.mrb[28].mxu1 %vm320_vm2, %v1115_v43  ;;  %v1114_v45 = vmul.f32 %v6310_v44, %v6306_v3  ;;  %v6250_v3 = vld [vmem:[%s8146_s9 + $0x8] sm:$0xff]  }
 0xac3   :  { %5747 = vmatprep.mubr.msk.bf16.mxu1 %vm6784_vm0, %v6783_v0  ;;  %5744 = vmatpush3.bf16.msra.mxu1 %v6247_v46  ;;  %v7372_v46 = vsub.s32 0, %v7169_v23 }
 0xac4   :  { %v1116_v17 = vpack.c.bf16 %v1114_v45, %v1114_v45  ;;  %5745 = vmatprep.subr.bf16.mxu1 %v6783_v0 }
 0xac6   :  { %5740 = vmatmul.mubr.msk.bf16.vlgmr.msra.gmra.mrb[32].mxu0 %vm320_vm2, %v1116_v17 }
 0xac7   :  { %5755 = vmatprep.mubr.msk.bf16.mxu0 %vm6784_vm0, %v6783_v0  ;;  %5746 = vmatpush3.bf16.msra.mxu1 %v6248_v47  ;;  %v7377_v47 = vld [vmem:[%s8154_s17] sm:$0x7] }
 0xac8   :  { %5759 = vmatprep.subr.bf16.mxu1 %v6783_v0  ;;  %5752 = vmatpush3.bf16.msra.mxu0 %v6251_v39 }
 0xac9   :  { %5753 = vmatprep.subr.bf16.mxu0 %v6783_v0 }
 0xacc   :  { %5754 = vmatpush3.bf16.msra.mxu0 %v6252_v40 }
 0xacd   :  { %5767 = vmatprep.subr.bf16.mxu0 %v6783_v0 }
 0xb95   :  { %v1159_v48 = vpop.f32.mrb[28].mxu1 }
 0xb96   :  { %v5735_v49 = vpop.f32.mrb[29].mxu1 }
 0xb97   :  { %v1162_v50 = vpop.f32.mrb[30].mxu1 }
 0xb98   :  { %v5736_v51 = vpop.f32.mrb[31].mxu1  ;;  %v7384_v50 = vld [vmem:[%s8155_s18] sm:$0x7] }
 0xb99   :  { %v1207_v52 = vpop.f32.mrb[32].mxu0 }
 0xb9a   :  { %v6195_v53 = vpack.i.bf16 %v1207_v52, %v1159_v48  ;;  %v5741_v54 = vpop.f32.mrb[33].mxu0  ;;  %v1345_v48 = vrot.slane %v7377_v47, %v7372_v46 }
 0xb9b   :  { %v1210_v55 = vpop.f32.mrb[34].mxu0 }
 0xb9c   :  { %6196 = vrot.lane.b32.xlu0 %v6195_v53, %s6796_s5  ;;  %v5742_v56 = vpop.f32.mrb[35].mxu0  ;;  %v1351_v55 = vrot.slane %v7384_v50, %v7372_v46 }
 0xc0e   :  { %v6197_v1 = vpop.permute.xlu0 %6196 }
 0xc0f   :  { %v6199_v9 = vunpack.i.h.bf16 %v6197_v1  ;;  %v6198_v10 = vunpack.i.l.bf16 %v6197_v1 }
 0xc11   :  { %v1244_v15 = vsel %vm1242_vm6, %v1241_v13, %v6199_v9  ;;  %v1243_v16 = vsel %vm1242_vm6, %v1240_v11, %v6198_v10 }
 0xc12   :  { %v1245_v18 = vpack.c.bf16 %v1244_v15, %v1243_v16  ;;  %v5333_v16 = vld [vmem:[#allocation11] ss:$0 sm:$0xff] }
 0xc14   :  { %5748 = vmatmul.mubr.msk.bf16.vlgmr.msra.gmra.mrb[32].mxu1 %vm270_vm1, %v1245_v18 }
 0xc15   :  { %5763 = vmatprep.mubr.msk.bf16.mxu1 %vm6784_vm0, %v6783_v0 }
 0xce7   :  { %v1306_v19 = vpop.f32.mrb[32].mxu1 }
 0xce8   :  { %v1307_v20 = vadd.f32 %v5329_v12, %v1306_v19  ;;  %v5749_v8 = vpop.f32.mrb[33].mxu1 }
 0xce9   :  { %v1309_v21 = vpop.f32.mrb[34].mxu1 }
 0xcea   :  { %v1310_v22 = vadd.f32 %v5329_v12, %v1309_v21  ;;  %v5750_v24 = vpop.f32.mrb[35].mxu1  ;;  %v1313_v25 = vadd.f32 %v1307_v20, %v7139_v6 }
 0xcec   :  { %v1315_v26 = vsel %vm270_vm1, %v1313_v25, 0.0  ;;  %v1314_v28 = vadd.f32 %v1310_v22, %v7141_v7  ;;  %v6249_v7 = vld [vmem:[%s8146_s9] sm:$0xff]  }
 0xced   :  { %1316 = vadd.xlane.f32.xlu1 %v1315_v26  ;;  %5760 = vmatpush3.bf16.msra.mxu1 %v6249_v7 }
 0xcee   :  { %v1318_v29 = vsel %vm270_vm1, %v1314_v28, 0.0  ;;  %5761 = vmatprep.subr.bf16.mxu1 %v6783_v0 }
 0xcef   :  { %1319 = vadd.xlane.f32.xlu0 %v1318_v29 }
 0xcf1   :  { %5762 = vmatpush3.bf16.msra.mxu1 %v6250_v3 }
 0xcf2   :  { %5773 = vmatprep.subr.bf16.mxu1 %v6783_v0 }
 0xcf4   :  { %5764 = vmatmul.mubr.msk.bf16.vlgmr.msra.gmra.mrb[36].mxu1 %vm270_vm1, %v7356_v38 }
 0xcf5   :  { %5775 = vmatprep.mubr.msk.bf16.mxu1 %vm6784_vm0, %v6783_v0 }
 0xd7a   :  { %v1317_v30 = vpop.xlane.xlu1 %1316 }
 0xd7b   :  { %v1322_v31 = vmul.f32 0.03125, %v1317_v30 }
 0xd7c   :  { %v1320_v32 = vpop.xlane.xlu0 %1319 }
 0xd7d   :  { %v1324_v33 = vsub.f32 %v1313_v25, %v1322_v31  ;;  %v1323_v34 = vmul.f32 0.03125, %v1320_v32 }
 0xd7f   :  { %v1325_v35 = vsub.f32 %v1314_v28, %v1323_v34  ;;  %v1326_v36 = vmul.f32 %v1324_v33, %v1324_v33 }
 0xd81   :  { %v1328_v14 = vsel %vm270_vm1, %v1326_v36, 0.0  ;;  %v1327_v62 = vmul.f32 %v1325_v35, %v1325_v35 }
 0xd82   :  { %1329 = vadd.xlane.f32.xlu0 %v1328_v14 }
 0xd83   :  { %v1331_v6 = vsel %vm270_vm1, %v1327_v62, 0.0 }
 0xd84   :  { %1332 = vadd.xlane.f32.xlu1 %v1331_v6 }
 0xdc7   :  { %v1483_v61 = vpop.f32.mrb[36].mxu1 }
 0xdc8   :  { %v1484_v63 = vadd.f32 %v5337_v60, %v1483_v61  ;;  %v5765_v1 = vpop.f32.mrb[37].mxu1 }
 0xdc9   :  { %v1486_v2 = vpop.f32.mrb[38].mxu1 }
 0xdca   :  { %v7397_v5 = vpack.c.bf16 %v1484_v63, %v1484_v63  ;;  %v1487_v9 = vadd.f32 %v5337_v60, %v1486_v2  ;;  %v5766_v10 = vpop.f32.mrb[39].mxu1 }
 0xdcc   :  { %v7399_v11 = vpack.c.bf16 %v1487_v9, %v1487_v9  ;;  %v1498_v13 = vsel %vm320_vm2, %v7397_v5, 0 }
 0xdce   :  { %v1544_v15 = vsel %vm320_vm2, %v7399_v11, 0 }
 0xdcf   :  { %5774 = vmatpush3.bf16.xpose.msra.mxu1 %v1544_v15 }
 0xdd0   :  { %5785 = vmatprep.subr.bf16.mxu1 %v6783_v0 }
 0xe0f   :  { %v1330_v41 = vpop.xlane.xlu0 %1329 }
 0xe10   :  { %v1334_v42 = vmul.f32 0.03125, %v1330_v41 }
 0xe11   :  { %v1333_v43 = vpop.xlane.xlu1 %1332 }
 0xe12   :  { %v1336_v44 = vadd.f32 1e-05, %v1334_v42  ;;  %v1335_v45 = vmul.f32 0.03125, %v1333_v43 }
 0xe14   :  { %6311 = vrsqrt.f32 %v1336_v44  ;;  %v1337_v17 = vadd.f32 1e-05, %v1335_v45 }
 0xe16   :  { %6313 = vrsqrt.f32 %v1337_v17 }
 0xe1e   :  { %v6312_v49 = vpop.eup %6311 }
 0xe1f   :  { %v1340_v51 = vmul.f32 %v6312_v49, %v1324_v33 }
 0xe20   :  { %v6314_v52 = vpop.eup %6313 }
 0xe21   :  { %v1346_v53 = vmul.f32 %v1345_v48, %v1340_v51  ;;  %v1341_v54 = vmul.f32 %v6314_v52, %v1325_v35 }
 0xe23   :  { %v1347_v56 = vmul.f32 %v1345_v48, %v1341_v54  ;;  %v7388_v57 = vadd.f32 %v1351_v55, %v1346_v53 }
 0xe25   :  { %v7390_v58 = vadd.f32 %v1351_v55, %v1347_v56 }
 0xe27   :  { %v1354_v59 = vpack.c.bf16 %v7390_v58, %v7388_v57 }
 0xe29   :  { %5756 = vmatmul.mubr.msk.bf16.vlgmr.msra.gmra.mrb[36].mxu0 %vm270_vm1, %v1354_v59 }
 0xe2a   :  { %5769 = vmatprep.mubr.msk.bf16.mxu0 %vm6784_vm0, %v6783_v0  ;;  %5768 = vmatpush3.bf16.xpose.msra.mxu0 %v1498_v13 }
 0xe2b   :  { %5779 = vmatprep.subr.bf16.mxu0 %v6783_v0 }
 0xefc   :  { %v1415_v18 = vpop.f32.mrb[36].mxu0 }
 0xefd   :  { %v1416_v12 = vadd.f32 %v5333_v16, %v1415_v18  ;;  %v5757_v19 = vpop.f32.mrb[37].mxu0 }
 0xefe   :  { %v1418_v20 = vpop.f32.mrb[38].mxu0 }
 0xeff   :  { %v7407_v8 = vpack.c.bf16 %v1416_v12, %v1416_v12  ;;  %v1419_v21 = vadd.f32 %v5333_v16, %v1418_v20  ;;  %v5758_v22 = vpop.f32.mrb[39].mxu0 }
 0xf01   :  { %v7409_v24 = vpack.c.bf16 %v1419_v21, %v1419_v21  ;;  %5770 = vmatmul.mubr.msk.bf16.vlgmr.msra.gmra.mrb[40].mxu0 %vm320_vm2, %v7407_v8 }
 0xf02   :  { %5781 = vmatprep.mubr.msk.bf16.mxu0 %vm6784_vm0, %v6783_v0 }
 0xf03   :  { %5776 = vmatmul.mubr.msk.bf16.vlgmr.msra.gmra.mrb[40].mxu1 %vm320_vm2, %v7409_v24 }
 0xf04   :  { %5787 = vmatprep.mubr.msk.bf16.mxu1 %vm6784_vm0, %v6783_v0 }
 0xfd4   :  { %v1534_v25 = vpop.f32.mrb[40].mxu0 }
 0xfd5   :  { %v1586_v26 = vmul.f32 0.35355338, %v1534_v25  ;;  %v5771_v28 = vpop.f32.mrb[41].mxu0 }
 0xfd6   :  { %v1537_v29 = vpop.f32.mrb[42].mxu0  ;;  %v1580_v30 = vpop.f32.mrb[40].mxu1 }
 0xfd7   :  { %v1587_v31 = vmul.f32 0.35355338, %v1580_v30  ;;  %v5772_v32 = vpop.f32.mrb[43].mxu0  ;;  %v5777_v33 = vpop.f32.mrb[41].mxu1  ;;  %v1588_v34 = vsel %vm320_vm2, %v1586_v26, -inf }
 0xfd8   :  { %v1583_v35 = vpop.f32.mrb[42].mxu1  ;;  %1589 = vmax.xlane.f32.xlu0 %v1588_v34 }
 0xfd9   :  { %v5778_v36 = vpop.f32.mrb[43].mxu1  ;;  %v1591_v14 = vsel %vm320_vm2, %v1587_v31, -inf }
 0xfda   :  { %1592 = vmax.xlane.f32.xlu1 %v1591_v14 }
 0xfeb   :  { %1662 = vrot.lane.b32.xlu1 %v7399_v11, %s6785_s26 }
 0xfee   :  { %1613 = vrot.lane.b32.xlu0 %v7397_v5, %s6785_s26 }
0x1065   :  { %v1590_v62 = vpop.xlane.xlu0 %1589 }
0x1066   :  { %v1594_v6 = vsub.f32 %v1586_v26, %v1590_v62 }
0x1067   :  { %v1593_v7 = vpop.xlane.xlu1 %1592 }
0x1068   :  { %v1596_v3 = vmul.f32 1.442695, %v1594_v6  ;;  %v1595_v4 = vsub.f32 %v1587_v31, %v1593_v7 }
0x1069   :  { %v1614_v37 = vpop.permute.xlu0 %1613 }
0x106a   :  { %6315 = vpow2.f32 %v1596_v3  ;;  %v1598_v39 = vmul.f32 1.442695, %v1595_v4  ;;  %v1619_v40 = vsel %vm449_vm4, %v1614_v37, 0 }
0x106b   :  { %v1663_v41 = vpop.permute.xlu1 %1662  ;;  %5780 = vmatpush3.bf16.msra.mxu0 %v1619_v40 }
0x106c   :  { %6317 = vpow2.f32 %v1598_v39  ;;  %v1668_v42 = vsel %vm449_vm4, %v1663_v41, 0  ;;  %5791 = vmatprep.subr.bf16.mxu0 %v6783_v0 }
0x106d   :  { %5786 = vmatpush3.bf16.msra.mxu1 %v1668_v42 }
0x106e   :  { %5797 = vmatprep.subr.bf16.mxu1 %v6783_v0 }
0x1074   :  { %v6316_v43 = vpop.eup %6315 }
0x1075   :  { %v1600_v44 = vsel %vm320_vm2, %v6316_v43, 0.0 }
0x1076   :  { %v6318_v45 = vpop.eup %6317  ;;  %1601 = vadd.xlane.f32.xlu0 %v1600_v44 }
0x1077   :  { %v1603_v17 = vsel %vm320_vm2, %v6318_v45, 0.0 }
0x1078   :  { %1604 = vadd.xlane.f32.xlu1 %v1603_v17 }
0x1089   :  { %1713 = vrot.lane.b32.xlu1 %v7397_v5, %s6788_s4 }
0x108c   :  { %1764 = vrot.lane.b32.xlu0 %v7399_v11, %s6788_s4 }
0x108d   :  { %1711 = vrot.lane.b32.xlu1 %v7407_v8, %s6788_s4 }
0x1090   :  { %1762 = vrot.lane.b32.xlu0 %v7409_v24, %s6788_s4 }
0x1103   :  { %v1602_v48 = vpop.xlane.xlu0 %1601 }
0x1104   :  { %6319 = vrcp.f32 %v1602_v48 }
0x1105   :  { %v1605_v49 = vpop.xlane.xlu1 %1604 }
0x1106   :  { %6321 = vrcp.f32 %v1605_v49 }
0x1107   :  { %v1765_v59 = vpop.permute.xlu0 %1764 }
0x1108   :  { %v1770_v63 = vsel %vm320_vm2, %v1765_v59, 0 }
0x1109   :  { %v1714_v54 = vpop.permute.xlu1 %1713 }
0x110a   :  { %v1719_v60 = vsel %vm320_vm2, %v1714_v54, 0 }
0x110b   :  { %v1763_v2 = vpop.permute.xlu0 %1762 }
0x110d   :  { %v1712_v1 = vpop.permute.xlu1 %1711 }
0x110e   :  { %v6320_v51 = vpop.eup %6319 }
0x110f   :  { %v1608_v52 = vmul.f32 %v6320_v51, %v6316_v43 }
0x1110   :  { %v6322_v53 = vpop.eup %6321 }
0x1111   :  { %v1610_v55 = vpack.c.bf16 %v1608_v52, %v1608_v52  ;;  %v1609_v56 = vmul.f32 %v6322_v53, %v6318_v45 }
0x1113   :  { %5782 = vmatmul.mubr.msk.bf16.vlgmr.msra.gmra.mrb[44].mxu0 %vm320_vm2, %v1610_v55  ;;  %v1611_v61 = vpack.c.bf16 %v1609_v56, %v1609_v56 }
0x1114   :  { %5792 = vmatpush3.bf16.xpose.msra.mxu0 %v1719_v60  ;;  %5793 = vmatprep.mubr.msk.bf16.mxu0 %vm6784_vm0, %v6783_v0 }
0x1115   :  { %5788 = vmatmul.mubr.msk.bf16.vlgmr.msra.gmra.mrb[44].mxu1 %vm320_vm2, %v1611_v61  ;;  %5803 = vmatprep.subr.bf16.mxu0 %v6783_v0 }
0x1116   :  { %5798 = vmatpush3.bf16.xpose.msra.mxu1 %v1770_v63  ;;  %5799 = vmatprep.mubr.msk.bf16.mxu1 %vm6784_vm0, %v6783_v0 }
0x1117   :  { %5809 = vmatprep.subr.bf16.mxu1 %v6783_v0 }
0x111b   :  { %5794 = vmatmul.mubr.msk.bf16.vlgmr.msra.gmra.mrb[48].mxu0 %vm320_vm2, %v1712_v1 }
0x111c   :  { %5805 = vmatprep.mubr.msk.bf16.mxu0 %vm6784_vm0, %v6783_v0 }
0x111d   :  { %5800 = vmatmul.mubr.msk.bf16.vlgmr.msra.gmra.mrb[48].mxu1 %vm320_vm2, %v1763_v2 }
0x111e   :  { %5811 = vmatprep.mubr.msk.bf16.mxu1 %vm6784_vm0, %v6783_v0 }
0x11e6   :  { %v7455_v9 = vpop.f32.mrb[44].mxu0 }
0x11e7   :  { %v5783_v10 = vpop.f32.mrb[45].mxu0 }
0x11e8   :  { %v1658_v13 = vpop.f32.mrb[46].mxu0  ;;  %v7457_v15 = vpop.f32.mrb[44].mxu1 }
0x11e9   :  { %v5784_v16 = vpop.f32.mrb[47].mxu0  ;;  %v5789_v18 = vpop.f32.mrb[45].mxu1 }
0x11ea   :  { %v1707_v12 = vpop.f32.mrb[46].mxu1 }
0x11eb   :  { %v5790_v19 = vpop.f32.mrb[47].mxu1 }
0x11ee   :  { %v1755_v20 = vpop.f32.mrb[48].mxu0 }
0x11ef   :  { %v1812_v21 = vmul.f32 0.35355338, %v1755_v20  ;;  %v5795_v22 = vpop.f32.mrb[49].mxu0 }
0x11f0   :  { %v1758_v25 = vpop.f32.mrb[50].mxu0  ;;  %v1806_v26 = vpop.f32.mrb[48].mxu1 }
0x11f1   :  { %v1813_v28 = vmul.f32 0.35355338, %v1806_v26  ;;  %v5796_v29 = vpop.f32.mrb[51].mxu0  ;;  %v5801_v30 = vpop.f32.mrb[49].mxu1  ;;  %v1814_v31 = vsel %vm320_vm2, %v1812_v21, -inf }
0x11f2   :  { %v1809_v32 = vpop.f32.mrb[50].mxu1  ;;  %1815 = vmax.xlane.f32.xlu1 %v1814_v31 }
0x11f3   :  { %v5802_v33 = vpop.f32.mrb[51].mxu1  ;;  %v1817_v34 = vsel %vm320_vm2, %v1813_v28, -inf }
0x11f4   :  { %1818 = vmax.xlane.f32.xlu0 %v1817_v34 }
0x1203   :  { %1886 = vrot.lane.b32.xlu1 %v7399_v11, %s6787_s20 }
0x120a   :  { %1838 = vrot.lane.b32.xlu0 %v7397_v5, %s6787_s20 }
0x127f   :  { %v1816_v35 = vpop.xlane.xlu1 %1815 }
0x1280   :  { %v1820_v36 = vsub.f32 %v1812_v21, %v1816_v35 }
0x1281   :  { %v1819_v14 = vpop.xlane.xlu0 %1818 }
0x1282   :  { %v1822_v62 = vmul.f32 1.442695, %v1820_v36  ;;  %v1821_v6 = vsub.f32 %v1813_v28, %v1819_v14 }
0x1283   :  { %v1887_v7 = vpop.permute.xlu1 %1886 }
0x1284   :  { %6323 = vpow2.f32 %v1822_v62  ;;  %v1824_v3 = vmul.f32 1.442695, %v1821_v6  ;;  %v1892_v4 = vsel %vm449_vm4, %v1887_v7, 0 }
0x1285   :  { %v1839_v37 = vpop.permute.xlu0 %1838  ;;  %5810 = vmatpush3.bf16.msra.mxu1 %v1892_v4 }
0x1286   :  { %6325 = vpow2.f32 %v1824_v3  ;;  %v1844_v39 = vsel %vm449_vm4, %v1839_v37, 0  ;;  %5821 = vmatprep.subr.bf16.mxu1 %v6783_v0 }
0x1287   :  { %5804 = vmatpush3.bf16.msra.mxu0 %v1844_v39 }
0x1288   :  { %5815 = vmatprep.subr.bf16.mxu0 %v6783_v0 }
0x128e   :  { %v6324_v40 = vpop.eup %6323 }
0x128f   :  { %v1826_v41 = vsel %vm320_vm2, %v6324_v40, 0.0 }
0x1290   :  { %v6326_v42 = vpop.eup %6325  ;;  %1827 = vadd.xlane.f32.xlu0 %v1826_v41 }
0x1291   :  { %v1829_v43 = vsel %vm320_vm2, %v6326_v42, 0.0 }
0x1292   :  { %1830 = vadd.xlane.f32.xlu1 %v1829_v43 }
0x12a3   :  { %1936 = vrot.lane.b32.xlu1 %v7397_v5, %s6791_s1 }
0x12a6   :  { %1986 = vrot.lane.b32.xlu0 %v7399_v11, %s6791_s1 }
0x12a7   :  { %1934 = vrot.lane.b32.xlu1 %v7407_v8, %s6791_s1 }
0x12aa   :  { %1984 = vrot.lane.b32.xlu0 %v7409_v24, %s6791_s1 }
0x131d   :  { %v1828_v44 = vpop.xlane.xlu0 %1827 }
0x131e   :  { %6327 = vrcp.f32 %v1828_v44 }
0x131f   :  { %v1831_v45 = vpop.xlane.xlu1 %1830 }
0x1320   :  { %6329 = vrcp.f32 %v1831_v45 }
0x1321   :  { %v1987_v54 = vpop.permute.xlu0 %1986 }
0x1322   :  { %v1992_v59 = vsel %vm320_vm2, %v1987_v54, 0 }
0x1323   :  { %v1937_v51 = vpop.permute.xlu1 %1936 }
0x1324   :  { %v1942_v55 = vsel %vm320_vm2, %v1937_v51, 0 }
0x1325   :  { %v1985_v61 = vpop.permute.xlu0 %1984 }
0x1327   :  { %v1935_v60 = vpop.permute.xlu1 %1934 }
0x1328   :  { %v6328_v17 = vpop.eup %6327 }
0x1329   :  { %v1834_v48 = vmul.f32 %v6328_v17, %v6324_v40 }
0x132a   :  { %v6330_v49 = vpop.eup %6329 }
0x132b   :  { %v1836_v52 = vpack.c.bf16 %v1834_v48, %v1834_v48  ;;  %v1835_v53 = vmul.f32 %v6330_v49, %v6326_v42 }
0x132d   :  { %5806 = vmatmul.mubr.msk.bf16.vlgmr.msra.gmra.mrb[52].mxu0 %vm320_vm2, %v1836_v52  ;;  %v1837_v56 = vpack.c.bf16 %v1835_v53, %v1835_v53 }
0x132e   :  { %5816 = vmatpush3.bf16.xpose.msra.mxu0 %v1942_v55  ;;  %5817 = vmatprep.mubr.msk.bf16.mxu0 %vm6784_vm0, %v6783_v0 }
0x132f   :  { %5812 = vmatmul.mubr.msk.bf16.vlgmr.msra.gmra.mrb[52].mxu1 %vm320_vm2, %v1837_v56  ;;  %5827 = vmatprep.subr.bf16.mxu0 %v6783_v0 }
0x1330   :  { %5822 = vmatpush3.bf16.xpose.msra.mxu1 %v1992_v59  ;;  %5823 = vmatprep.mubr.msk.bf16.mxu1 %vm6784_vm0, %v6783_v0 }
0x1331   :  { %5833 = vmatprep.subr.bf16.mxu1 %v6783_v0 }
0x1335   :  { %5818 = vmatmul.mubr.msk.bf16.vlgmr.msra.gmra.mrb[56].mxu0 %vm320_vm2, %v1935_v60 }
0x1336   :  { %5829 = vmatprep.mubr.msk.bf16.mxu0 %vm6784_vm0, %v6783_v0 }
0x1337   :  { %5824 = vmatmul.mubr.msk.bf16.vlgmr.msra.gmra.mrb[56].mxu1 %vm320_vm2, %v1985_v61 }
0x1338   :  { %5835 = vmatprep.mubr.msk.bf16.mxu1 %vm6784_vm0, %v6783_v0 }
0x1400   :  { %v7495_v63 = vpop.f32.mrb[52].mxu0 }
0x1401   :  { %v5807_v1 = vpop.f32.mrb[53].mxu0 }
0x1402   :  { %v1883_v2 = vpop.f32.mrb[54].mxu0  ;;  %v7497_v10 = vpop.f32.mrb[52].mxu1 }
0x1403   :  { %v6200_v13 = vpack.i.bf16 %v7497_v10, %v7495_v63  ;;  %v5808_v16 = vpop.f32.mrb[55].mxu0  ;;  %v5813_v18 = vpop.f32.mrb[53].mxu1 }
0x1404   :  { %v1931_v12 = vpop.f32.mrb[54].mxu1 }
0x1405   :  { %v5814_v19 = vpop.f32.mrb[55].mxu1 }
0x1408   :  { %v1978_v20 = vpop.f32.mrb[56].mxu0 }
0x1409   :  { %v2034_v21 = vmul.f32 0.35355338, %v1978_v20  ;;  %v5819_v22 = vpop.f32.mrb[57].mxu0 }
0x140a   :  { %v1981_v25 = vpop.f32.mrb[58].mxu0  ;;  %v2028_v26 = vpop.f32.mrb[56].mxu1 }
0x140b   :  { %v2035_v28 = vmul.f32 0.35355338, %v2028_v26  ;;  %v5820_v29 = vpop.f32.mrb[59].mxu0  ;;  %v5825_v30 = vpop.f32.mrb[57].mxu1  ;;  %v2036_v31 = vsel %vm320_vm2, %v2034_v21, -inf }
0x140c   :  { %v2031_v32 = vpop.f32.mrb[58].mxu1  ;;  %2037 = vmax.xlane.f32.xlu1 %v2036_v31 }
0x140d   :  { %v5826_v33 = vpop.f32.mrb[59].mxu1  ;;  %v2039_v34 = vsel %vm320_vm2, %v2035_v28, -inf }
0x140e   :  { %2040 = vmax.xlane.f32.xlu0 %v2039_v34 }
0x141d   :  { %2108 = vrot.lane.b32.xlu1 %v7399_v11, %s6790_s23 }
0x1424   :  { %2060 = vrot.lane.b32.xlu0 %v7397_v5, %s6790_s23 }
0x1499   :  { %v2038_v35 = vpop.xlane.xlu1 %2037 }
0x149a   :  { %v2042_v36 = vsub.f32 %v2034_v21, %v2038_v35 }
0x149b   :  { %v2041_v14 = vpop.xlane.xlu0 %2040 }
0x149c   :  { %v2044_v62 = vmul.f32 1.442695, %v2042_v36  ;;  %v2043_v6 = vsub.f32 %v2035_v28, %v2041_v14 }
0x149d   :  { %v2109_v7 = vpop.permute.xlu1 %2108 }
0x149e   :  { %6331 = vpow2.f32 %v2044_v62  ;;  %v2046_v3 = vmul.f32 1.442695, %v2043_v6  ;;  %v2114_v4 = vsel %vm449_vm4, %v2109_v7, 0 }
0x149f   :  { %v2061_v37 = vpop.permute.xlu0 %2060  ;;  %5834 = vmatpush3.bf16.msra.mxu1 %v2114_v4 }
0x14a0   :  { %6333 = vpow2.f32 %v2046_v3  ;;  %v2066_v39 = vsel %vm449_vm4, %v2061_v37, 0  ;;  %5845 = vmatprep.subr.bf16.mxu1 %v6783_v0 }
0x14a1   :  { %5828 = vmatpush3.bf16.msra.mxu0 %v2066_v39 }
0x14a2   :  { %5839 = vmatprep.subr.bf16.mxu0 %v6783_v0 }
0x14a8   :  { %v6332_v40 = vpop.eup %6331 }
0x14a9   :  { %v2048_v41 = vsel %vm320_vm2, %v6332_v40, 0.0 }
0x14aa   :  { %v6334_v42 = vpop.eup %6333  ;;  %2049 = vadd.xlane.f32.xlu0 %v2048_v41 }
0x14ab   :  { %v2051_v43 = vsel %vm320_vm2, %v6334_v42, 0.0 }
0x14ac   :  { %2052 = vadd.xlane.f32.xlu1 %v2051_v43 }
0x14bd   :  { %2158 = vrot.lane.b32.xlu1 %v7397_v5, %s6794_s11 }
0x14c0   :  { %2208 = vrot.lane.b32.xlu0 %v7399_v11, %s6794_s11 }
0x14c1   :  { %2156 = vrot.lane.b32.xlu1 %v7407_v8, %s6794_s11 }
0x14c4   :  { %2206 = vrot.lane.b32.xlu0 %v7409_v24, %s6794_s11 }
0x1537   :  { %v2050_v44 = vpop.xlane.xlu0 %2049 }
0x1538   :  { %6335 = vrcp.f32 %v2050_v44 }
0x1539   :  { %v2053_v45 = vpop.xlane.xlu1 %2052 }
0x153a   :  { %6337 = vrcp.f32 %v2053_v45 }
0x153b   :  { %v2209_v54 = vpop.permute.xlu0 %2208 }
0x153c   :  { %v2214_v8 = vsel %vm320_vm2, %v2209_v54, 0 }
0x153d   :  { %v2159_v51 = vpop.permute.xlu1 %2158 }
0x153e   :  { %v2164_v55 = vsel %vm320_vm2, %v2159_v51, 0  ;;  %v6254_v51 = vld [vmem:[#allocation14 + $0x8] sm:$0xff]  }
0x153f   :  { %v2207_v59 = vpop.permute.xlu0 %2206 }
0x1541   :  { %v2157_v24 = vpop.permute.xlu1 %2156 }
0x1542   :  { %v6336_v17 = vpop.eup %6335 }
0x1543   :  { %v2056_v48 = vmul.f32 %v6336_v17, %v6332_v40 }
0x1544   :  { %v6338_v49 = vpop.eup %6337 }
0x1545   :  { %v2058_v52 = vpack.c.bf16 %v2056_v48, %v2056_v48  ;;  %v2057_v53 = vmul.f32 %v6338_v49, %v6334_v42  ;;  %v6253_v49 = vld [vmem:[#allocation14] sm:$0xff]  }
0x1547   :  { %5830 = vmatmul.mubr.msk.bf16.vlgmr.msra.gmra.mrb[60].mxu0 %vm320_vm2, %v2058_v52  ;;  %v2059_v56 = vpack.c.bf16 %v2057_v53, %v2057_v53 }
0x1548   :  { %5840 = vmatpush3.bf16.xpose.msra.mxu0 %v2164_v55  ;;  %5841 = vmatprep.mubr.msk.bf16.mxu0 %vm6784_vm0, %v6783_v0 }
0x1549   :  { %5836 = vmatmul.mubr.msk.bf16.vlgmr.msra.gmra.mrb[60].mxu1 %vm320_vm2, %v2059_v56  ;;  %5851 = vmatprep.subr.bf16.mxu0 %v6783_v0 }
0x154a   :  { %5846 = vmatpush3.bf16.xpose.msra.mxu1 %v2214_v8  ;;  %5847 = vmatprep.mubr.msk.bf16.mxu1 %vm6784_vm0, %v6783_v0 }
0x154b   :  { %5857 = vmatprep.subr.bf16.mxu1 %v6783_v0 }
0x154f   :  { %5842 = vmatmul.mubr.msk.bf16.vlgmr.msra.gmra.mrb[64].mxu0 %vm320_vm2, %v2157_v24 }
0x1550   :  { %5853 = vmatprep.mubr.msk.bf16.mxu0 %vm6784_vm0, %v6783_v0 }
0x1551   :  { %5848 = vmatmul.mubr.msk.bf16.vlgmr.msra.gmra.mrb[64].mxu1 %vm320_vm2, %v2207_v59 }
0x1552   :  { %5859 = vmatprep.mubr.msk.bf16.mxu1 %vm6784_vm0, %v6783_v0 }
0x161a   :  { %v2102_v60 = vpop.f32.mrb[60].mxu0 }
0x161b   :  { %v5831_v61 = vpop.f32.mrb[61].mxu0 }
0x161c   :  { %v2105_v1 = vpop.f32.mrb[62].mxu0  ;;  %v2150_v2 = vpop.f32.mrb[60].mxu1 }
0x161d   :  { %v6205_v16 = vpack.i.bf16 %v2150_v2, %v2102_v60  ;;  %v5832_v18 = vpop.f32.mrb[63].mxu0  ;;  %v5837_v12 = vpop.f32.mrb[61].mxu1 }
0x161e   :  { %v2153_v19 = vpop.f32.mrb[62].mxu1 }
0x161f   :  { %v5838_v20 = vpop.f32.mrb[63].mxu1 }
0x1622   :  { %v2200_v21 = vpop.f32.mrb[64].mxu0 }
0x1623   :  { %v2256_v22 = vmul.f32 0.35355338, %v2200_v21  ;;  %v5843_v25 = vpop.f32.mrb[65].mxu0 }
0x1624   :  { %v2203_v26 = vpop.f32.mrb[66].mxu0  ;;  %v2250_v28 = vpop.f32.mrb[64].mxu1 }
0x1625   :  { %v2257_v29 = vmul.f32 0.35355338, %v2250_v28  ;;  %v5844_v30 = vpop.f32.mrb[67].mxu0  ;;  %v5849_v31 = vpop.f32.mrb[65].mxu1  ;;  %v2258_v32 = vsel %vm320_vm2, %v2256_v22, -inf }
0x1626   :  { %v2253_v33 = vpop.f32.mrb[66].mxu1  ;;  %2259 = vmax.xlane.f32.xlu1 %v2258_v32 }
0x1627   :  { %v5850_v34 = vpop.f32.mrb[67].mxu1  ;;  %v2261_v35 = vsel %vm320_vm2, %v2257_v29, -inf }
0x1628   :  { %2262 = vmax.xlane.f32.xlu0 %v2261_v35 }
0x16b3   :  { %v2260_v36 = vpop.xlane.xlu1 %2259 }
0x16b4   :  { %v2264_v14 = vsub.f32 %v2256_v22, %v2260_v36 }
0x16b5   :  { %v2263_v62 = vpop.xlane.xlu0 %2262 }
0x16b6   :  { %v2266_v6 = vmul.f32 1.442695, %v2264_v14  ;;  %v2265_v7 = vsub.f32 %v2257_v29, %v2263_v62 }
0x16b8   :  { %6339 = vpow2.f32 %v2266_v6  ;;  %v2268_v3 = vmul.f32 1.442695, %v2265_v7 }
0x16ba   :  { %6341 = vpow2.f32 %v2268_v3 }
0x16c2   :  { %v6340_v4 = vpop.eup %6339 }
0x16c3   :  { %v2270_v37 = vsel %vm320_vm2, %v6340_v4, 0.0 }
0x16c4   :  { %v6342_v39 = vpop.eup %6341  ;;  %2271 = vadd.xlane.f32.xlu0 %v2270_v37 }
0x16c5   :  { %v2273_v40 = vsel %vm320_vm2, %v6342_v39, 0.0 }
0x16c6   :  { %2274 = vadd.xlane.f32.xlu1 %v2273_v40 }
0x16d7   :  { %2330 = vrot.lane.b32.xlu1 %v7399_v11, %s6793_s0 }
0x16da   :  { %2282 = vrot.lane.b32.xlu0 %v7397_v5, %s6793_s0 }
0x16db   :  { %6201 = vrot.lane.b32.xlu1 %v6200_v13, %s6776_s2 }
0x16de   :  { %6206 = vrot.lane.b32.xlu0 %v6205_v16, %s6767_s25 }
0x1751   :  { %v2272_v41 = vpop.xlane.xlu0 %2271 }
0x1752   :  { %6343 = vrcp.f32 %v2272_v41 }
0x1753   :  { %v2275_v42 = vpop.xlane.xlu1 %2274 }
0x1754   :  { %6345 = vrcp.f32 %v2275_v42 }
0x1755   :  { %v2283_v43 = vpop.permute.xlu0 %2282 }
0x1756   :  { %v2288_v44 = vsel %vm449_vm4, %v2283_v43, 0 }
0x1757   :  { %5852 = vmatpush3.bf16.msra.mxu0 %v2288_v44  ;;  %v2331_v45 = vpop.permute.xlu1 %2330 }
0x1758   :  { %v2336_v11 = vsel %vm449_vm4, %v2331_v45, 0  ;;  %5863 = vmatprep.subr.bf16.mxu0 %v6783_v0  ;;  %v6255_v45 = vld [vmem:[#allocation17] sm:$0xff]  }
0x1759   :  { %5858 = vmatpush3.bf16.msra.mxu1 %v2336_v11  ;;  %v6207_v16 = vpop.permute.xlu0 %6206  ;;  %v6257_v11 = vld [vmem:[%s8152_s15] sm:$0xff]  }
0x175a   :  { %5871 = vmatprep.subr.bf16.mxu1 %v6783_v0  ;;  %v6209_v19 = vunpack.i.h.bf16 %v6207_v16  ;;  %v6208_v20 = vunpack.i.l.bf16 %v6207_v16  ;;  %v6260_v16 = vld [vmem:[%s8152_s15 + $0x18] sm:$0xff]  }
0x175b   :  { %v6202_v61 = vpop.permute.xlu1 %6201 }
0x175c   :  { %v6344_v5 = vpop.eup %6343  ;;  %v6204_v1 = vunpack.i.h.bf16 %v6202_v61  ;;  %v6203_v2 = vunpack.i.l.bf16 %v6202_v61 }
0x175d   :  { %v2278_v63 = vmul.f32 %v6344_v5, %v6340_v4  ;;  %v6258_v5 = vld [vmem:[%s8152_s15 + $0x8] sm:$0xff]  }
0x175e   :  { %v6346_v10 = vpop.eup %6345  ;;  %v2403_v18 = vsel %vm320_vm2, %v7457_v15, %v6204_v1  ;;  %v2402_v12 = vsel %vm320_vm2, %v7455_v9, %v6203_v2  ;;  %v5357_v9 = vld [vmem:[#allocation16] ss:$0 sm:$0xff] }
0x175f   :  { %v2280_v13 = vpack.c.bf16 %v2278_v63, %v2278_v63  ;;  %v2279_v17 = vmul.f32 %v6346_v10, %v6342_v39  ;;  %v2404_v26 = vsel %vm1239_vm5, %v2402_v12, %v6208_v20  ;;  %v2405_v28 = vsel %vm1239_vm5, %v2403_v18, %v6209_v19  ;;  %v6259_v2 = vld [vmem:[%s8152_s15 + $0x10] sm:$0xff]  }
0x1760   :  { %v5361_v18 = vld [vmem:[#allocation19] ss:$0 sm:$0xff] }
0x1761   :  { %5854 = vmatmul.mubr.msk.bf16.vlgmr.msra.gmra.mrb[68].mxu0 %vm320_vm2, %v2280_v13  ;;  %v2281_v48 = vpack.c.bf16 %v2279_v17, %v2279_v17 }
0x1762   :  { %5867 = vmatprep.mubr.msk.bf16.mxu0 %vm6784_vm0, %v6783_v0  ;;  %5864 = vmatpush3.bf16.msra.mxu0 %v6253_v49 }
0x1763   :  { %5860 = vmatmul.mubr.msk.bf16.vlgmr.msra.gmra.mrb[68].mxu1 %vm320_vm2, %v2281_v48  ;;  %5865 = vmatprep.subr.bf16.mxu0 %v6783_v0 }
0x1764   :  { %5875 = vmatprep.mubr.msk.bf16.mxu1 %vm6784_vm0, %v6783_v0  ;;  %5872 = vmatpush3.bf16.msra.mxu1 %v6255_v45 }
0x1765   :  { %5873 = vmatprep.subr.bf16.mxu1 %v6783_v0 }
0x1766   :  { %5866 = vmatpush3.bf16.msra.mxu0 %v6254_v51  ;;  %v7591_v51 = vsub.s32 1, %v7169_v23 }
0x1767   :  { %5879 = vmatprep.subr.bf16.mxu0 %v6783_v0 }
0x1834   :  { %v2324_v52 = vpop.f32.mrb[68].mxu0 }
0x1835   :  { %v5855_v53 = vpop.f32.mrb[69].mxu0 }
0x1836   :  { %v2327_v54 = vpop.f32.mrb[70].mxu0  ;;  %v2372_v55 = vpop.f32.mrb[68].mxu1  ;;  %v2507_v53 = vrot.slane %v7377_v47, %v7591_v51 }
0x1837   :  { %v6210_v56 = vpack.i.bf16 %v2372_v55, %v2324_v52  ;;  %v5856_v8 = vpop.f32.mrb[71].mxu0  ;;  %v5861_v24 = vpop.f32.mrb[69].mxu1 }
0x1838   :  { %v2375_v59 = vpop.f32.mrb[70].mxu1  ;;  %v2513_v24 = vrot.slane %v7384_v50, %v7591_v51 }
0x1839   :  { %v5862_v60 = vpop.f32.mrb[71].mxu1  ;;  %6211 = vrot.lane.b32.xlu1 %v6210_v56, %s6796_s5 }
0x18ab   :  { %v6212_v21 = vpop.permute.xlu1 %6211 }
0x18ac   :  { %v6214_v22 = vunpack.i.h.bf16 %v6212_v21  ;;  %v6213_v25 = vunpack.i.l.bf16 %v6212_v21 }
0x18ae   :  { %v2407_v29 = vsel %vm1242_vm6, %v2405_v28, %v6214_v22  ;;  %v2406_v30 = vsel %vm1242_vm6, %v2404_v26, %v6213_v25 }
0x18af   :  { %v2408_v31 = vpack.c.bf16 %v2407_v29, %v2406_v30  ;;  %v5365_v30 = vld [vmem:[#allocation20] ss:$0 sm:$0xff] }
0x18b1   :  { %5868 = vmatmul.mubr.msk.bf16.vlgmr.msra.gmra.mrb[72].mxu0 %vm270_vm1, %v2408_v31 }
0x18b2   :  { %5887 = vmatprep.mubr.msk.bf16.mxu0 %vm6784_vm0, %v6783_v0  ;;  %5880 = vmatpush3.bf16.msra.mxu0 %v6257_v11 }
0x18b3   :  { %5881 = vmatprep.subr.bf16.mxu0 %v6783_v0 }
0x18b6   :  { %5882 = vmatpush3.bf16.msra.mxu0 %v6258_v5 }
0x18b7   :  { %5883 = vmatprep.subr.bf16.mxu0 %v6783_v0 }
0x18ba   :  { %5884 = vmatpush3.bf16.msra.mxu0 %v6259_v2 }
0x18bb   :  { %5885 = vmatprep.subr.bf16.mxu0 %v6783_v0 }
0x18be   :  { %5886 = vmatpush3.bf16.msra.mxu0 %v6260_v16 }
0x18bf   :  { %5905 = vmatprep.subr.bf16.mxu0 %v6783_v0 }
0x1984   :  { %v2469_v15 = vpop.f32.mrb[72].mxu0 }
0x1985   :  { %v2470_v32 = vadd.f32 %v5357_v9, %v2469_v15  ;;  %v5869_v33 = vpop.f32.mrb[73].mxu0 }
0x1986   :  { %v2472_v34 = vpop.f32.mrb[74].mxu0 }
0x1987   :  { %v2473_v35 = vadd.f32 %v5357_v9, %v2472_v34  ;;  %v5870_v36 = vpop.f32.mrb[75].mxu0  ;;  %v2476_v14 = vadd.f32 %v2470_v32, %v7388_v57 }
0x1989   :  { %v2478_v62 = vsel %vm270_vm1, %v2476_v14, 0.0  ;;  %v2477_v6 = vadd.f32 %v2473_v35, %v7390_v58  ;;  %v6256_v58 = vld [vmem:[#allocation17 + $0x8] sm:$0xff]  }
0x198a   :  { %2479 = vadd.xlane.f32.xlu0 %v2478_v62  ;;  %5874 = vmatpush3.bf16.msra.mxu1 %v6256_v58 }
0x198b   :  { %v2481_v7 = vsel %vm270_vm1, %v2477_v6, 0.0  ;;  %5891 = vmatprep.subr.bf16.mxu1 %v6783_v0 }
0x198c   :  { %2482 = vadd.xlane.f32.xlu1 %v2481_v7 }
0x1a17   :  { %v2480_v3 = vpop.xlane.xlu0 %2479 }
0x1a18   :  { %v2484_v4 = vmul.f32 0.03125, %v2480_v3 }
0x1a19   :  { %v2483_v37 = vpop.xlane.xlu1 %2482 }
0x1a1a   :  { %v2486_v39 = vsub.f32 %v2476_v14, %v2484_v4  ;;  %v2485_v40 = vmul.f32 0.03125, %v2483_v37 }
0x1a1c   :  { %v2487_v41 = vsub.f32 %v2477_v6, %v2485_v40  ;;  %v2488_v42 = vmul.f32 %v2486_v39, %v2486_v39 }
0x1a1e   :  { %v2490_v43 = vsel %vm270_vm1, %v2488_v42, 0.0  ;;  %v2489_v44 = vmul.f32 %v2487_v41, %v2487_v41 }
0x1a1f   :  { %2491 = vadd.xlane.f32.xlu0 %v2490_v43 }
0x1a20   :  { %v2493_v57 = vsel %vm270_vm1, %v2489_v44, 0.0  ;;  %v6261_v44 = vld [vmem:[%s8181_s24 + $0x10] sm:$0xff]  }
0x1a23   :  { %2494 = vadd.xlane.f32.xlu0 %v2493_v57  ;;  %v6262_v57 = vld [vmem:[%s8181_s24 + $0x18] sm:$0xff]  }
0x1aac   :  { %v2492_v63 = vpop.xlane.xlu0 %2491 }
0x1aad   :  { %v2496_v10 = vmul.f32 0.03125, %v2492_v63 }
0x1aaf   :  { %v2498_v13 = vadd.f32 1e-05, %v2496_v10 }
0x1ab0   :  { %v2495_v17 = vpop.xlane.xlu0 %2494 }
0x1ab1   :  { %6347 = vrsqrt.f32 %v2498_v13  ;;  %v2497_v48 = vmul.f32 0.03125, %v2495_v17  ;;  %v7624_v13 = vsub.s32 2, %v7169_v23 }
0x1ab3   :  { %v2499_v49 = vadd.f32 1e-05, %v2497_v48  ;;  %v2702_v17 = vrot.slane %v7377_v47, %v7624_v13  ;;  %v5377_v47 = vld [vmem:[#allocation8 + $0x1] ss:$0 sm:$0xff] }
0x1ab5   :  { %6349 = vrsqrt.f32 %v2499_v49 }
0x1abb   :  { %v6348_v52 = vpop.eup %6347 }
0x1abc   :  { %v2502_v54 = vmul.f32 %v6348_v52, %v2486_v39 }
0x1abe   :  { %v2508_v56 = vmul.f32 %v2507_v53, %v2502_v54 }
0x1abf   :  { %v6350_v55 = vpop.eup %6349 }
0x1ac0   :  { %v2503_v8 = vmul.f32 %v6350_v55, %v2487_v41  ;;  %v2514_v60 = vadd.f32 %v2513_v24, %v2508_v56  ;;  %v2708_v55 = vrot.slane %v7384_v50, %v7624_v13 }
0x1ac2   :  { %v2509_v59 = vmul.f32 %v2507_v53, %v2503_v8 }
0x1ac4   :  { %v2515_v61 = vadd.f32 %v2513_v24, %v2509_v59 }
0x1ac6   :  { %v2516_v1 = vpack.c.bf16 %v2515_v61, %v2514_v60 }
0x1ac8   :  { %5876 = vmatmul.mubr.msk.bf16.vlgmr.msra.gmra.mrb[72].mxu1 %vm270_vm1, %v2516_v1 }
0x1ac9   :  { %5895 = vmatprep.mubr.msk.bf16.mxu1 %vm6784_vm0, %v6783_v0  ;;  %5892 = vmatpush3.bf16.msra.mxu1 %v6261_v44 }
0x1aca   :  { %5893 = vmatprep.subr.bf16.mxu1 %v6783_v0 }
0x1acd   :  { %5894 = vmatpush3.bf16.msra.mxu1 %v6262_v57 }
0x1ace   :  { %5899 = vmatprep.subr.bf16.mxu1 %v6783_v0 }
0x1b9b   :  { %v2577_v12 = vpop.f32.mrb[72].mxu1 }
0x1b9c   :  { %v2578_v19 = vadd.f32 %v5361_v18, %v2577_v12  ;;  %v5877_v20 = vpop.f32.mrb[73].mxu1 }
0x1b9d   :  { %v2580_v21 = vpop.f32.mrb[74].mxu1 }
0x1b9e   :  { %v2581_v22 = vadd.f32 %v5361_v18, %v2580_v21  ;;  %v5878_v25 = vpop.f32.mrb[75].mxu1  ;;  %v2584_v26 = vmax.f32 %v2578_v19, 0.0 }
0x1ba0   :  { %v2585_v28 = vmax.f32 %v2581_v22, 0.0 }
0x1ba2   :  { %v2586_v29 = vpack.c.bf16 %v2585_v28, %v2584_v26 }
0x1ba4   :  { %5888 = vmatmul.mubr.msk.bf16.vlgmr.msra.gmra.mrb[76].mxu0 %vm2626_vm7, %v2586_v29 }
0x1ba5   :  { %5907 = vmatprep.mubr.msk.bf16.mxu0 %vm6784_vm0, %v6783_v0 }
0x1c77   :  { %v2664_v31 = vpop.f32.mrb[76].mxu0 }
0x1c78   :  { %v2665_v9 = vadd.f32 %v5365_v30, %v2664_v31  ;;  %v5889_v15 = vpop.f32.mrb[77].mxu0 }
0x1c79   :  { %v2667_v32 = vpop.f32.mrb[78].mxu0 }
0x1c7a   :  { %v2668_v33 = vadd.f32 %v5365_v30, %v2667_v32  ;;  %v5890_v34 = vpop.f32.mrb[79].mxu0  ;;  %v2671_v35 = vadd.f32 %v2665_v9, %v2514_v60 }
0x1c7c   :  { %v2673_v36 = vsel %vm270_vm1, %v2671_v35, 0.0  ;;  %v2672_v14 = vadd.f32 %v2668_v33, %v2515_v61 }
0x1c7d   :  { %2674 = vadd.xlane.f32.xlu1 %v2673_v36 }
0x1c7e   :  { %v2676_v62 = vsel %vm270_vm1, %v2672_v14, 0.0 }
0x1c7f   :  { %2677 = vadd.xlane.f32.xlu0 %v2676_v62 }
0x1d0a   :  { %v2675_v6 = vpop.xlane.xlu1 %2674 }
0x1d0b   :  { %v2679_v7 = vmul.f32 0.03125, %v2675_v6 }
0x1d0c   :  { %v2678_v3 = vpop.xlane.xlu0 %2677 }
0x1d0d   :  { %v2681_v4 = vsub.f32 %v2671_v35, %v2679_v7  ;;  %v2680_v37 = vmul.f32 0.03125, %v2678_v3 }
0x1d0f   :  { %v2682_v39 = vsub.f32 %v2672_v14, %v2680_v37  ;;  %v2683_v40 = vmul.f32 %v2681_v4, %v2681_v4 }
0x1d11   :  { %v2685_v41 = vsel %vm270_vm1, %v2683_v40, 0.0  ;;  %v2684_v42 = vmul.f32 %v2682_v39, %v2682_v39 }
0x1d12   :  { %2686 = vadd.xlane.f32.xlu1 %v2685_v41 }
0x1d13   :  { %v2688_v43 = vsel %vm270_vm1, %v2684_v42, 0.0 }
0x1d14   :  { %2689 = vadd.xlane.f32.xlu0 %v2688_v43 }
0x1d9f   :  { %v2687_v45 = vpop.xlane.xlu1 %2686 }
0x1da0   :  { %v2691_v58 = vmul.f32 0.03125, %v2687_v45 }
0x1da1   :  { %v2690_v11 = vpop.xlane.xlu0 %2689 }
0x1da2   :  { %v2693_v5 = vadd.f32 1e-05, %v2691_v58  ;;  %v2692_v63 = vmul.f32 0.03125, %v2690_v11 }
0x1da4   :  { %6351 = vrsqrt.f32 %v2693_v5  ;;  %v2694_v10 = vadd.f32 1e-05, %v2692_v63 }
0x1da6   :  { %6353 = vrsqrt.f32 %v2694_v10 }
0x1dae   :  { %v6352_v48 = vpop.eup %6351 }
0x1daf   :  { %v2697_v49 = vmul.f32 %v6352_v48, %v2681_v4 }
0x1db0   :  { %v6354_v52 = vpop.eup %6353 }
0x1db1   :  { %v2703_v53 = vmul.f32 %v2702_v17, %v2697_v49  ;;  %v2698_v54 = vmul.f32 %v6354_v52, %v2682_v39 }
0x1db3   :  { %v2704_v56 = vmul.f32 %v2702_v17, %v2698_v54  ;;  %v7630_v8 = vadd.f32 %v2708_v55, %v2703_v53 }
0x1db5   :  { %v7632_v24 = vadd.f32 %v2708_v55, %v2704_v56 }
0x1db7   :  { %v2715_v23 = vpack.c.bf16 %v7632_v24, %v7630_v8 }
0x1db9   :  { %5896 = vmatmul.mubr.msk.bf16.vlgmr.msra.gmra.mrb[76].mxu1 %vm270_vm1, %v2715_v23 }
0x1dba   :  { %5901 = vmatprep.mubr.msk.bf16.mxu1 %vm6784_vm0, %v6783_v0 }
0x1e8c   :  { %v2778_v59 = vpop.f32.mrb[76].mxu1 }
0x1e8d   :  { %v2779_v60 = vadd.f32 %v5377_v47, %v2778_v59  ;;  %v5897_v61 = vpop.f32.mrb[77].mxu1 }
0x1e8e   :  { %v2781_v1 = vpop.f32.mrb[78].mxu1 }
0x1e8f   :  { %v7639_v2 = vpack.c.bf16 %v2779_v60, %v2779_v60  ;;  %v2782_v50 = vadd.f32 %v5377_v47, %v2781_v1  ;;  %v5898_v16 = vpop.f32.mrb[79].mxu1 }
0x1e91   :  { %v7641_v18 = vpack.c.bf16 %v2782_v50, %v2782_v50  ;;  %2788 = vrot.lane.b32.xlu1 %v7639_v2, %s6785_s26 }
0x1e93   :  { %2837 = vrot.lane.b32.xlu0 %v7641_v18, %s6785_s26 }
0x1f03   :  { %v2789_v12 = vpop.permute.xlu1 %2788 }
0x1f04   :  { %v2794_v19 = vsel %vm320_vm2, %v2789_v12, 0 }
0x1f05   :  { %5900 = vmatpush3.bf16.xpose.msra.mxu1 %v2794_v19  ;;  %v2838_v20 = vpop.permute.xlu0 %2837 }
0x1f06   :  { %v2843_v21 = vsel %vm320_vm2, %v2838_v20, 0  ;;  %5911 = vmatprep.subr.bf16.mxu1 %v6783_v0 }
0x1f07   :  { %5906 = vmatpush3.bf16.xpose.msra.mxu0 %v2843_v21 }
0x1f08   :  { %5917 = vmatprep.subr.bf16.mxu0 %v6783_v0 }
0x1f0c   :  { %5902 = vmatmul.mubr.msk.bf16.vlgmr.msra.gmra.mrb[80].mxu1 %vm320_vm2, %v7639_v2 }
0x1f0d   :  { %5913 = vmatprep.mubr.msk.bf16.mxu1 %vm6784_vm0, %v6783_v0 }
0x1f0e   :  { %5908 = vmatmul.mubr.msk.bf16.vlgmr.msra.gmra.mrb[80].mxu0 %vm320_vm2, %v7641_v18 }
0x1f0f   :  { %5919 = vmatprep.mubr.msk.bf16.mxu0 %vm6784_vm0, %v6783_v0 }
0x1fdf   :  { %v2830_v22 = vpop.f32.mrb[80].mxu1 }
0x1fe0   :  { %v2885_v25 = vmul.f32 0.35355338, %v2830_v22  ;;  %v5903_v26 = vpop.f32.mrb[81].mxu1 }
0x1fe1   :  { %v2833_v28 = vpop.f32.mrb[82].mxu1  ;;  %v2879_v29 = vpop.f32.mrb[80].mxu0 }
0x1fe2   :  { %v2887_v30 = vadd.f32 %v2885_v25, %v7172_v27  ;;  %v2886_v31 = vmul.f32 0.35355338, %v2879_v29  ;;  %v5904_v9 = vpop.f32.mrb[83].mxu1  ;;  %v5909_v15 = vpop.f32.mrb[81].mxu0 }
0x1fe3   :  { %v2882_v32 = vpop.f32.mrb[82].mxu0 }
0x1fe4   :  { %v5910_v33 = vpop.f32.mrb[83].mxu0  ;;  %v2889_v34 = vsel %vm320_vm2, %v2887_v30, -inf  ;;  %v2888_v35 = vadd.f32 %v2886_v31, %v7172_v27 }
0x1fe5   :  { %2890 = vmax.xlane.f32.xlu1 %v2889_v34 }
0x1fe6   :  { %v2892_v36 = vsel %vm320_vm2, %v2888_v35, -inf }
0x1fe7   :  { %2893 = vmax.xlane.f32.xlu0 %v2892_v36 }
0x1ff6   :  { %2913 = vrot.lane.b32.xlu1 %v7639_v2, %s8182_s28 }
0x2072   :  { %v2891_v14 = vpop.xlane.xlu1 %2890 }
0x2073   :  { %v2895_v62 = vsub.f32 %v2887_v30, %v2891_v14 }
0x2074   :  { %v2894_v6 = vpop.xlane.xlu0 %2893 }
0x2075   :  { %v2897_v7 = vmul.f32 1.442695, %v2895_v62  ;;  %v2896_v3 = vsub.f32 %v2888_v35, %v2894_v6 }
0x2076   :  { %v2914_v4 = vpop.permute.xlu1 %2913 }
0x2077   :  { %6355 = vpow2.f32 %v2897_v7  ;;  %v2899_v37 = vmul.f32 1.442695, %v2896_v3  ;;  %v2919_v39 = vsel %vm449_vm4, %v2914_v4, 0 }
0x2078   :  { %5912 = vmatpush3.bf16.msra.mxu1 %v2919_v39 }
0x2079   :  { %6357 = vpow2.f32 %v2899_v37  ;;  %5923 = vmatprep.subr.bf16.mxu1 %v6783_v0 }
0x2081   :  { %v6356_v40 = vpop.eup %6355 }
0x2082   :  { %v2901_v41 = vsel %vm320_vm2, %v6356_v40, 0.0 }
0x2083   :  { %v6358_v42 = vpop.eup %6357  ;;  %2902 = vadd.xlane.f32.xlu1 %v2901_v41 }
0x2084   :  { %v2904_v43 = vsel %vm320_vm2, %v6358_v42, 0.0 }
0x2085   :  { %2905 = vadd.xlane.f32.xlu0 %v2904_v43 }
0x2094   :  { %3011 = vrot.lane.b32.xlu1 %v7639_v2, %s6787_s20 }
0x2098   :  { %3061 = vrot.lane.b32.xlu1 %v7641_v18, %s6787_s20 }
0x209b   :  { %2961 = vrot.lane.b32.xlu0 %v7641_v18, %s8182_s28 }
0x209c   :  { %3059 = vrot.lane.b32.xlu1 %v7641_v18, %s6788_s4 }
0x209f   :  { %3009 = vrot.lane.b32.xlu0 %v7639_v2, %s6788_s4 }
0x2110   :  { %v2903_v44 = vpop.xlane.xlu1 %2902 }
0x2111   :  { %6359 = vrcp.f32 %v2903_v44 }
0x2112   :  { %v2906_v57 = vpop.xlane.xlu0 %2905 }
0x2113   :  { %6361 = vrcp.f32 %v2906_v57 }
0x2114   :  { %v3012_v11 = vpop.permute.xlu1 %3011 }
0x2115   :  { %v3017_v52 = vsel %vm320_vm2, %v3012_v11, 0 }
0x2116   :  { %v2962_v45 = vpop.permute.xlu0 %2961 }
0x2117   :  { %v2967_v58 = vsel %vm449_vm4, %v2962_v45, 0 }
0x2118   :  { %5918 = vmatpush3.bf16.msra.mxu0 %v2967_v58  ;;  %v3062_v49 = vpop.permute.xlu1 %3061 }
0x2119   :  { %5929 = vmatprep.subr.bf16.mxu0 %v6783_v0  ;;  %v3067_v54 = vsel %vm320_vm2, %v3062_v49, 0 }
0x211a   :  { %v3010_v55 = vpop.permute.xlu0 %3009 }
0x211b   :  { %v6360_v5 = vpop.eup %6359 }
0x211c   :  { %v2909_v63 = vmul.f32 %v6360_v5, %v6356_v40  ;;  %v3060_v56 = vpop.permute.xlu1 %3059 }
0x211d   :  { %v6362_v10 = vpop.eup %6361 }
0x211e   :  { %v2910_v17 = vmul.f32 %v6362_v10, %v6358_v42  ;;  %v2911_v48 = vpack.c.bf16 %v2909_v63, %v2909_v63 }
0x2120   :  { %5914 = vmatmul.mubr.msk.bf16.vlgmr.msra.gmra.mrb[84].mxu1 %vm320_vm2, %v2911_v48  ;;  %v2912_v53 = vpack.c.bf16 %v2910_v17, %v2910_v17 }
0x2121   :  { %5924 = vmatpush3.bf16.xpose.msra.mxu1 %v3017_v52  ;;  %5925 = vmatprep.mubr.msk.bf16.mxu1 %vm6784_vm0, %v6783_v0 }
0x2122   :  { %5920 = vmatmul.mubr.msk.bf16.vlgmr.msra.gmra.mrb[84].mxu0 %vm320_vm2, %v2912_v53  ;;  %5935 = vmatprep.subr.bf16.mxu1 %v6783_v0 }
0x2123   :  { %5930 = vmatpush3.bf16.xpose.msra.mxu0 %v3067_v54  ;;  %5931 = vmatprep.mubr.msk.bf16.mxu0 %vm6784_vm0, %v6783_v0 }
0x2124   :  { %5941 = vmatprep.subr.bf16.mxu0 %v6783_v0 }
0x2128   :  { %5926 = vmatmul.mubr.msk.bf16.vlgmr.msra.gmra.mrb[88].mxu1 %vm320_vm2, %v3010_v55 }
0x2129   :  { %5937 = vmatprep.mubr.msk.bf16.mxu1 %vm6784_vm0, %v6783_v0 }
0x212a   :  { %5932 = vmatmul.mubr.msk.bf16.vlgmr.msra.gmra.mrb[88].mxu0 %vm320_vm2, %v3060_v56 }
0x212b   :  { %5943 = vmatprep.mubr.msk.bf16.mxu0 %vm6784_vm0, %v6783_v0 }
0x21f3   :  { %v7697_v23 = vpop.f32.mrb[84].mxu1 }
0x21f4   :  { %v5915_v47 = vpop.f32.mrb[85].mxu1 }
0x21f5   :  { %v2958_v59 = vpop.f32.mrb[86].mxu1  ;;  %v7699_v60 = vpop.f32.mrb[84].mxu0 }
0x21f6   :  { %v5916_v61 = vpop.f32.mrb[87].mxu1  ;;  %v5921_v1 = vpop.f32.mrb[85].mxu0 }
0x21f7   :  { %v3006_v50 = vpop.f32.mrb[86].mxu0 }
0x21f8   :  { %v5922_v16 = vpop.f32.mrb[87].mxu0 }
0x21fb   :  { %v3053_v12 = vpop.f32.mrb[88].mxu1 }
0x21fc   :  { %v3109_v19 = vmul.f32 0.35355338, %v3053_v12  ;;  %v5927_v20 = vpop.f32.mrb[89].mxu1 }
0x21fd   :  { %v3056_v21 = vpop.f32.mrb[90].mxu1  ;;  %v3103_v22 = vpop.f32.mrb[88].mxu0 }
0x21fe   :  { %v3110_v25 = vmul.f32 0.35355338, %v3103_v22  ;;  %v5928_v26 = vpop.f32.mrb[91].mxu1  ;;  %v5933_v28 = vpop.f32.mrb[89].mxu0  ;;  %v3111_v29 = vadd.f32 %v3109_v19, %v7172_v27 }
0x21ff   :  { %v3106_v30 = vpop.f32.mrb[90].mxu0 }
0x2200   :  { %v3112_v31 = vadd.f32 %v3110_v25, %v7172_v27  ;;  %v5934_v9 = vpop.f32.mrb[91].mxu0  ;;  %v3113_v15 = vsel %vm320_vm2, %v3111_v29, -inf }
0x2201   :  { %3114 = vmax.xlane.f32.xlu0 %v3113_v15 }
0x2202   :  { %v3116_v32 = vsel %vm320_vm2, %v3112_v31, -inf }
0x2203   :  { %3117 = vmax.xlane.f32.xlu1 %v3116_v32 }
0x2214   :  { %3137 = vrot.lane.b32.xlu1 %v7639_v2, %s6789_s12 }
0x2218   :  { %3235 = vrot.lane.b32.xlu1 %v7639_v2, %s6790_s23 }
0x221c   :  { %3285 = vrot.lane.b32.xlu1 %v7641_v18, %s6790_s23 }
0x2220   :  { %3283 = vrot.lane.b32.xlu1 %v7641_v18, %s6791_s1 }
0x228e   :  { %v3115_v33 = vpop.xlane.xlu0 %3114 }
0x228f   :  { %v3119_v34 = vsub.f32 %v3111_v29, %v3115_v33 }
0x2290   :  { %v3118_v35 = vpop.xlane.xlu1 %3117 }
0x2291   :  { %v3121_v36 = vmul.f32 1.442695, %v3119_v34  ;;  %v3120_v14 = vsub.f32 %v3112_v31, %v3118_v35 }
0x2293   :  { %6363 = vpow2.f32 %v3121_v36  ;;  %v3123_v62 = vmul.f32 1.442695, %v3120_v14 }
0x2294   :  { %v3138_v6 = vpop.permute.xlu1 %3137 }
0x2295   :  { %6365 = vpow2.f32 %v3123_v62  ;;  %v3143_v7 = vsel %vm449_vm4, %v3138_v6, 0 }
0x2296   :  { %5936 = vmatpush3.bf16.msra.mxu1 %v3143_v7 }
0x2297   :  { %5947 = vmatprep.subr.bf16.mxu1 %v6783_v0 }
0x2298   :  { %v3236_v57 = vpop.permute.xlu1 %3235 }
0x2299   :  { %v3241_v5 = vsel %vm320_vm2, %v3236_v57, 0 }
0x229c   :  { %v3286_v10 = vpop.permute.xlu1 %3285 }
0x229d   :  { %v6364_v3 = vpop.eup %6363  ;;  %v3291_v48 = vsel %vm320_vm2, %v3286_v10, 0 }
0x229e   :  { %v3125_v4 = vsel %vm320_vm2, %v6364_v3, 0.0 }
0x229f   :  { %v6366_v37 = vpop.eup %6365  ;;  %3126 = vadd.xlane.f32.xlu0 %v3125_v4 }
0x22a0   :  { %v3128_v39 = vsel %vm320_vm2, %v6366_v37, 0.0  ;;  %v3284_v52 = vpop.permute.xlu1 %3283 }
0x22a3   :  { %3129 = vadd.xlane.f32.xlu0 %v3128_v39 }
0x22b9   :  { %3185 = vrot.lane.b32.xlu0 %v7641_v18, %s6789_s12 }
0x22bd   :  { %3233 = vrot.lane.b32.xlu0 %v7639_v2, %s6791_s1 }
0x232c   :  { %v3127_v40 = vpop.xlane.xlu0 %3126 }
0x232d   :  { %6367 = vrcp.f32 %v3127_v40 }
0x2330   :  { %v3130_v41 = vpop.xlane.xlu0 %3129 }
0x2331   :  { %6369 = vrcp.f32 %v3130_v41 }
0x2334   :  { %v3186_v42 = vpop.permute.xlu0 %3185 }
0x2335   :  { %v3191_v43 = vsel %vm449_vm4, %v3186_v42, 0 }
0x2336   :  { %5942 = vmatpush3.bf16.msra.mxu0 %v3191_v43 }
0x2337   :  { %v6368_v44 = vpop.eup %6367  ;;  %5953 = vmatprep.subr.bf16.mxu0 %v6783_v0 }
0x2338   :  { %v3133_v45 = vmul.f32 %v6368_v44, %v6364_v3  ;;  %v3234_v49 = vpop.permute.xlu0 %3233 }
0x233a   :  { %v3135_v58 = vpack.c.bf16 %v3133_v45, %v3133_v45 }
0x233b   :  { %v6370_v11 = vpop.eup %6369 }
0x233c   :  { %v3134_v63 = vmul.f32 %v6370_v11, %v6366_v37  ;;  %5938 = vmatmul.mubr.msk.bf16.vlgmr.msra.gmra.mrb[92].mxu1 %vm320_vm2, %v3135_v58 }
0x233d   :  { %5948 = vmatpush3.bf16.xpose.msra.mxu1 %v3241_v5  ;;  %5949 = vmatprep.mubr.msk.bf16.mxu1 %vm6784_vm0, %v6783_v0 }
0x233e   :  { %v3136_v17 = vpack.c.bf16 %v3134_v63, %v3134_v63  ;;  %5959 = vmatprep.subr.bf16.mxu1 %v6783_v0 }
0x2340   :  { %5944 = vmatmul.mubr.msk.bf16.vlgmr.msra.gmra.mrb[92].mxu0 %vm320_vm2, %v3136_v17 }
0x2341   :  { %5954 = vmatpush3.bf16.xpose.msra.mxu0 %v3291_v48  ;;  %5955 = vmatprep.mubr.msk.bf16.mxu0 %vm6784_vm0, %v6783_v0 }
0x2342   :  { %5965 = vmatprep.subr.bf16.mxu0 %v6783_v0 }
0x2344   :  { %5950 = vmatmul.mubr.msk.bf16.vlgmr.msra.gmra.mrb[96].mxu1 %vm320_vm2, %v3234_v49 }
0x2345   :  { %5961 = vmatprep.mubr.msk.bf16.mxu1 %vm6784_vm0, %v6783_v0 }
0x2348   :  { %5956 = vmatmul.mubr.msk.bf16.vlgmr.msra.gmra.mrb[96].mxu0 %vm320_vm2, %v3284_v52 }
0x2349   :  { %5967 = vmatprep.mubr.msk.bf16.mxu0 %vm6784_vm0, %v6783_v0 }
0x240f   :  { %v7739_v53 = vpop.f32.mrb[92].mxu1 }
0x2410   :  { %v5939_v54 = vpop.f32.mrb[93].mxu1 }
0x2411   :  { %v3182_v55 = vpop.f32.mrb[94].mxu1 }
0x2412   :  { %v5940_v56 = vpop.f32.mrb[95].mxu1 }
0x2413   :  { %v7741_v47 = vpop.f32.mrb[92].mxu0 }
0x2414   :  { %v6215_v59 = vpack.i.bf16 %v7741_v47, %v7739_v53  ;;  %v5945_v61 = vpop.f32.mrb[93].mxu0 }
0x2415   :  { %v3230_v1 = vpop.f32.mrb[94].mxu0 }
0x2416   :  { %v5946_v50 = vpop.f32.mrb[95].mxu0 }
0x2417   :  { %v3277_v16 = vpop.f32.mrb[96].mxu1 }
0x2418   :  { %v3333_v12 = vmul.f32 0.35355338, %v3277_v16  ;;  %v5951_v19 = vpop.f32.mrb[97].mxu1 }
0x2419   :  { %v3280_v20 = vpop.f32.mrb[98].mxu1 }
0x241a   :  { %v3335_v21 = vadd.f32 %v3333_v12, %v7172_v27  ;;  %v5952_v22 = vpop.f32.mrb[99].mxu1 }
0x241b   :  { %v3327_v25 = vpop.f32.mrb[96].mxu0 }
0x241c   :  { %v3334_v26 = vmul.f32 0.35355338, %v3327_v25  ;;  %v5957_v28 = vpop.f32.mrb[97].mxu0  ;;  %v3337_v29 = vsel %vm320_vm2, %v3335_v21, -inf }
0x241d   :  { %3338 = vmax.xlane.f32.xlu0 %v3337_v29  ;;  %v3330_v30 = vpop.f32.mrb[98].mxu0 }
0x241e   :  { %v3336_v31 = vadd.f32 %v3334_v26, %v7172_v27  ;;  %v5958_v9 = vpop.f32.mrb[99].mxu0 }
0x2420   :  { %v3340_v15 = vsel %vm320_vm2, %v3336_v31, -inf }
0x2421   :  { %3341 = vmax.xlane.f32.xlu1 %v3340_v15 }
0x2432   :  { %3361 = vrot.lane.b32.xlu1 %v7639_v2, %s6792_s3 }
0x2436   :  { %3459 = vrot.lane.b32.xlu1 %v7639_v2, %s6793_s0 }
0x243a   :  { %3509 = vrot.lane.b32.xlu1 %v7641_v18, %s6793_s0 }
0x243e   :  { %3507 = vrot.lane.b32.xlu1 %v7641_v18, %s6794_s11 }
0x24aa   :  { %v3339_v32 = vpop.xlane.xlu0 %3338 }
0x24ab   :  { %v3343_v33 = vsub.f32 %v3335_v21, %v3339_v32 }
0x24ad   :  { %v3345_v34 = vmul.f32 1.442695, %v3343_v33 }
0x24ae   :  { %v3342_v35 = vpop.xlane.xlu1 %3341 }
0x24af   :  { %6371 = vpow2.f32 %v3345_v34  ;;  %v3344_v36 = vsub.f32 %v3336_v31, %v3342_v35 }
0x24b1   :  { %v3347_v14 = vmul.f32 1.442695, %v3344_v36 }
0x24b2   :  { %v3362_v62 = vpop.permute.xlu1 %3361 }
0x24b3   :  { %6373 = vpow2.f32 %v3347_v14  ;;  %v3367_v6 = vsel %vm449_vm4, %v3362_v62, 0 }
0x24b4   :  { %5960 = vmatpush3.bf16.msra.mxu1 %v3367_v6 }
0x24b5   :  { %5971 = vmatprep.subr.bf16.mxu1 %v6783_v0 }
0x24b6   :  { %v3460_v44 = vpop.permute.xlu1 %3459 }
0x24b7   :  { %v3465_v11 = vsel %vm320_vm2, %v3460_v44, 0 }
0x24b9   :  { %v6372_v7 = vpop.eup %6371 }
0x24ba   :  { %v3349_v3 = vsel %vm320_vm2, %v6372_v7, 0.0  ;;  %v3510_v63 = vpop.permute.xlu1 %3509 }
0x24bb   :  { %3350 = vadd.xlane.f32.xlu0 %v3349_v3  ;;  %v3515_v17 = vsel %vm320_vm2, %v3510_v63, 0 }
0x24bd   :  { %v6374_v4 = vpop.eup %6373 }
0x24be   :  { %v3352_v37 = vsel %vm320_vm2, %v6374_v4, 0.0  ;;  %v3508_v49 = vpop.permute.xlu1 %3507 }
0x24bf   :  { %3353 = vadd.xlane.f32.xlu0 %v3352_v37 }
0x24d5   :  { %3409 = vrot.lane.b32.xlu0 %v7641_v18, %s6792_s3 }
0x24d9   :  { %3457 = vrot.lane.b32.xlu0 %v7639_v2, %s6794_s11 }
0x2548   :  { %v3351_v39 = vpop.xlane.xlu0 %3350 }
0x2549   :  { %6375 = vrcp.f32 %v3351_v39 }
0x254c   :  { %v3354_v40 = vpop.xlane.xlu0 %3353 }
0x254d   :  { %6377 = vrcp.f32 %v3354_v40 }
0x2550   :  { %v3410_v41 = vpop.permute.xlu0 %3409 }
0x2551   :  { %v3415_v42 = vsel %vm449_vm4, %v3410_v41, 0 }
0x2552   :  { %5966 = vmatpush3.bf16.msra.mxu0 %v3415_v42 }
0x2553   :  { %v6376_v43 = vpop.eup %6375  ;;  %5977 = vmatprep.subr.bf16.mxu0 %v6783_v0 }
0x2554   :  { %v3357_v57 = vmul.f32 %v6376_v43, %v6372_v7  ;;  %v3458_v48 = vpop.permute.xlu0 %3457 }
0x2556   :  { %v3359_v45 = vpack.c.bf16 %v3357_v57, %v3357_v57  ;;  %v6263_v57 = vld [vmem:[%s8183_s27 + $0x10] sm:$0xff]  }
0x2557   :  { %v6378_v58 = vpop.eup %6377 }
0x2558   :  { %v3358_v5 = vmul.f32 %v6378_v58, %v6374_v4  ;;  %5962 = vmatmul.mubr.msk.bf16.vlgmr.msra.gmra.mrb[100].mxu1 %vm320_vm2, %v3359_v45  ;;  %v6264_v45 = vld [vmem:[%s8183_s27 + $0x18] sm:$0xff]  }
0x2559   :  { %5972 = vmatpush3.bf16.xpose.msra.mxu1 %v3465_v11  ;;  %5973 = vmatprep.mubr.msk.bf16.mxu1 %vm6784_vm0, %v6783_v0 }
0x255a   :  { %v3360_v10 = vpack.c.bf16 %v3358_v5, %v3358_v5  ;;  %5983 = vmatprep.subr.bf16.mxu1 %v6783_v0 }
0x255c   :  { %5968 = vmatmul.mubr.msk.bf16.vlgmr.msra.gmra.mrb[100].mxu0 %vm320_vm2, %v3360_v10 }
0x255d   :  { %5978 = vmatpush3.bf16.xpose.msra.mxu0 %v3515_v17  ;;  %5979 = vmatprep.mubr.msk.bf16.mxu0 %vm6784_vm0, %v6783_v0 }
0x255e   :  { %5989 = vmatprep.subr.bf16.mxu0 %v6783_v0 }
0x2560   :  { %5974 = vmatmul.mubr.msk.bf16.vlgmr.msra.gmra.mrb[104].mxu1 %vm320_vm2, %v3458_v48 }
0x2561   :  { %5985 = vmatprep.mubr.msk.bf16.mxu1 %vm6784_vm0, %v6783_v0 }
0x2564   :  { %5980 = vmatmul.mubr.msk.bf16.vlgmr.msra.gmra.mrb[104].mxu0 %vm320_vm2, %v3508_v49 }
0x2565   :  { %5991 = vmatprep.mubr.msk.bf16.mxu0 %vm6784_vm0, %v6783_v0 }
0x262b   :  { %v3403_v52 = vpop.f32.mrb[100].mxu1 }
0x262c   :  { %v5963_v54 = vpop.f32.mrb[101].mxu1 }
0x262d   :  { %v3406_v55 = vpop.f32.mrb[102].mxu1 }
0x262e   :  { %v5964_v56 = vpop.f32.mrb[103].mxu1 }
0x262f   :  { %v3451_v61 = vpop.f32.mrb[100].mxu0 }
0x2630   :  { %v6220_v1 = vpack.i.bf16 %v3451_v61, %v3403_v52  ;;  %v5969_v50 = vpop.f32.mrb[101].mxu0 }
0x2631   :  { %v3454_v16 = vpop.f32.mrb[102].mxu0 }
0x2632   :  { %v5970_v12 = vpop.f32.mrb[103].mxu0 }
0x2633   :  { %v3501_v19 = vpop.f32.mrb[104].mxu1 }
0x2634   :  { %v3557_v20 = vmul.f32 0.35355338, %v3501_v19  ;;  %v5975_v21 = vpop.f32.mrb[105].mxu1 }
0x2635   :  { %v3504_v22 = vpop.f32.mrb[106].mxu1 }
0x2636   :  { %v3559_v25 = vadd.f32 %v3557_v20, %v7172_v27  ;;  %v5976_v26 = vpop.f32.mrb[107].mxu1 }
0x2637   :  { %v3551_v28 = vpop.f32.mrb[104].mxu0 }
0x2638   :  { %v3558_v29 = vmul.f32 0.35355338, %v3551_v28  ;;  %v5981_v30 = vpop.f32.mrb[105].mxu0  ;;  %v3561_v31 = vsel %vm320_vm2, %v3559_v25, -inf }
0x2639   :  { %3562 = vmax.xlane.f32.xlu0 %v3561_v31  ;;  %v3554_v9 = vpop.f32.mrb[106].mxu0 }
0x263a   :  { %v3560_v15 = vadd.f32 %v3558_v29, %v7172_v27  ;;  %v5982_v32 = vpop.f32.mrb[107].mxu0 }
0x263c   :  { %v3564_v33 = vsel %vm320_vm2, %v3560_v15, -inf }
0x263d   :  { %3565 = vmax.xlane.f32.xlu1 %v3564_v33 }
0x264e   :  { %3585 = vrot.lane.b32.xlu1 %v7639_v2, %s6795_s10 }
0x2652   :  { %6216 = vrot.lane.b32.xlu1 %v6215_v59, %s6776_s2 }
0x2656   :  { %6221 = vrot.lane.b32.xlu1 %v6220_v1, %s6767_s25 }
0x26c6   :  { %v3563_v34 = vpop.xlane.xlu0 %3562 }
0x26c7   :  { %v3567_v35 = vsub.f32 %v3559_v25, %v3563_v34 }
0x26c9   :  { %v3569_v36 = vmul.f32 1.442695, %v3567_v35 }
0x26ca   :  { %v3566_v14 = vpop.xlane.xlu1 %3565 }
0x26cb   :  { %6379 = vpow2.f32 %v3569_v36  ;;  %v3568_v27 = vsub.f32 %v3560_v15, %v3566_v14 }
0x26cd   :  { %v3571_v62 = vmul.f32 1.442695, %v3568_v27 }
0x26ce   :  { %v3586_v6 = vpop.permute.xlu1 %3585 }
0x26cf   :  { %6381 = vpow2.f32 %v3571_v62  ;;  %v3591_v7 = vsel %vm449_vm4, %v3586_v6, 0 }
0x26d0   :  { %5984 = vmatpush3.bf16.msra.mxu1 %v3591_v7 }
0x26d1   :  { %5995 = vmatprep.subr.bf16.mxu1 %v6783_v0 }
0x26d2   :  { %v6217_v54 = vpop.permute.xlu1 %6216 }
0x26d3   :  { %v6219_v56 = vunpack.i.h.bf16 %v6217_v54  ;;  %v6218_v61 = vunpack.i.l.bf16 %v6217_v54  ;;  %v5417_v54 = vld [vmem:[#allocation13 + $0x1] ss:$0 sm:$0xff] }
0x26d5   :  { %v6380_v2 = vpop.eup %6379  ;;  %v3706_v12 = vsel %vm320_vm2, %v7699_v60, %v6219_v56  ;;  %v3705_v19 = vsel %vm320_vm2, %v7697_v23, %v6218_v61  ;;  %v5401_v60 = vld [vmem:[#allocation10 + $0x1] ss:$0 sm:$0xff] }
0x26d6   :  { %v3573_v53 = vsel %vm320_vm2, %v6380_v2, 0.0  ;;  %v6222_v55 = vpop.permute.xlu1 %6221 }
0x26d7   :  { %3574 = vadd.xlane.f32.xlu0 %v3573_v53  ;;  %v6224_v1 = vunpack.i.h.bf16 %v6222_v55  ;;  %v6223_v50 = vunpack.i.l.bf16 %v6222_v55 }
0x26d9   :  { %v6382_v47 = vpop.eup %6381  ;;  %v3707_v22 = vsel %vm1239_vm5, %v3705_v19, %v6223_v50  ;;  %v3708_v25 = vsel %vm1239_vm5, %v3706_v12, %v6224_v1 }
0x26da   :  { %v3576_v59 = vsel %vm320_vm2, %v6382_v47, 0.0 }
0x26db   :  { %3577 = vadd.xlane.f32.xlu0 %v3576_v59 }
0x26f1   :  { %3633 = vrot.lane.b32.xlu0 %v7641_v18, %s6795_s10 }
0x2764   :  { %v3575_v3 = vpop.xlane.xlu0 %3574 }
0x2765   :  { %6383 = vrcp.f32 %v3575_v3  ;;  %v6266_v3 = vld [vmem:[%s8146_s9 + $0x18] sm:$0xff]  }
0x2768   :  { %v3578_v4 = vpop.xlane.xlu0 %3577 }
0x2769   :  { %6385 = vrcp.f32 %v3578_v4  ;;  %v6267_v4 = vld [vmem:[%s8144_s7 + $0x10] sm:$0xff]  }
0x276c   :  { %v3634_v37 = vpop.permute.xlu0 %3633 }
0x276d   :  { %v3639_v39 = vsel %vm449_vm4, %v3634_v37, 0  ;;  %v6268_v37 = vld [vmem:[%s8144_s7 + $0x18] sm:$0xff]  }
0x276e   :  { %5990 = vmatpush3.bf16.msra.mxu0 %v3639_v39 }
0x276f   :  { %v6384_v40 = vpop.eup %6383  ;;  %6003 = vmatprep.subr.bf16.mxu0 %v6783_v0 }
0x2770   :  { %v3581_v41 = vmul.f32 %v6384_v40, %v6380_v2 }
0x2772   :  { %v3583_v42 = vpack.c.bf16 %v3581_v41, %v3581_v41 }
0x2773   :  { %v6386_v43 = vpop.eup %6385 }
0x2774   :  { %v3582_v44 = vmul.f32 %v6386_v43, %v6382_v47  ;;  %5986 = vmatmul.mubr.msk.bf16.vlgmr.msra.gmra.mrb[108].mxu1 %vm320_vm2, %v3583_v42 }
0x2775   :  { %5999 = vmatprep.mubr.msk.bf16.mxu1 %vm6784_vm0, %v6783_v0  ;;  %5996 = vmatpush3.bf16.msra.mxu1 %v6263_v57 }
0x2776   :  { %v3584_v18 = vpack.c.bf16 %v3582_v44, %v3582_v44  ;;  %5997 = vmatprep.subr.bf16.mxu1 %v6783_v0  ;;  %v7857_v44 = vld [vmem:[%s8154_s17 + $0x4] sm:$0x7] }
0x2778   :  { %5992 = vmatmul.mubr.msk.bf16.vlgmr.msra.gmra.mrb[108].mxu0 %vm320_vm2, %v3584_v18  ;;  %v3812_v18 = vrot.slane %v7857_v44, %v7372_v46 }
0x2779   :  { %6007 = vmatprep.mubr.msk.bf16.mxu0 %vm6784_vm0, %v6783_v0  ;;  %5998 = vmatpush3.bf16.msra.mxu1 %v6264_v45  ;;  %v7864_v45 = vld [vmem:[%s8155_s18 + $0x4] sm:$0x7] }
0x277a   :  { %6011 = vmatprep.subr.bf16.mxu1 %v6783_v0  ;;  %6004 = vmatpush3.bf16.msra.mxu0 %v6267_v4 }
0x277b   :  { %6005 = vmatprep.subr.bf16.mxu0 %v6783_v0 }
0x277e   :  { %6006 = vmatpush3.bf16.msra.mxu0 %v6268_v37 }
0x277f   :  { %6019 = vmatprep.subr.bf16.mxu0 %v6783_v0 }
0x2847   :  { %v3627_v58 = vpop.f32.mrb[108].mxu1 }
0x2848   :  { %v5987_v11 = vpop.f32.mrb[109].mxu1 }
0x2849   :  { %v3630_v5 = vpop.f32.mrb[110].mxu1 }
0x284a   :  { %v5988_v63 = vpop.f32.mrb[111].mxu1 }
0x284b   :  { %v3675_v10 = vpop.f32.mrb[108].mxu0 }
0x284c   :  { %v6225_v17 = vpack.i.bf16 %v3675_v10, %v3627_v58  ;;  %v5993_v48 = vpop.f32.mrb[109].mxu0  ;;  %v3818_v10 = vrot.slane %v7864_v45, %v7372_v46 }
0x284d   :  { %v3678_v49 = vpop.f32.mrb[110].mxu0 }
0x284e   :  { %6226 = vrot.lane.b32.xlu0 %v6225_v17, %s6796_s5  ;;  %v5994_v52 = vpop.f32.mrb[111].mxu0 }
0x28c0   :  { %v6227_v16 = vpop.permute.xlu0 %6226 }
0x28c1   :  { %v6229_v20 = vunpack.i.h.bf16 %v6227_v16  ;;  %v6228_v21 = vunpack.i.l.bf16 %v6227_v16 }
0x28c3   :  { %v3710_v26 = vsel %vm1242_vm6, %v3708_v25, %v6229_v20  ;;  %v3709_v28 = vsel %vm1242_vm6, %v3707_v22, %v6228_v21  ;;  %v5409_v21 = vld [vmem:[#allocation11 + $0x1] ss:$0 sm:$0xff] }
0x28c4   :  { %v3711_v29 = vpack.c.bf16 %v3710_v26, %v3709_v28 }
0x28c6   :  { %6000 = vmatmul.mubr.msk.bf16.vlgmr.msra.gmra.mrb[112].mxu1 %vm270_vm1, %v3711_v29 }
0x28c7   :  { %6015 = vmatprep.mubr.msk.bf16.mxu1 %vm6784_vm0, %v6783_v0 }
0x2999   :  { %v3774_v30 = vpop.f32.mrb[112].mxu1 }
0x299a   :  { %v3775_v31 = vadd.f32 %v5401_v60, %v3774_v30  ;;  %v6001_v23 = vpop.f32.mrb[113].mxu1 }
0x299b   :  { %v3777_v9 = vpop.f32.mrb[114].mxu1 }
0x299c   :  { %v3781_v15 = vadd.f32 %v3775_v31, %v7630_v8  ;;  %v3778_v32 = vadd.f32 %v5401_v60, %v3777_v9  ;;  %v6002_v33 = vpop.f32.mrb[115].mxu1 }
0x299e   :  { %v3782_v34 = vadd.f32 %v3778_v32, %v7632_v24  ;;  %v3783_v35 = vsel %vm270_vm1, %v3781_v15, 0.0  ;;  %v6265_v24 = vld [vmem:[%s8146_s9 + $0x10] sm:$0xff]  }
0x299f   :  { %3784 = vadd.xlane.f32.xlu1 %v3783_v35  ;;  %6012 = vmatpush3.bf16.msra.mxu1 %v6265_v24 }
0x29a0   :  { %v3786_v36 = vsel %vm270_vm1, %v3782_v34, 0.0  ;;  %6013 = vmatprep.subr.bf16.mxu1 %v6783_v0 }
0x29a1   :  { %3787 = vadd.xlane.f32.xlu0 %v3786_v36 }
0x29a3   :  { %6014 = vmatpush3.bf16.msra.mxu1 %v6266_v3 }
0x29a4   :  { %6025 = vmatprep.subr.bf16.mxu1 %v6783_v0 }
0x29a6   :  { %6016 = vmatmul.mubr.msk.bf16.vlgmr.msra.gmra.mrb[116].mxu1 %vm270_vm1, %v7356_v38 }
0x29a7   :  { %6027 = vmatprep.mubr.msk.bf16.mxu1 %vm6784_vm0, %v6783_v0 }
0x2a2c   :  { %v3785_v14 = vpop.xlane.xlu1 %3784 }
0x2a2d   :  { %v3789_v27 = vmul.f32 0.03125, %v3785_v14 }
0x2a2e   :  { %v3788_v62 = vpop.xlane.xlu0 %3787 }
0x2a2f   :  { %v3791_v6 = vsub.f32 %v3781_v15, %v3789_v27  ;;  %v3790_v7 = vmul.f32 0.03125, %v3788_v62 }
0x2a31   :  { %v3792_v2 = vsub.f32 %v3782_v34, %v3790_v7  ;;  %v3793_v53 = vmul.f32 %v3791_v6, %v3791_v6 }
0x2a33   :  { %v3795_v47 = vsel %vm270_vm1, %v3793_v53, 0.0  ;;  %v3794_v8 = vmul.f32 %v3792_v2, %v3792_v2 }
0x2a34   :  { %3796 = vadd.xlane.f32.xlu0 %v3795_v47 }
0x2a35   :  { %v3798_v59 = vsel %vm270_vm1, %v3794_v8, 0.0 }
0x2a36   :  { %3799 = vadd.xlane.f32.xlu1 %v3798_v59 }
0x2a79   :  { %v3950_v55 = vpop.f32.mrb[116].mxu1 }
0x2a7a   :  { %v3951_v56 = vadd.f32 %v5417_v54, %v3950_v55  ;;  %v6017_v61 = vpop.f32.mrb[117].mxu1 }
0x2a7b   :  { %v3953_v1 = vpop.f32.mrb[118].mxu1 }
0x2a7c   :  { %v7877_v50 = vpack.c.bf16 %v3951_v56, %v3951_v56  ;;  %v3954_v46 = vadd.f32 %v5417_v54, %v3953_v1  ;;  %v6018_v16 = vpop.f32.mrb[119].mxu1 }
0x2a7e   :  { %v7879_v12 = vpack.c.bf16 %v3954_v46, %v3954_v46  ;;  %v3965_v19 = vsel %vm320_vm2, %v7877_v50, 0 }
0x2a80   :  { %v4011_v20 = vsel %vm320_vm2, %v7879_v12, 0 }
0x2a81   :  { %6026 = vmatpush3.bf16.xpose.msra.mxu1 %v4011_v20 }
0x2a82   :  { %6037 = vmatprep.subr.bf16.mxu1 %v6783_v0 }
0x2ac1   :  { %v3797_v39 = vpop.xlane.xlu0 %3796 }
0x2ac2   :  { %v3801_v40 = vmul.f32 0.03125, %v3797_v39 }
0x2ac3   :  { %v3800_v38 = vpop.xlane.xlu1 %3799 }
0x2ac4   :  { %v3803_v41 = vadd.f32 1e-05, %v3801_v40  ;;  %v3802_v42 = vmul.f32 0.03125, %v3800_v38 }
0x2ac6   :  { %6387 = vrsqrt.f32 %v3803_v41  ;;  %v3804_v43 = vadd.f32 1e-05, %v3802_v42 }
0x2ac8   :  { %6389 = vrsqrt.f32 %v3804_v43 }
0x2ad0   :  { %v6388_v57 = vpop.eup %6387 }
0x2ad1   :  { %v3807_v58 = vmul.f32 %v6388_v57, %v3791_v6 }
0x2ad2   :  { %v6390_v11 = vpop.eup %6389 }
0x2ad3   :  { %v3813_v5 = vmul.f32 %v3812_v18, %v3807_v58  ;;  %v3808_v63 = vmul.f32 %v6390_v11, %v3792_v2 }
0x2ad5   :  { %v3814_v17 = vmul.f32 %v3812_v18, %v3808_v63  ;;  %v7868_v48 = vadd.f32 %v3818_v10, %v3813_v5 }
0x2ad7   :  { %v7870_v49 = vadd.f32 %v3818_v10, %v3814_v17 }
0x2ad9   :  { %v3821_v52 = vpack.c.bf16 %v7870_v49, %v7868_v48 }
0x2adb   :  { %6008 = vmatmul.mubr.msk.bf16.vlgmr.msra.gmra.mrb[112].mxu0 %vm270_vm1, %v3821_v52 }
0x2adc   :  { %6021 = vmatprep.mubr.msk.bf16.mxu0 %vm6784_vm0, %v6783_v0  ;;  %6020 = vmatpush3.bf16.xpose.msra.mxu0 %v3965_v19 }
0x2add   :  { %6031 = vmatprep.subr.bf16.mxu0 %v6783_v0 }
0x2bae   :  { %v3884_v22 = vpop.f32.mrb[112].mxu0 }
0x2baf   :  { %v3885_v25 = vadd.f32 %v5409_v21, %v3884_v22  ;;  %v6009_v26 = vpop.f32.mrb[113].mxu0 }
0x2bb0   :  { %v3887_v28 = vpop.f32.mrb[114].mxu0 }
0x2bb1   :  { %v7887_v29 = vpack.c.bf16 %v3885_v25, %v3885_v25  ;;  %v3888_v60 = vadd.f32 %v5409_v21, %v3887_v28  ;;  %v6010_v30 = vpop.f32.mrb[115].mxu0 }
0x2bb3   :  { %v7889_v31 = vpack.c.bf16 %v3888_v60, %v3888_v60  ;;  %6022 = vmatmul.mubr.msk.bf16.vlgmr.msra.gmra.mrb[116].mxu0 %vm320_vm2, %v7887_v29 }
0x2bb4   :  { %6033 = vmatprep.mubr.msk.bf16.mxu0 %vm6784_vm0, %v6783_v0 }
0x2bb5   :  { %6028 = vmatmul.mubr.msk.bf16.vlgmr.msra.gmra.mrb[120].mxu1 %vm320_vm2, %v7889_v31 }
0x2bb6   :  { %6039 = vmatprep.mubr.msk.bf16.mxu1 %vm6784_vm0, %v6783_v0 }
0x2c86   :  { %v4001_v23 = vpop.f32.mrb[116].mxu0 }
0x2c87   :  { %v4053_v9 = vmul.f32 0.35355338, %v4001_v23  ;;  %v6023_v15 = vpop.f32.mrb[117].mxu0 }
0x2c88   :  { %v4004_v32 = vpop.f32.mrb[118].mxu0  ;;  %v4047_v33 = vpop.f32.mrb[120].mxu1 }
0x2c89   :  { %v4054_v34 = vmul.f32 0.35355338, %v4047_v33  ;;  %v6024_v35 = vpop.f32.mrb[119].mxu0  ;;  %v6029_v36 = vpop.f32.mrb[121].mxu1  ;;  %v4055_v14 = vsel %vm320_vm2, %v4053_v9, -inf }
0x2c8a   :  { %v4050_v27 = vpop.f32.mrb[122].mxu1  ;;  %4056 = vmax.xlane.f32.xlu0 %v4055_v14 }
0x2c8b   :  { %v6030_v62 = vpop.f32.mrb[123].mxu1  ;;  %v4058_v6 = vsel %vm320_vm2, %v4054_v34, -inf }
0x2c8c   :  { %4059 = vmax.xlane.f32.xlu1 %v4058_v6 }
0x2c9d   :  { %4129 = vrot.lane.b32.xlu1 %v7879_v12, %s6785_s26 }
0x2ca0   :  { %4080 = vrot.lane.b32.xlu0 %v7877_v50, %s6785_s26 }
0x2d17   :  { %v4057_v7 = vpop.xlane.xlu0 %4056 }
0x2d18   :  { %v4061_v2 = vsub.f32 %v4053_v9, %v4057_v7 }
0x2d19   :  { %v4060_v53 = vpop.xlane.xlu1 %4059 }
0x2d1a   :  { %v4063_v47 = vmul.f32 1.442695, %v4061_v2  ;;  %v4062_v8 = vsub.f32 %v4054_v34, %v4060_v53 }
0x2d1b   :  { %v4081_v59 = vpop.permute.xlu0 %4080 }
0x2d1c   :  { %6391 = vpow2.f32 %v4063_v47  ;;  %v4065_v24 = vmul.f32 1.442695, %v4062_v8  ;;  %v4086_v3 = vsel %vm449_vm4, %v4081_v59, 0 }
0x2d1d   :  { %v4130_v4 = vpop.permute.xlu1 %4129  ;;  %6032 = vmatpush3.bf16.msra.mxu0 %v4086_v3 }
0x2d1e   :  { %6393 = vpow2.f32 %v4065_v24  ;;  %v4135_v37 = vsel %vm449_vm4, %v4130_v4, 0  ;;  %6043 = vmatprep.subr.bf16.mxu0 %v6783_v0 }
0x2d1f   :  { %6038 = vmatpush3.bf16.msra.mxu1 %v4135_v37 }
0x2d20   :  { %6049 = vmatprep.subr.bf16.mxu1 %v6783_v0 }
0x2d26   :  { %v6392_v39 = vpop.eup %6391 }
0x2d27   :  { %v4067_v40 = vsel %vm320_vm2, %v6392_v39, 0.0 }
0x2d28   :  { %v6394_v38 = vpop.eup %6393  ;;  %4068 = vadd.xlane.f32.xlu0 %v4067_v40 }
0x2d29   :  { %v4070_v41 = vsel %vm320_vm2, %v6394_v38, 0.0 }
0x2d2a   :  { %4071 = vadd.xlane.f32.xlu1 %v4070_v41 }
0x2d3b   :  { %4180 = vrot.lane.b32.xlu1 %v7877_v50, %s6788_s4 }
0x2d3e   :  { %4231 = vrot.lane.b32.xlu0 %v7879_v12, %s6788_s4 }
0x2d3f   :  { %4178 = vrot.lane.b32.xlu1 %v7887_v29, %s6788_s4 }
0x2d42   :  { %4229 = vrot.lane.b32.xlu0 %v7889_v31, %s6788_s4 }
0x2db5   :  { %v4069_v42 = vpop.xlane.xlu0 %4068 }
0x2db6   :  { %6395 = vrcp.f32 %v4069_v42 }
0x2db7   :  { %v4072_v43 = vpop.xlane.xlu1 %4071 }
0x2db8   :  { %6397 = vrcp.f32 %v4072_v43 }
0x2db9   :  { %v4232_v10 = vpop.permute.xlu0 %4231 }
0x2dba   :  { %v4237_v54 = vsel %vm320_vm2, %v4232_v10, 0 }
0x2dbb   :  { %v4181_v11 = vpop.permute.xlu1 %4180 }
0x2dbc   :  { %v4186_v17 = vsel %vm320_vm2, %v4181_v11, 0 }
0x2dbd   :  { %v4230_v56 = vpop.permute.xlu0 %4229 }
0x2dbf   :  { %v4179_v55 = vpop.permute.xlu1 %4178 }
0x2dc0   :  { %v6396_v18 = vpop.eup %6395 }
0x2dc1   :  { %v4075_v57 = vmul.f32 %v6396_v18, %v6392_v39 }
0x2dc2   :  { %v6398_v58 = vpop.eup %6397 }
0x2dc3   :  { %v4076_v5 = vmul.f32 %v6398_v58, %v6394_v38  ;;  %v4077_v63 = vpack.c.bf16 %v4075_v57, %v4075_v57 }
0x2dc5   :  { %6034 = vmatmul.mubr.msk.bf16.vlgmr.msra.gmra.mrb[120].mxu0 %vm320_vm2, %v4077_v63  ;;  %v4078_v52 = vpack.c.bf16 %v4076_v5, %v4076_v5 }
0x2dc6   :  { %6044 = vmatpush3.bf16.xpose.msra.mxu0 %v4186_v17  ;;  %6045 = vmatprep.mubr.msk.bf16.mxu0 %vm6784_vm0, %v6783_v0 }
0x2dc7   :  { %6040 = vmatmul.mubr.msk.bf16.vlgmr.msra.gmra.mrb[124].mxu1 %vm320_vm2, %v4078_v52  ;;  %6055 = vmatprep.subr.bf16.mxu0 %v6783_v0 }
0x2dc8   :  { %6050 = vmatpush3.bf16.xpose.msra.mxu1 %v4237_v54  ;;  %6051 = vmatprep.mubr.msk.bf16.mxu1 %vm6784_vm0, %v6783_v0 }
0x2dc9   :  { %6061 = vmatprep.subr.bf16.mxu1 %v6783_v0 }
0x2dcd   :  { %6046 = vmatmul.mubr.msk.bf16.vlgmr.msra.gmra.mrb[124].mxu0 %vm320_vm2, %v4179_v55 }
0x2dce   :  { %6057 = vmatprep.mubr.msk.bf16.mxu0 %vm6784_vm0, %v6783_v0 }
0x2dcf   :  { %6052 = vmatmul.mubr.msk.bf16.vlgmr.msra.gmra.mrb[128].mxu1 %vm320_vm2, %v4230_v56 }
0x2dd0   :  { %6063 = vmatprep.mubr.msk.bf16.mxu1 %vm6784_vm0, %v6783_v0 }
0x2e98   :  { %v7935_v61 = vpop.f32.mrb[120].mxu0 }
0x2e99   :  { %v6035_v1 = vpop.f32.mrb[121].mxu0 }
0x2e9a   :  { %v4125_v46 = vpop.f32.mrb[122].mxu0  ;;  %v7937_v16 = vpop.f32.mrb[124].mxu1 }
0x2e9b   :  { %v6036_v19 = vpop.f32.mrb[123].mxu0  ;;  %v6041_v20 = vpop.f32.mrb[125].mxu1 }
0x2e9c   :  { %v4174_v21 = vpop.f32.mrb[126].mxu1 }
0x2e9d   :  { %v6042_v22 = vpop.f32.mrb[127].mxu1 }
0x2ea0   :  { %v4222_v25 = vpop.f32.mrb[124].mxu0 }
0x2ea1   :  { %v4279_v26 = vmul.f32 0.35355338, %v4222_v25  ;;  %v6047_v28 = vpop.f32.mrb[125].mxu0 }
0x2ea2   :  { %v4225_v60 = vpop.f32.mrb[126].mxu0  ;;  %v4273_v30 = vpop.f32.mrb[128].mxu1 }
0x2ea3   :  { %v4280_v23 = vmul.f32 0.35355338, %v4273_v30  ;;  %v6048_v9 = vpop.f32.mrb[127].mxu0  ;;  %v6053_v15 = vpop.f32.mrb[129].mxu1  ;;  %v4281_v32 = vsel %vm320_vm2, %v4279_v26, -inf }
0x2ea4   :  { %v4276_v33 = vpop.f32.mrb[130].mxu1  ;;  %4282 = vmax.xlane.f32.xlu1 %v4281_v32 }
0x2ea5   :  { %v6054_v34 = vpop.f32.mrb[131].mxu1  ;;  %v4284_v35 = vsel %vm320_vm2, %v4280_v23, -inf }
0x2ea6   :  { %4285 = vmax.xlane.f32.xlu0 %v4284_v35 }
0x2eb5   :  { %4353 = vrot.lane.b32.xlu1 %v7879_v12, %s6787_s20 }
0x2ebc   :  { %4305 = vrot.lane.b32.xlu0 %v7877_v50, %s6787_s20 }
0x2f31   :  { %v4283_v36 = vpop.xlane.xlu1 %4282 }
0x2f32   :  { %v4287_v14 = vsub.f32 %v4279_v26, %v4283_v36 }
0x2f33   :  { %v4286_v27 = vpop.xlane.xlu0 %4285 }
0x2f34   :  { %v4289_v62 = vmul.f32 1.442695, %v4287_v14  ;;  %v4288_v6 = vsub.f32 %v4280_v23, %v4286_v27 }
0x2f35   :  { %v4354_v7 = vpop.permute.xlu1 %4353 }
0x2f36   :  { %6399 = vpow2.f32 %v4289_v62  ;;  %v4291_v2 = vmul.f32 1.442695, %v4288_v6  ;;  %v4359_v53 = vsel %vm449_vm4, %v4354_v7, 0 }
0x2f37   :  { %v4306_v47 = vpop.permute.xlu0 %4305  ;;  %6062 = vmatpush3.bf16.msra.mxu1 %v4359_v53 }
0x2f38   :  { %6401 = vpow2.f32 %v4291_v2  ;;  %v4311_v8 = vsel %vm449_vm4, %v4306_v47, 0  ;;  %6073 = vmatprep.subr.bf16.mxu1 %v6783_v0 }
0x2f39   :  { %6056 = vmatpush3.bf16.msra.mxu0 %v4311_v8 }
0x2f3a   :  { %6067 = vmatprep.subr.bf16.mxu0 %v6783_v0 }
0x2f40   :  { %v6400_v59 = vpop.eup %6399 }
0x2f41   :  { %v4293_v24 = vsel %vm320_vm2, %v6400_v59, 0.0 }
0x2f42   :  { %v6402_v3 = vpop.eup %6401  ;;  %4294 = vadd.xlane.f32.xlu0 %v4293_v24 }
0x2f43   :  { %v4296_v4 = vsel %vm320_vm2, %v6402_v3, 0.0 }
0x2f44   :  { %4297 = vadd.xlane.f32.xlu1 %v4296_v4 }
0x2f55   :  { %4403 = vrot.lane.b32.xlu1 %v7877_v50, %s6791_s1 }
0x2f58   :  { %4453 = vrot.lane.b32.xlu0 %v7879_v12, %s6791_s1 }
0x2f59   :  { %4401 = vrot.lane.b32.xlu1 %v7887_v29, %s6791_s1 }
0x2f5c   :  { %4451 = vrot.lane.b32.xlu0 %v7889_v31, %s6791_s1 }
0x2fcf   :  { %v4295_v37 = vpop.xlane.xlu0 %4294 }
0x2fd0   :  { %6403 = vrcp.f32 %v4295_v37 }
0x2fd1   :  { %v4298_v39 = vpop.xlane.xlu1 %4297 }
0x2fd2   :  { %6405 = vrcp.f32 %v4298_v39 }
0x2fd3   :  { %v4454_v57 = vpop.permute.xlu0 %4453 }
0x2fd4   :  { %v4459_v5 = vsel %vm320_vm2, %v4454_v57, 0 }
0x2fd5   :  { %v4404_v42 = vpop.permute.xlu1 %4403 }
0x2fd6   :  { %v4409_v58 = vsel %vm320_vm2, %v4404_v42, 0 }
0x2fd7   :  { %v4452_v10 = vpop.permute.xlu0 %4451 }
0x2fd9   :  { %v4402_v63 = vpop.permute.xlu1 %4401 }
0x2fda   :  { %v6404_v40 = vpop.eup %6403 }
0x2fdb   :  { %v4301_v38 = vmul.f32 %v6404_v40, %v6400_v59 }
0x2fdc   :  { %v6406_v41 = vpop.eup %6405 }
0x2fdd   :  { %v4302_v43 = vmul.f32 %v6406_v41, %v6402_v3  ;;  %v4303_v18 = vpack.c.bf16 %v4301_v38, %v4301_v38 }
0x2fdf   :  { %6058 = vmatmul.mubr.msk.bf16.vlgmr.msra.gmra.mrb[128].mxu0 %vm320_vm2, %v4303_v18  ;;  %v4304_v11 = vpack.c.bf16 %v4302_v43, %v4302_v43 }
0x2fe0   :  { %6068 = vmatpush3.bf16.xpose.msra.mxu0 %v4409_v58  ;;  %6069 = vmatprep.mubr.msk.bf16.mxu0 %vm6784_vm0, %v6783_v0 }
0x2fe1   :  { %6064 = vmatmul.mubr.msk.bf16.vlgmr.msra.gmra.mrb[132].mxu1 %vm320_vm2, %v4304_v11  ;;  %6079 = vmatprep.subr.bf16.mxu0 %v6783_v0 }
0x2fe2   :  { %6074 = vmatpush3.bf16.xpose.msra.mxu1 %v4459_v5  ;;  %6075 = vmatprep.mubr.msk.bf16.mxu1 %vm6784_vm0, %v6783_v0 }
0x2fe3   :  { %6085 = vmatprep.subr.bf16.mxu1 %v6783_v0 }
0x2fe7   :  { %6070 = vmatmul.mubr.msk.bf16.vlgmr.msra.gmra.mrb[132].mxu0 %vm320_vm2, %v4402_v63 }
0x2fe8   :  { %6081 = vmatprep.mubr.msk.bf16.mxu0 %vm6784_vm0, %v6783_v0 }
0x2fe9   :  { %6076 = vmatmul.mubr.msk.bf16.vlgmr.msra.gmra.mrb[136].mxu1 %vm320_vm2, %v4452_v10 }
0x2fea   :  { %6087 = vmatprep.mubr.msk.bf16.mxu1 %vm6784_vm0, %v6783_v0 }
0x30b2   :  { %v7975_v17 = vpop.f32.mrb[128].mxu0 }
0x30b3   :  { %v6059_v52 = vpop.f32.mrb[129].mxu0 }
0x30b4   :  { %v4350_v54 = vpop.f32.mrb[130].mxu0  ;;  %v7977_v55 = vpop.f32.mrb[132].mxu1 }
0x30b5   :  { %v6230_v56 = vpack.i.bf16 %v7977_v55, %v7975_v17  ;;  %v6060_v1 = vpop.f32.mrb[131].mxu0  ;;  %v6065_v46 = vpop.f32.mrb[133].mxu1 }
0x30b6   :  { %v4398_v19 = vpop.f32.mrb[134].mxu1 }
0x30b7   :  { %v6066_v20 = vpop.f32.mrb[135].mxu1 }
0x30ba   :  { %v4445_v21 = vpop.f32.mrb[132].mxu0 }
0x30bb   :  { %v4501_v22 = vmul.f32 0.35355338, %v4445_v21  ;;  %v6071_v25 = vpop.f32.mrb[133].mxu0 }
0x30bc   :  { %v4448_v26 = vpop.f32.mrb[134].mxu0  ;;  %v4495_v28 = vpop.f32.mrb[136].mxu1 }
0x30bd   :  { %v4502_v60 = vmul.f32 0.35355338, %v4495_v28  ;;  %v6072_v30 = vpop.f32.mrb[135].mxu0  ;;  %v6077_v23 = vpop.f32.mrb[137].mxu1  ;;  %v4503_v9 = vsel %vm320_vm2, %v4501_v22, -inf }
0x30be   :  { %v4498_v15 = vpop.f32.mrb[138].mxu1  ;;  %4504 = vmax.xlane.f32.xlu1 %v4503_v9 }
0x30bf   :  { %v6078_v32 = vpop.f32.mrb[139].mxu1  ;;  %v4506_v33 = vsel %vm320_vm2, %v4502_v60, -inf }
0x30c0   :  { %4507 = vmax.xlane.f32.xlu0 %v4506_v33 }
0x30cf   :  { %4575 = vrot.lane.b32.xlu1 %v7879_v12, %s6790_s23 }
0x30d6   :  { %4527 = vrot.lane.b32.xlu0 %v7877_v50, %s6790_s23 }
0x314b   :  { %v4505_v34 = vpop.xlane.xlu1 %4504 }
0x314c   :  { %v4509_v35 = vsub.f32 %v4501_v22, %v4505_v34 }
0x314d   :  { %v4508_v36 = vpop.xlane.xlu0 %4507 }
0x314e   :  { %v4511_v14 = vmul.f32 1.442695, %v4509_v35  ;;  %v4510_v27 = vsub.f32 %v4502_v60, %v4508_v36 }
0x314f   :  { %v4576_v62 = vpop.permute.xlu1 %4575 }
0x3150   :  { %6407 = vpow2.f32 %v4511_v14  ;;  %v4513_v6 = vmul.f32 1.442695, %v4510_v27  ;;  %v4581_v7 = vsel %vm449_vm4, %v4576_v62, 0 }
0x3151   :  { %v4528_v2 = vpop.permute.xlu0 %4527  ;;  %6086 = vmatpush3.bf16.msra.mxu1 %v4581_v7 }
0x3152   :  { %6409 = vpow2.f32 %v4513_v6  ;;  %v4533_v53 = vsel %vm449_vm4, %v4528_v2, 0  ;;  %6097 = vmatprep.subr.bf16.mxu1 %v6783_v0 }
0x3153   :  { %6080 = vmatpush3.bf16.msra.mxu0 %v4533_v53 }
0x3154   :  { %6091 = vmatprep.subr.bf16.mxu0 %v6783_v0 }
0x315a   :  { %v6408_v47 = vpop.eup %6407 }
0x315b   :  { %v4515_v8 = vsel %vm320_vm2, %v6408_v47, 0.0 }
0x315c   :  { %v6410_v59 = vpop.eup %6409  ;;  %4516 = vadd.xlane.f32.xlu0 %v4515_v8 }
0x315d   :  { %v4518_v24 = vsel %vm320_vm2, %v6410_v59, 0.0 }
0x315e   :  { %4519 = vadd.xlane.f32.xlu1 %v4518_v24 }
0x316f   :  { %4625 = vrot.lane.b32.xlu1 %v7877_v50, %s6794_s11 }
0x3172   :  { %4675 = vrot.lane.b32.xlu0 %v7879_v12, %s6794_s11 }
0x3173   :  { %4623 = vrot.lane.b32.xlu1 %v7887_v29, %s6794_s11 }
0x3176   :  { %4673 = vrot.lane.b32.xlu0 %v7889_v31, %s6794_s11 }
0x31e9   :  { %v4517_v3 = vpop.xlane.xlu0 %4516 }
0x31ea   :  { %6411 = vrcp.f32 %v4517_v3 }
0x31eb   :  { %v4520_v4 = vpop.xlane.xlu1 %4519 }
0x31ec   :  { %6413 = vrcp.f32 %v4520_v4 }
0x31ed   :  { %v4676_v43 = vpop.permute.xlu0 %4675 }
0x31ee   :  { %v4681_v29 = vsel %vm320_vm2, %v4676_v43, 0 }
0x31ef   :  { %v4626_v38 = vpop.permute.xlu1 %4625 }
0x31f0   :  { %v4631_v18 = vsel %vm320_vm2, %v4626_v38, 0 }
0x31f1   :  { %v4674_v58 = vpop.permute.xlu0 %4673 }
0x31f3   :  { %v4624_v31 = vpop.permute.xlu1 %4623 }
0x31f4   :  { %v6412_v37 = vpop.eup %6411 }
0x31f5   :  { %v4523_v39 = vmul.f32 %v6412_v37, %v6408_v47  ;;  %v6269_v37 = vld [vmem:[#allocation14 + $0x10] sm:$0xff]  }
0x31f6   :  { %v6414_v40 = vpop.eup %6413 }
0x31f7   :  { %v4524_v41 = vmul.f32 %v6414_v40, %v6410_v59  ;;  %v4525_v42 = vpack.c.bf16 %v4523_v39, %v4523_v39  ;;  %v6270_v39 = vld [vmem:[#allocation14 + $0x18] sm:$0xff]  }
0x31f9   :  { %6082 = vmatmul.mubr.msk.bf16.vlgmr.msra.gmra.mrb[136].mxu0 %vm320_vm2, %v4525_v42  ;;  %v4526_v57 = vpack.c.bf16 %v4524_v41, %v4524_v41 }
0x31fa   :  { %6092 = vmatpush3.bf16.xpose.msra.mxu0 %v4631_v18  ;;  %6093 = vmatprep.mubr.msk.bf16.mxu0 %vm6784_vm0, %v6783_v0 }
0x31fb   :  { %6088 = vmatmul.mubr.msk.bf16.vlgmr.msra.gmra.mrb[140].mxu1 %vm320_vm2, %v4526_v57  ;;  %6103 = vmatprep.subr.bf16.mxu0 %v6783_v0 }
0x31fc   :  { %6098 = vmatpush3.bf16.xpose.msra.mxu1 %v4681_v29  ;;  %6099 = vmatprep.mubr.msk.bf16.mxu1 %vm6784_vm0, %v6783_v0 }
0x31fd   :  { %6109 = vmatprep.subr.bf16.mxu1 %v6783_v0 }
0x3201   :  { %6094 = vmatmul.mubr.msk.bf16.vlgmr.msra.gmra.mrb[140].mxu0 %vm320_vm2, %v4624_v31 }
0x3202   :  { %6105 = vmatprep.mubr.msk.bf16.mxu0 %vm6784_vm0, %v6783_v0 }
0x3203   :  { %6100 = vmatmul.mubr.msk.bf16.vlgmr.msra.gmra.mrb[144].mxu1 %vm320_vm2, %v4674_v58 }
0x3204   :  { %6111 = vmatprep.mubr.msk.bf16.mxu1 %vm6784_vm0, %v6783_v0 }
0x32cc   :  { %v4569_v11 = vpop.f32.mrb[136].mxu0 }
0x32cd   :  { %v6083_v5 = vpop.f32.mrb[137].mxu0 }
0x32ce   :  { %v4572_v63 = vpop.f32.mrb[138].mxu0  ;;  %v4617_v10 = vpop.f32.mrb[140].mxu1 }
0x32cf   :  { %v6235_v52 = vpack.i.bf16 %v4617_v10, %v4569_v11  ;;  %v6084_v54 = vpop.f32.mrb[139].mxu0  ;;  %v6089_v1 = vpop.f32.mrb[141].mxu1 }
0x32d0   :  { %v4620_v46 = vpop.f32.mrb[142].mxu1 }
0x32d1   :  { %v6090_v19 = vpop.f32.mrb[143].mxu1 }
0x32d4   :  { %v4667_v20 = vpop.f32.mrb[140].mxu0 }
0x32d5   :  { %v4723_v21 = vmul.f32 0.35355338, %v4667_v20  ;;  %v6095_v22 = vpop.f32.mrb[141].mxu0 }
0x32d6   :  { %v4670_v25 = vpop.f32.mrb[142].mxu0  ;;  %v4717_v26 = vpop.f32.mrb[144].mxu1 }
0x32d7   :  { %v4724_v28 = vmul.f32 0.35355338, %v4717_v26  ;;  %v6096_v60 = vpop.f32.mrb[143].mxu0  ;;  %v6101_v30 = vpop.f32.mrb[145].mxu1  ;;  %v4725_v23 = vsel %vm320_vm2, %v4723_v21, -inf }
0x32d8   :  { %v4720_v9 = vpop.f32.mrb[146].mxu1  ;;  %4726 = vmax.xlane.f32.xlu1 %v4725_v23 }
0x32d9   :  { %v6102_v15 = vpop.f32.mrb[147].mxu1  ;;  %v4728_v32 = vsel %vm320_vm2, %v4724_v28, -inf }
0x32da   :  { %4729 = vmax.xlane.f32.xlu0 %v4728_v32 }
0x3365   :  { %v4727_v33 = vpop.xlane.xlu1 %4726 }
0x3366   :  { %v4731_v34 = vsub.f32 %v4723_v21, %v4727_v33 }
0x3367   :  { %v4730_v35 = vpop.xlane.xlu0 %4729 }
0x3368   :  { %v4733_v36 = vmul.f32 1.442695, %v4731_v34  ;;  %v4732_v14 = vsub.f32 %v4724_v28, %v4730_v35 }
0x336a   :  { %6415 = vpow2.f32 %v4733_v36  ;;  %v4735_v27 = vmul.f32 1.442695, %v4732_v14 }
0x336c   :  { %6417 = vpow2.f32 %v4735_v27 }
0x3374   :  { %v6416_v62 = vpop.eup %6415 }
0x3375   :  { %v4737_v6 = vsel %vm320_vm2, %v6416_v62, 0.0 }
0x3376   :  { %v6418_v7 = vpop.eup %6417  ;;  %4738 = vadd.xlane.f32.xlu0 %v4737_v6 }
0x3377   :  { %v4740_v2 = vsel %vm320_vm2, %v6418_v7, 0.0 }
0x3378   :  { %4741 = vadd.xlane.f32.xlu1 %v4740_v2 }
0x3389   :  { %4797 = vrot.lane.b32.xlu1 %v7879_v12, %s6793_s0 }
0x338c   :  { %4749 = vrot.lane.b32.xlu0 %v7877_v50, %s6793_s0 }
0x338d   :  { %6231 = vrot.lane.b32.xlu1 %v6230_v56, %s6776_s2 }
0x3390   :  { %6236 = vrot.lane.b32.xlu0 %v6235_v52, %s6767_s25 }
0x3403   :  { %v4739_v53 = vpop.xlane.xlu0 %4738 }
0x3404   :  { %6419 = vrcp.f32 %v4739_v53 }
0x3405   :  { %v4742_v47 = vpop.xlane.xlu1 %4741 }
0x3406   :  { %6421 = vrcp.f32 %v4742_v47 }
0x3407   :  { %v4750_v8 = vpop.permute.xlu0 %4749 }
0x3408   :  { %v4755_v59 = vsel %vm449_vm4, %v4750_v8, 0  ;;  %v6272_v8 = vld [vmem:[#allocation17 + $0x18] sm:$0xff]  }
0x3409   :  { %6104 = vmatpush3.bf16.msra.mxu0 %v4755_v59  ;;  %v4798_v24 = vpop.permute.xlu1 %4797  ;;  %v6273_v59 = vld [vmem:[%s8152_s15 + $0x20] sm:$0xff]  }
0x340a   :  { %v4803_v12 = vsel %vm449_vm4, %v4798_v24, 0  ;;  %6115 = vmatprep.subr.bf16.mxu0 %v6783_v0  ;;  %v6274_v24 = vld [vmem:[%s8152_s15 + $0x28] sm:$0xff]  }
0x340b   :  { %6110 = vmatpush3.bf16.msra.mxu1 %v4803_v12  ;;  %v6237_v63 = vpop.permute.xlu0 %6236 }
0x340c   :  { %6123 = vmatprep.subr.bf16.mxu1 %v6783_v0  ;;  %v6239_v54 = vunpack.i.h.bf16 %v6237_v63  ;;  %v6238_v1 = vunpack.i.l.bf16 %v6237_v63 }
0x340d   :  { %v6232_v58 = vpop.permute.xlu1 %6231 }
0x340e   :  { %v6420_v50 = vpop.eup %6419  ;;  %v6234_v11 = vunpack.i.h.bf16 %v6232_v58  ;;  %v6233_v5 = vunpack.i.l.bf16 %v6232_v58  ;;  %v5441_v58 = vld [vmem:[#allocation19 + $0x1] ss:$0 sm:$0xff] }
0x340f   :  { %v4745_v17 = vmul.f32 %v6420_v50, %v6416_v62 }
0x3410   :  { %v6422_v55 = vpop.eup %6421  ;;  %v4870_v10 = vsel %vm320_vm2, %v7937_v16, %v6234_v11  ;;  %v4869_v52 = vsel %vm320_vm2, %v7935_v61, %v6233_v5  ;;  %v5437_v61 = vld [vmem:[#allocation16 + $0x1] ss:$0 sm:$0xff] }
0x3411   :  { %v4746_v56 = vmul.f32 %v6422_v55, %v6418_v7  ;;  %v4747_v3 = vpack.c.bf16 %v4745_v17, %v4745_v17  ;;  %v4871_v21 = vsel %vm1239_vm5, %v4869_v52, %v6238_v1  ;;  %v4872_v22 = vsel %vm1239_vm5, %v4870_v10, %v6239_v54 }
0x3413   :  { %6106 = vmatmul.mubr.msk.bf16.vlgmr.msra.gmra.mrb[144].mxu0 %vm320_vm2, %v4747_v3  ;;  %v4748_v4 = vpack.c.bf16 %v4746_v56, %v4746_v56 }
0x3414   :  { %6119 = vmatprep.mubr.msk.bf16.mxu0 %vm6784_vm0, %v6783_v0  ;;  %6116 = vmatpush3.bf16.msra.mxu0 %v6269_v37  ;;  %v4976_v37 = vrot.slane %v7857_v44, %v7591_v51 }
0x3415   :  { %6112 = vmatmul.mubr.msk.bf16.vlgmr.msra.gmra.mrb[148].mxu1 %vm320_vm2, %v4748_v4  ;;  %6117 = vmatprep.subr.bf16.mxu0 %v6783_v0 }
0x3416   :  { %6127 = vmatprep.mubr.msk.bf16.mxu1 %vm6784_vm0, %v6783_v0 }
0x3418   :  { %6118 = vmatpush3.bf16.msra.mxu0 %v6270_v39 }
0x3419   :  { %6131 = vmatprep.subr.bf16.mxu0 %v6783_v0 }
0x34e6   :  { %v4791_v40 = vpop.f32.mrb[144].mxu0 }
0x34e7   :  { %v6107_v38 = vpop.f32.mrb[145].mxu0 }
0x34e8   :  { %v4794_v41 = vpop.f32.mrb[146].mxu0  ;;  %v4839_v42 = vpop.f32.mrb[148].mxu1 }
0x34e9   :  { %v6240_v43 = vpack.i.bf16 %v4839_v42, %v4791_v40  ;;  %v6108_v18 = vpop.f32.mrb[147].mxu0  ;;  %v6113_v57 = vpop.f32.mrb[149].mxu1  ;;  %v4982_v42 = vrot.slane %v7864_v45, %v7591_v51  ;;  %v6276_v51 = vld [vmem:[%s8152_s15 + $0x38] sm:$0xff]  }
0x34ea   :  { %v4842_v29 = vpop.f32.mrb[150].mxu1 }
0x34eb   :  { %v6114_v31 = vpop.f32.mrb[151].mxu1  ;;  %6241 = vrot.lane.b32.xlu1 %v6240_v43, %s6796_s5 }
0x34ec   :  { %v6275_v31 = vld [vmem:[%s8152_s15 + $0x30] sm:$0xff]  }
0x355d   :  { %v6242_v46 = vpop.permute.xlu1 %6241 }
0x355e   :  { %v6244_v19 = vunpack.i.h.bf16 %v6242_v46  ;;  %v6243_v20 = vunpack.i.l.bf16 %v6242_v46 }
0x3560   :  { %v4874_v25 = vsel %vm1242_vm6, %v4872_v22, %v6244_v19  ;;  %v4873_v26 = vsel %vm1242_vm6, %v4871_v21, %v6243_v20  ;;  %v5453_v20 = vld [vmem:[#allocation20 + $0x1] ss:$0 sm:$0xff] }
0x3561   :  { %v4875_v28 = vpack.c.bf16 %v4874_v25, %v4873_v26 }
0x3563   :  { %6120 = vmatmul.mubr.msk.bf16.vlgmr.msra.gmra.mrb[148].mxu0 %vm270_vm1, %v4875_v28 }
0x3564   :  { %6139 = vmatprep.mubr.msk.bf16.mxu0 %vm6784_vm0, %v6783_v0  ;;  %6132 = vmatpush3.bf16.msra.mxu0 %v6273_v59  ;;  %v5174_v59 = vrot.slane %v7857_v44, %v7624_v13 }
0x3565   :  { %6133 = vmatprep.subr.bf16.mxu0 %v6783_v0 }
0x3568   :  { %6134 = vmatpush3.bf16.msra.mxu0 %v6274_v24 }
0x3569   :  { %6135 = vmatprep.subr.bf16.mxu0 %v6783_v0 }
0x356c   :  { %6136 = vmatpush3.bf16.msra.mxu0 %v6275_v31 }
0x356d   :  { %6137 = vmatprep.subr.bf16.mxu0 %v6783_v0 }
0x3570   :  { %6138 = vmatpush3.bf16.msra.mxu0 %v6276_v51 }
0x3636   :  { %v4938_v16 = vpop.f32.mrb[148].mxu0 }
0x3637   :  { %v4939_v60 = vadd.f32 %v5437_v61, %v4938_v16  ;;  %v6121_v30 = vpop.f32.mrb[149].mxu0 }
0x3638   :  { %v4941_v23 = vpop.f32.mrb[150].mxu0 }
0x3639   :  { %v4945_v9 = vadd.f32 %v4939_v60, %v7868_v48  ;;  %v4942_v15 = vadd.f32 %v5437_v61, %v4941_v23  ;;  %v6122_v32 = vpop.f32.mrb[151].mxu0 }
0x363b   :  { %v4946_v33 = vadd.f32 %v4942_v15, %v7870_v49  ;;  %v4947_v34 = vsel %vm270_vm1, %v4945_v9, 0.0  ;;  %v6271_v49 = vld [vmem:[#allocation17 + $0x10] sm:$0xff]  }
0x363c   :  { %4948 = vadd.xlane.f32.xlu0 %v4947_v34  ;;  %6124 = vmatpush3.bf16.msra.mxu1 %v6271_v49 }
0x363d   :  { %v4950_v35 = vsel %vm270_vm1, %v4946_v33, 0.0  ;;  %6125 = vmatprep.subr.bf16.mxu1 %v6783_v0 }
0x363e   :  { %4951 = vadd.xlane.f32.xlu1 %v4950_v35 }
0x3640   :  { %6126 = vmatpush3.bf16.msra.mxu1 %v6272_v8 }
0x3641   :  { %6143 = vmatprep.subr.bf16.mxu1 %v6783_v0 }
0x36c9   :  { %v4949_v36 = vpop.xlane.xlu0 %4948 }
0x36ca   :  { %v4953_v14 = vmul.f32 0.03125, %v4949_v36 }
0x36cb   :  { %v4952_v27 = vpop.xlane.xlu1 %4951 }
0x36cc   :  { %v4955_v62 = vsub.f32 %v4945_v9, %v4953_v14  ;;  %v4954_v6 = vmul.f32 0.03125, %v4952_v27 }
0x36ce   :  { %v4956_v7 = vsub.f32 %v4946_v33, %v4954_v6  ;;  %v4957_v2 = vmul.f32 %v4955_v62, %v4955_v62  ;;  %v6277_v6 = vld [vmem:[%s8156_s19] sm:$0xff]  }
0x36d0   :  { %v4959_v53 = vsel %vm270_vm1, %v4957_v2, 0.0  ;;  %v4958_v48 = vmul.f32 %v4956_v7, %v4956_v7 }
0x36d1   :  { %4960 = vadd.xlane.f32.xlu0 %v4959_v53 }
0x36d2   :  { %v4962_v47 = vsel %vm270_vm1, %v4958_v48, 0.0 }
0x36d5   :  { %4963 = vadd.xlane.f32.xlu0 %v4962_v47 }
0x375e   :  { %v4961_v12 = vpop.xlane.xlu0 %4960 }
0x375f   :  { %v4965_v50 = vmul.f32 0.03125, %v4961_v12 }
0x3761   :  { %v4967_v17 = vadd.f32 1e-05, %v4965_v50  ;;  %v5180_v50 = vrot.slane %v7864_v45, %v7624_v13 }
0x3762   :  { %v4964_v55 = vpop.xlane.xlu0 %4963 }
0x3763   :  { %6423 = vrsqrt.f32 %v4967_v17  ;;  %v4966_v56 = vmul.f32 0.03125, %v4964_v55 }
0x3765   :  { %v4968_v3 = vadd.f32 1e-05, %v4966_v56 }
0x3767   :  { %6425 = vrsqrt.f32 %v4968_v3 }
0x376d   :  { %v6424_v4 = vpop.eup %6423 }
0x376e   :  { %v4971_v39 = vmul.f32 %v6424_v4, %v4955_v62 }
0x3770   :  { %v4977_v38 = vmul.f32 %v4976_v37, %v4971_v39 }
0x3771   :  { %v6426_v40 = vpop.eup %6425 }
0x3772   :  { %v4972_v41 = vmul.f32 %v6426_v40, %v4956_v7  ;;  %v4983_v18 = vadd.f32 %v4982_v42, %v4977_v38  ;;  %v6278_v7 = vld [vmem:[%s8156_s19 + $0x8] sm:$0xff]   ;;  %s6797_s19 = smov [#allocation22]  }
0x3773   :  { %s5275_s24 = sshll.u32 %s6797_s19, 4  ;;  %s5276_s24 = int_to_ptr.vmem [resolvable:$true] %s5275_s24 }
0x3774   :  { %v4978_v43 = vmul.f32 %v4976_v37, %v4972_v41  ;;  %s6703_s28 = scalar_lea.vmem %s5276_s24, 256  ;;  %p6708_p13 = scmp.lt.s32.totalorder %s5276_s24, %s5276_s24 }
0x3775   :  { %p6704_p12 = scmp.ne.s32.totalorder %s5276_s24, %s6703_s28  ;;  %p6709_p0 = scmp.lt.s32.totalorder %s6703_s28, %s6703_s28 }
0x3776   :  { %v4984_v57 = vadd.f32 %v4982_v42, %v4978_v43 }
0x3777   :  { %p6710_p1 = por %p6709_p0, %p6708_p13 }
0x3778   :  { %v4985_v29 = vpack.c.bf16 %v4984_v57, %v4983_v18 }
0x3779   :  { %p6711_p2 = pnand %p6710_p1, %p6704_p12 }
0x377a   :  { %6128 = vmatmul.mubr.msk.bf16.vlgmr.msra.gmra.mrb[152].mxu1 %vm270_vm1, %v4985_v29 }
0x377b   :  { %6147 = vmatprep.mubr.msk.bf16.mxu1 %vm6784_vm0, %v6783_v0  ;;  %6144 = vmatpush3.bf16.msra.mxu1 %v6277_v6 }
0x377c   :  { %6145 = vmatprep.subr.bf16.mxu1 %v6783_v0 }
0x377f   :  { %6146 = vmatpush3.bf16.msra.mxu1 %v6278_v7 }
0x384d   :  { %v5048_v11 = vpop.f32.mrb[152].mxu1 }
0x384e   :  { %v5049_v5 = vadd.f32 %v5441_v58, %v5048_v11  ;;  %v6129_v63 = vpop.f32.mrb[153].mxu1 }
0x384f   :  { %v5051_v10 = vpop.f32.mrb[154].mxu1 }
0x3850   :  { %v5052_v52 = vadd.f32 %v5441_v58, %v5051_v10  ;;  %v6130_v54 = vpop.f32.mrb[155].mxu1  ;;  %v5055_v1 = vmax.f32 %v5049_v5, 0.0 }
0x3852   :  { %v5056_v46 = vmax.f32 %v5052_v52, 0.0 }
0x3854   :  { %v5057_v19 = vpack.c.bf16 %v5056_v46, %v5055_v1 }
0x3856   :  { %6140 = vmatmul.mubr.msk.bf16.vlgmr.msra.gmra.mrb[152].mxu0 %vm2626_vm7, %v5057_v19 }
0x3929   :  { %v5136_v21 = vpop.f32.mrb[152].mxu0 }
0x392a   :  { %v5137_v22 = vadd.f32 %v5453_v20, %v5136_v21  ;;  %v6141_v25 = vpop.f32.mrb[153].mxu0 }
0x392b   :  { %v5139_v26 = vpop.f32.mrb[154].mxu0 }
0x392c   :  { %v5143_v28 = vadd.f32 %v5137_v22, %v4983_v18  ;;  %v5140_v61 = vadd.f32 %v5453_v20, %v5139_v26  ;;  %v6142_v16 = vpop.f32.mrb[155].mxu0 }
0x392e   :  { %v5144_v60 = vadd.f32 %v5140_v61, %v4984_v57  ;;  %v5145_v30 = vsel %vm270_vm1, %v5143_v28, 0.0 }
0x392f   :  { %5146 = vadd.xlane.f32.xlu1 %v5145_v30 }
0x3930   :  { %v5148_v23 = vsel %vm270_vm1, %v5144_v60, 0.0 }
0x3931   :  { %5149 = vadd.xlane.f32.xlu0 %v5148_v23 }
0x39bc   :  { %v5147_v9 = vpop.xlane.xlu1 %5146 }
0x39bd   :  { %v5151_v15 = vmul.f32 0.03125, %v5147_v9 }
0x39be   :  { %v5150_v32 = vpop.xlane.xlu0 %5149 }
0x39bf   :  { %v5153_v33 = vsub.f32 %v5143_v28, %v5151_v15  ;;  %v5152_v34 = vmul.f32 0.03125, %v5150_v32 }
0x39c1   :  { %v5154_v35 = vsub.f32 %v5144_v60, %v5152_v34  ;;  %v5155_v36 = vmul.f32 %v5153_v33, %v5153_v33 }
0x39c3   :  { %v5157_v14 = vsel %vm270_vm1, %v5155_v36, 0.0  ;;  %v5156_v27 = vmul.f32 %v5154_v35, %v5154_v35 }
0x39c4   :  { %5158 = vadd.xlane.f32.xlu1 %v5157_v14 }
0x39c5   :  { %v5160_v62 = vsel %vm270_vm1, %v5156_v27, 0.0 }
0x39c6   :  { %5161 = vadd.xlane.f32.xlu0 %v5160_v62 }
0x3a51   :  { %v5159_v2 = vpop.xlane.xlu1 %5158 }
0x3a52   :  { %v5163_v53 = vmul.f32 0.03125, %v5159_v2 }
0x3a53   :  { %v5162_v48 = vpop.xlane.xlu0 %5161 }
0x3a54   :  { %v5165_v47 = vadd.f32 1e-05, %v5163_v53  ;;  %v5164_v49 = vmul.f32 0.03125, %v5162_v48 }
0x3a56   :  { %6427 = vrsqrt.f32 %v5165_v47  ;;  %v5166_v8 = vadd.f32 1e-05, %v5164_v49 }
0x3a58   :  { %6429 = vrsqrt.f32 %v5166_v8 }
0x3a60   :  { %v6428_v24 = vpop.eup %6427 }
0x3a61   :  { %v5169_v12 = vmul.f32 %v6428_v24, %v5153_v33 }
0x3a62   :  { %v6430_v17 = vpop.eup %6429 }
0x3a63   :  { %v5175_v55 = vmul.f32 %v5174_v59, %v5169_v12  ;;  %v5170_v0 = vmul.f32 %v6430_v17, %v5154_v35 }
0x3a65   :  { %v5181_v56 = vadd.f32 %v5180_v50, %v5175_v55  ;;  %v5176_v3 = vmul.f32 %v5174_v59, %v5170_v0 }
0x3a67   :  { %v5246_v4 = vsel %vm270_vm1, %v5181_v56, -inf  ;;  %v5182_v37 = vadd.f32 %v5180_v50, %v5176_v3 }
0x3a68   :  { %5247 = vmax.xlane.f32.xlu1 %v5246_v4 }
0x3a69   :  { %v5249_v39 = vsel %vm270_vm1, %v5182_v37, -inf  ;;  %v5183_v40 = vpack.c.bf16 %v5182_v37, %v5181_v56 }
0x3a6a   :  { %5250 = vmax.xlane.f32.xlu0 %v5249_v39 }
0x3a6b   :  { %6148 = vmatmul.mubr.msk.bf16.vlgmr.msra.gmra.mrb[156].mxu1 %vm270_vm1, %v5183_v40 }
0x3af5   :  { %v5248_v44 = vpop.xlane.xlu1 %5247 }
0x3af6   :  { %v5252_v38 = vsub.f32 %v5181_v56, %v5248_v44 }
0x3af7   :  { %v5251_v41 = vpop.xlane.xlu0 %5250 }
0x3af8   :  { %v5254_v42 = vmul.f32 1.442695, %v5252_v38  ;;  %v5253_v13 = vsub.f32 %v5182_v37, %v5251_v41 }
0x3afa   :  { %6431 = vpow2.f32 %v5254_v42  ;;  %v5256_v45 = vmul.f32 1.442695, %v5253_v13 }
0x3afc   :  { %6433 = vpow2.f32 %v5256_v45 }
0x3b04   :  { %v6432_v43 = vpop.eup %6431 }
0x3b05   :  { %v5258_v18 = vsel %vm270_vm1, %v6432_v43, 0.0 }
0x3b06   :  { %v6434_v57 = vpop.eup %6433  ;;  %5259 = vadd.xlane.f32.xlu1 %v5258_v18 }
0x3b07   :  { %v5261_v29 = vsel %vm270_vm1, %v6434_v57, 0.0 }
0x3b08   :  { %5262 = vadd.xlane.f32.xlu0 %v5261_v29 }
0x3b3e   :  { %v5237_v31 = vpop.f32.mrb[156].mxu1 }
0x3b3f   :  { %5244 = vst [vmem:[#allocation22] sm:$0xff] %v5237_v31  ;;  %v6149_v51 = vpop.f32.mrb[157].mxu1 }
0x3b40   :  { %v5240_v58 = vpop.f32.mrb[158].mxu1 }
0x3b41   :  { %5245 = vst [vmem:[#allocation22 + $0x8] sm:$0xff] %v5240_v58  ;;  %v6150_v11 = vpop.f32.mrb[159].mxu1 }
0x3b42   :  { %6714 = shalt.err (!%p6711_p2)
}
0x3b43   :  { %s8184_s10 = sld [smem:[#allocation40_spill]] }
0x3b49   :  { %s6715_s27 = scalar_lea.hbm %s8184_s10, 256 }
0x3b4a   :  { %p6716_p3 = scmp.ne.s32.totalorder %s8184_s10, %s6715_s27  ;;  %p6719_p4 = scmp.lt.u32.totalorder %s6715_s27, %s8184_s10 }
0x3b4c   :  { %p6721_p5 = pnand %p6719_p4, %p6716_p3 }
0x3b4e   :  { %6724 = shalt.err (!%p6721_p5)
}
0x3b4f   :  { %5281 = dma.vmem_to_hbm [thread:$0]  %s5276_s24, 256, %s8184_s10, [#allocation4], %s6775_s13, %s6775_s13, %s6776_s2  }
0x3b50   :  { %s6798_s9 = smov [#allocation23]  }
0x3b51   :  { %s5287_s6 = sshll.u32 %s6798_s9, 4  ;;  %s5288_s6 = int_to_ptr.vmem [resolvable:$true] %s5287_s6 }
0x3b52   :  { %s6725_s7 = scalar_lea.vmem %s5288_s6, 256  ;;  %p6730_p7 = scmp.lt.s32.totalorder %s5288_s6, %s5288_s6 }
0x3b53   :  { %p6726_p6 = scmp.ne.s32.totalorder %s5288_s6, %s6725_s7  ;;  %p6731_p8 = scmp.lt.s32.totalorder %s6725_s7, %s6725_s7 }
0x3b55   :  { %p6732_p9 = por %p6731_p8, %p6730_p7 }
0x3b57   :  { %p6733_p10 = pnand %p6732_p9, %p6726_p6 }
0x3b93   :  { %v5260_v5 = vpop.xlane.xlu1 %5259 }
0x3b94   :  { %6435 = vrcp.f32 %v5260_v5 }
0x3b95   :  { %v5263_v63 = vpop.xlane.xlu0 %5262 }
0x3b96   :  { %6437 = vrcp.f32 %v5263_v63 }
0x3b9e   :  { %v6436_v10 = vpop.eup %6435 }
0x3b9f   :  { %v5265_v52 = vmul.f32 %v6436_v10, %v6432_v43 }
0x3ba0   :  { %v6438_v54 = vpop.eup %6437 }
0x3ba1   :  { %v5267_v1 = vmul.f32 %v6438_v54, %v6434_v57  ;;  %5268 = vst.msk [vmem:[#allocation23] sm:$0xff] %vm270_vm1, %v5265_v52 }
0x3ba3   :  { %5269 = vst.msk [vmem:[#allocation23 + $0x8] sm:$0xff] %vm270_vm1, %v5267_v1 }
0x3ba4   :  { %6736 = shalt.err (!%p6733_p10)
}
0x3ba5   :  { %s8185_s18 = sld [smem:[#allocation41_spill]] }
0x3bab   :  { %s6737_s25 = scalar_lea.hbm %s8185_s18, 256 }
0x3bac   :  { %p6738_p11 = scmp.ne.s32.totalorder %s8185_s18, %s6737_s25  ;;  %p6741_p12 = scmp.lt.u32.totalorder %s6737_s25, %s8185_s18 }
0x3bae   :  { %p6743_p13 = pnand %p6741_p12, %p6738_p11 }
0x3bb0   :  { %6746 = shalt.err (!%p6743_p13)
}
0x3bb1   :  { %5293 = dma.vmem_to_hbm [thread:$0]  %s5288_s6, 256, %s8185_s18, [#allocation24], %s6775_s13, %s6775_s13, %s6776_s2  }
0x3bb2   :  { %6761 = dma.done.wait [#allocation4], 256  }
0x3bb3   :  { %6762 = vsyncadd [#allocation4], 4294967040 }
0x3bb4   :  { %6763 = dma.done.wait [#allocation24], 256  }
0x3bb5   :  { %6764 = vsyncadd [#allocation24], 4294967040 }
0x3bb6   :  { %5300 = vsyncpa [#allocation3], 1 }
0x3bb7   :  { %5301 = vsyncpa [#allocation6], 1 }
0x3bb8   :  { %5302 = vsyncpa [#allocation9], 1 }
0x3bb9   :  { %5303 = vsyncpa [#allocation12], 1 }
0x3bba   :  { %5304 = vsyncpa [#allocation15], 1 }
0x3bbb   :  { %5305 = vsyncpa [#allocation18], 1 }
0x3bbc   :  { %5306 = vsyncpa [#allocation21], 1 }
0x3bbd   :  { %5307 = vsyncpa [#allocation4], 1 }
0x3bbe   :  { %5308 = vsyncpa [#allocation24], 1 }

</bundles_post_ra>
